<compile_context>
chip_gen: v6e
topology: v6e:2x2x1
jax: 0.10.0
libtpu: 0.0.40
codegen_flags: <defaults>
</compile_context>

<pallas_src>
import functools

import jax
import jax.numpy as jnp
from jax.experimental import pallas as pl
from jax.experimental.pallas import tpu as pltpu


# ----------------------------------------------------------------------------
# Fused LSTM branch kernel: mask -> 8 LSTM layers (wavefront) -> mean pool
# over N -> fc.  Everything resident in VMEM, fully unrolled.
# ----------------------------------------------------------------------------
def _fused_lstm_kernel(emb_ref, mask_ref, wih0_ref, wihr_ref, whh_ref, b_ref,
                       wfc_ref, bfc_ref, out_ref):
    T, N, E = emb_ref.shape
    L, H, H4 = whh_ref.shape

    # Masked layer-0 input, computed once as a value (no scratch store).
    emb_m = emb_ref[...] * mask_ref[...].reshape(T, N, 1)          # (T, N, E)

    # Per-layer recurrent state carried as values (tiny: (N, H) each).
    h = [jnp.zeros((N, H), jnp.float32) for _ in range(L)]
    c = [jnp.zeros((N, H), jnp.float32) for _ in range(L)]
    top = [None] * T                                               # last-layer outputs

    def cell(l, t):
        # Inputs: x_{l-1, t} (produced at wavefront step s-1) and (h_l, c_l)
        # at time t-1.  Static `l`/`t` -> static ref slices / value slices.
        x_in = emb_m[t] if l == 0 else h[l - 1]
        w_ih = wih0_ref[...] if l == 0 else wihr_ref[l - 1]
        gates = (jnp.dot(x_in, w_ih, preferred_element_type=jnp.float32)
                 + jnp.dot(h[l], whh_ref[l], preferred_element_type=jnp.float32)
                 + b_ref[l])                                       # (N, 4H)
        sig = jax.nn.sigmoid(gates)                                # one EUP pass
        i_g = sig[:, 0 * H:1 * H]
        f_g = sig[:, 1 * H:2 * H]
        g_g = jnp.tanh(gates[:, 2 * H:3 * H])
        o_g = sig[:, 3 * H:4 * H]
        c[l] = f_g * c[l] + i_g * g_g
        h[l] = o_g * jnp.tanh(c[l])
        if l == L - 1:
            top[t] = h[l]

    # Layer/time wavefront: step s touches cells (l, t=s-l), all independent.
    # Process layers in DECREASING order so cell (l, t) reads h[l-1] before
    # layer l-1 is advanced within the same step.
    for s in range(T + L - 1):
        lo = max(0, s - T + 1)
        hi = min(L - 1, s)
        for l in range(hi, lo - 1, -1):
            cell(l, s - l)

    # Epilogue: out.transpose(2,1) + AdaptiveAvgPool1d(1).squeeze(-1)
    #   == mean over the N ("batch") axis, then fc_layer.  Dropout = identity.
    pooled = jnp.concatenate(
        [jnp.mean(top[t], axis=0, keepdims=True) for t in range(T)],
        axis=0)                                                    # (T, H)
    out_ref[...] = (jnp.dot(pooled, wfc_ref[...],
                            preferred_element_type=jnp.float32)
                    + bfc_ref[...])


def lstm_branch(embedding, mask, wih0, wihr, whh, bias, w_fc_t, b_fc):
    T = embedding.shape[0]
    C = w_fc_t.shape[1]
    return pl.pallas_call(
        _fused_lstm_kernel,
        out_shape=jax.ShapeDtypeStruct((T, C), jnp.float32),
        in_specs=[pl.BlockSpec(memory_space=pltpu.MemorySpace.VMEM)] * 8,
        out_specs=pl.BlockSpec(memory_space=pltpu.MemorySpace.VMEM),
        compiler_params=pltpu.CompilerParams(vmem_limit_bytes=32 * 1024 * 1024),
    )(embedding, mask, wih0, wihr, whh, bias, w_fc_t, b_fc)


# ----------------------------------------------------------------------------
# Non-LSTM branch: mask * embedding -> AvgPool1d(E) -> linear1 -> softmax(dim=1)
# -> linear2, fused into one (grid-less) kernel.  Left as-is per review
# (entirely fixed-overhead bound at these shapes).
# ----------------------------------------------------------------------------
def _glob_branch_kernel(emb_ref, mask_ref, w1_ref, b1_ref, w2_ref, b2_ref,
                        y_ref):
    D0, L, E = emb_ref.shape
    masked = emb_ref[...] * mask_ref[...].reshape(D0, L, 1)        # (D0, L, E)
    pooled = jnp.mean(masked, axis=-1)                             # AvgPool1d(E)
    x = (jnp.dot(pooled, w1_ref[...], preferred_element_type=jnp.float32)
         + b1_ref[...])                                            # (D0, H)
    x = x - jnp.max(x, axis=1, keepdims=True)
    e = jnp.exp(x)
    # Exact reciprocal kept: approx=True relative error can exceed the 1e-4
    # correctness tolerance on this tiny, already overhead-bound kernel.
    sm = e * pl.reciprocal(jnp.sum(e, axis=1, keepdims=True), approx=False)
    y_ref[...] = (jnp.dot(sm, w2_ref[...], preferred_element_type=jnp.float32)
                  + b2_ref[...])


def glob_branch(embedding, mask, w1_t, b1, w2_t, b2):
    D0 = embedding.shape[0]
    C = w2_t.shape[1]
    return pl.pallas_call(
        _glob_branch_kernel,
        out_shape=jax.ShapeDtypeStruct((D0, C), jnp.float32),
        in_specs=[pl.BlockSpec(memory_space=pltpu.MemorySpace.VMEM)] * 6,
        out_specs=pl.BlockSpec(memory_space=pltpu.MemorySpace.VMEM),
    )(embedding, mask, w1_t, b1, w2_t, b2)


# ----------------------------------------------------------------------------
# Parameter packing (done once, outside jit): layer-0 w_ih kept separate
# (E, 4H); layers 1..L-1 stacked (L-1, H, 4H); biases pre-added.
# ----------------------------------------------------------------------------
def pack_lstm_params(lstm_layers):
    """lstm_layers: list of (w_ih_t (in,4H), w_hh_t (H,4H), b_ih (1,4H), b_hh (1,4H))."""
    wih0 = lstm_layers[0][0]                                       # (E, 4H)
    wihr = jnp.stack([w[0] for w in lstm_layers[1:]])              # (L-1, H, 4H)
    whh = jnp.stack([w[1] for w in lstm_layers])                   # (L, H, 4H)
    bias = jnp.stack([w[2] + w[3] for w in lstm_layers])           # (L, 1, 4H)
    return wih0, wihr, whh, bias


# ----------------------------------------------------------------------------
# Full model forward (eval mode: dropout = identity).
# ----------------------------------------------------------------------------
def model_forward(params, embedding, mask, lstm: bool):
    if lstm:
        return lstm_branch(embedding, mask,
                           params["lstm_wih0"], params["lstm_wihr"],
                           params["lstm_whh"], params["lstm_b"],
                           params["fc_w_t"], params["fc_b"])
    else:
        return glob_branch(embedding, mask,
                           params["lin1_w_t"], params["lin1_b"],
                           params["lin2_w_t"], params["lin2_b"])


# ----------------------------------------------------------------------------
# Pure-JAX references (correctness sanity check).
# ----------------------------------------------------------------------------
def _ref_lstm_branch(params, embedding, mask):
    x = embedding * mask[..., None]
    for (wih_t, whh_t, bih, bhh) in params["lstm"]:
        H = whh_t.shape[0]
        N = x.shape[1]

        def step(carry, xt):
            h, c = carry
            g = xt @ wih_t + h @ whh_t + bih[0] + bhh[0]
            i, f, gg, o = jnp.split(g, 4, axis=-1)
            c = jax.nn.sigmoid(f) * c + jax.nn.sigmoid(i) * jnp.tanh(gg)
            h = jax.nn.sigmoid(o) * jnp.tanh(c)
            return (h, c), h

        h0 = jnp.zeros((N, H), jnp.float32)
        _, x = jax.lax.scan(step, (h0, h0), x)
    pooled = x.mean(axis=1)
    return pooled @ params["fc_w_t"] + params["fc_b"][0]


def _ref_glob_branch(params, embedding, mask):
    masked = embedding * mask[..., None]
    pooled = masked.mean(axis=-1)
    x = pooled @ params["lin1_w_t"] + params["lin1_b"][0]
    sm = jax.nn.softmax(x, axis=1)
    return sm @ params["lin2_w_t"] + params["lin2_b"][0]


if __name__ == "__main__":
    # Small shapes consistent with the module.
    D0 = 4            # leading dim of `embedding` (LSTM recurrence axis, T)
    MAX_LENGTH = 8    # "batch" axis inside LSTM / AvgPool channel axis (N)
    EMB_DIM = 16      # emb_output_dim
    HIDDEN = 32       # hidden_size
    NUM_CLASSES = 5
    NUM_LAYERS = 8

    key = jax.random.PRNGKey(0)
    keys = jax.random.split(key, 64)
    kit = iter(keys)
    scale = 1.0 / jnp.sqrt(HIDDEN)

    def uni(k, shape):
        return jax.random.uniform(k, shape, jnp.float32, -scale, scale)

    raw_lstm = []
    for layer in range(NUM_LAYERS):
        in_dim = EMB_DIM if layer == 0 else HIDDEN
        w_ih = uni(next(kit), (4 * HIDDEN, in_dim))
        w_hh = uni(next(kit), (4 * HIDDEN, HIDDEN))
        b_ih = uni(next(kit), (4 * HIDDEN,))
        b_hh = uni(next(kit), (4 * HIDDEN,))
        # store transposed weights / row-biases so kernels do x @ W directly
        raw_lstm.append((w_ih.T, w_hh.T,
                         b_ih.reshape(1, -1), b_hh.reshape(1, -1)))

    wih0, wihr, whh_stacked, bias_stacked = pack_lstm_params(raw_lstm)

    fc_w_t = uni(next(kit), (NUM_CLASSES, HIDDEN)).T
    fc_b = uni(next(kit), (NUM_CLASSES,)).reshape(1, -1)
    lin1_w_t = uni(next(kit), (HIDDEN, MAX_LENGTH)).T
    lin1_b = uni(next(kit), (HIDDEN,)).reshape(1, -1)
    lin2_w_t = uni(next(kit), (NUM_CLASSES, HIDDEN)).T
    lin2_b = uni(next(kit), (NUM_CLASSES,)).reshape(1, -1)

    kernel_params = {
        "lstm_wih0": wih0, "lstm_wihr": wihr,
        "lstm_whh": whh_stacked, "lstm_b": bias_stacked,
        "fc_w_t": fc_w_t, "fc_b": fc_b,
        "lin1_w_t": lin1_w_t, "lin1_b": lin1_b,
        "lin2_w_t": lin2_w_t, "lin2_b": lin2_b,
    }
    ref_params = {
        "lstm": raw_lstm, "fc_w_t": fc_w_t, "fc_b": fc_b,
        "lin1_w_t": lin1_w_t, "lin1_b": lin1_b,
        "lin2_w_t": lin2_w_t, "lin2_b": lin2_b,
    }

    embedding = jax.random.normal(next(kit), (D0, MAX_LENGTH, EMB_DIM),
                                  jnp.float32)
    mask = (jax.random.uniform(next(kit), (D0, MAX_LENGTH)) > 0.3
            ).astype(jnp.float32)

    fwd_lstm = jax.jit(functools.partial(model_forward, lstm=True))
    fwd_glob = jax.jit(functools.partial(model_forward, lstm=False))

    out_lstm = jax.block_until_ready(fwd_lstm(kernel_params, embedding, mask))
    out_glob = jax.block_until_ready(fwd_glob(kernel_params, embedding, mask))

    ref_lstm = _ref_lstm_branch(ref_params, embedding, mask)
    ref_glob = _ref_glob_branch(ref_params, embedding, mask)

    assert out_lstm.shape == (D0, NUM_CLASSES)
    assert out_glob.shape == (D0, NUM_CLASSES)
    assert jnp.allclose(out_lstm, ref_lstm, atol=1e-4, rtol=1e-4)
    assert jnp.allclose(out_glob, ref_glob, atol=1e-4, rtol=1e-4)

    # TODO(synk): nn.Dropout / LSTM inter-layer dropout are identity here (eval mode).
    print("KERNEL_OK")
</pallas_src>

<mosaic_0001>
module attributes {stable_mosaic.version = 11 : i64} {
  func.func @_fused_lstm_kernel(%arg0: memref<4x8x16xf32, #tpu.memory_space<vmem>>, %arg1: memref<4x8xf32, #tpu.memory_space<vmem>>, %arg2: memref<16x128xf32, #tpu.memory_space<vmem>>, %arg3: memref<7x32x128xf32, #tpu.memory_space<vmem>>, %arg4: memref<8x32x128xf32, #tpu.memory_space<vmem>>, %arg5: memref<8x1x128xf32, #tpu.memory_space<vmem>>, %arg6: memref<32x5xf32, #tpu.memory_space<vmem>>, %arg7: memref<1x5xf32, #tpu.memory_space<vmem>>, %arg8: memref<4x5xf32, #tpu.memory_space<vmem>>) attributes {dimension_semantics = [], scalar_prefetch = 0 : i64, scratch_operands = 0 : i64, tpu.core_type = #tpu.core_type<tc>} {
    %c0 = arith.constant 0 : index
    %c0_0 = arith.constant 0 : index
    %c0_1 = arith.constant 0 : index
    %0 = vector.load %arg0[%c0, %c0_0, %c0_1] : memref<4x8x16xf32, #tpu.memory_space<vmem>>, vector<4x8x16xf32>
    %c0_2 = arith.constant 0 : index
    %c0_3 = arith.constant 0 : index
    %1 = vector.load %arg1[%c0_2, %c0_3] : memref<4x8xf32, #tpu.memory_space<vmem>>, vector<4x8xf32>
    %2 = vector.shape_cast %1 : vector<4x8xf32> to vector<4x8x1xf32>
    %3 = vector.broadcast %2 : vector<4x8x1xf32> to vector<4x8x16xf32>
    %4 = arith.mulf %0, %3 : vector<4x8x16xf32>
    %cst = arith.constant 0.000000e+00 : f32
    %5 = vector.broadcast %cst : f32 to vector<8x32xf32>
    %cst_4 = arith.constant 0.000000e+00 : f32
    %6 = vector.broadcast %cst_4 : f32 to vector<8x32xf32>
    %cst_5 = arith.constant 0.000000e+00 : f32
    %7 = vector.broadcast %cst_5 : f32 to vector<8x32xf32>
    %cst_6 = arith.constant 0.000000e+00 : f32
    %8 = vector.broadcast %cst_6 : f32 to vector<8x32xf32>
    %cst_7 = arith.constant 0.000000e+00 : f32
    %9 = vector.broadcast %cst_7 : f32 to vector<8x32xf32>
    %cst_8 = arith.constant 0.000000e+00 : f32
    %10 = vector.broadcast %cst_8 : f32 to vector<8x32xf32>
    %cst_9 = arith.constant 0.000000e+00 : f32
    %11 = vector.broadcast %cst_9 : f32 to vector<8x32xf32>
    %cst_10 = arith.constant 0.000000e+00 : f32
    %12 = vector.broadcast %cst_10 : f32 to vector<8x32xf32>
    %cst_11 = arith.constant 0.000000e+00 : f32
    %13 = vector.broadcast %cst_11 : f32 to vector<8x32xf32>
    %cst_12 = arith.constant 0.000000e+00 : f32
    %14 = vector.broadcast %cst_12 : f32 to vector<8x32xf32>
    %cst_13 = arith.constant 0.000000e+00 : f32
    %15 = vector.broadcast %cst_13 : f32 to vector<8x32xf32>
    %cst_14 = arith.constant 0.000000e+00 : f32
    %16 = vector.broadcast %cst_14 : f32 to vector<8x32xf32>
    %cst_15 = arith.constant 0.000000e+00 : f32
    %17 = vector.broadcast %cst_15 : f32 to vector<8x32xf32>
    %cst_16 = arith.constant 0.000000e+00 : f32
    %18 = vector.broadcast %cst_16 : f32 to vector<8x32xf32>
    %cst_17 = arith.constant 0.000000e+00 : f32
    %19 = vector.broadcast %cst_17 : f32 to vector<8x32xf32>
    %cst_18 = arith.constant 0.000000e+00 : f32
    %20 = vector.broadcast %cst_18 : f32 to vector<8x32xf32>
    %21 = vector.extract_strided_slice %4 {offsets = [0, 0, 0], sizes = [1, 8, 16], strides = [1, 1, 1]} : vector<4x8x16xf32> to vector<1x8x16xf32>
    %22 = vector.shape_cast %21 : vector<1x8x16xf32> to vector<8x16xf32>
    %c0_19 = arith.constant 0 : index
    %c0_20 = arith.constant 0 : index
    %23 = vector.load %arg2[%c0_19, %c0_20] : memref<16x128xf32, #tpu.memory_space<vmem>>, vector<16x128xf32>
    %cst_21 = arith.constant dense<0.000000e+00> : vector<8x128xf32>
    %24 = tpu.matmul %22, %23, %cst_21 {dimension_numbers = #tpu.dot_dimension_numbers<[1], [0], [0], [1], [0, 0, 1, 1], [], []>} : vector<8x16xf32>, vector<16x128xf32>, vector<8x128xf32> -> vector<8x128xf32>
    %c0_22 = arith.constant 0 : index
    %c0_23 = arith.constant 0 : index
    %c0_24 = arith.constant 0 : index
    %25 = vector.load %arg4[%c0_22, %c0_23, %c0_24] : memref<8x32x128xf32, #tpu.memory_space<vmem>>, vector<1x32x128xf32>
    %26 = vector.shape_cast %25 : vector<1x32x128xf32> to vector<32x128xf32>
    %cst_25 = arith.constant dense<0.000000e+00> : vector<8x128xf32>
    %27 = tpu.matmul %5, %26, %cst_25 {dimension_numbers = #tpu.dot_dimension_numbers<[1], [0], [0], [1], [0, 0, 1, 1], [], []>} : vector<8x32xf32>, vector<32x128xf32>, vector<8x128xf32> -> vector<8x128xf32>
    %28 = arith.addf %24, %27 : vector<8x128xf32>
    %c0_26 = arith.constant 0 : index
    %c0_27 = arith.constant 0 : index
    %c0_28 = arith.constant 0 : index
    %29 = vector.load %arg5[%c0_26, %c0_27, %c0_28] : memref<8x1x128xf32, #tpu.memory_space<vmem>>, vector<1x1x128xf32>
    %30 = vector.shape_cast %29 : vector<1x1x128xf32> to vector<1x128xf32>
    %31 = vector.broadcast %30 : vector<1x128xf32> to vector<8x128xf32>
    %32 = arith.addf %28, %31 : vector<8x128xf32>
    %33 = arith.negf %32 : vector<8x128xf32>
    %34 = math.exp %33 : vector<8x128xf32>
    %cst_29 = arith.constant 1.000000e+00 : f32
    %35 = vector.broadcast %cst_29 : f32 to vector<8x128xf32>
    %36 = arith.addf %35, %34 : vector<8x128xf32>
    %37 = arith.divf %35, %36 : vector<8x128xf32>
    %38 = vector.extract_strided_slice %37 {offsets = [0, 0], sizes = [8, 32], strides = [1, 1]} : vector<8x128xf32> to vector<8x32xf32>
    %39 = vector.extract_strided_slice %37 {offsets = [0, 32], sizes = [8, 32], strides = [1, 1]} : vector<8x128xf32> to vector<8x32xf32>
    %40 = vector.extract_strided_slice %32 {offsets = [0, 64], sizes = [8, 32], strides = [1, 1]} : vector<8x128xf32> to vector<8x32xf32>
    %41 = math.tanh %40 : vector<8x32xf32>
    %42 = vector.extract_strided_slice %37 {offsets = [0, 96], sizes = [8, 32], strides = [1, 1]} : vector<8x128xf32> to vector<8x32xf32>
    %43 = arith.mulf %39, %13 : vector<8x32xf32>
    %44 = arith.mulf %38, %41 : vector<8x32xf32>
    %45 = arith.addf %43, %44 : vector<8x32xf32>
    %46 = math.tanh %45 : vector<8x32xf32>
    %47 = arith.mulf %42, %46 : vector<8x32xf32>
    %c0_30 = arith.constant 0 : index
    %c0_31 = arith.constant 0 : index
    %c0_32 = arith.constant 0 : index
    %48 = vector.load %arg3[%c0_30, %c0_31, %c0_32] : memref<7x32x128xf32, #tpu.memory_space<vmem>>, vector<1x32x128xf32>
    %49 = vector.shape_cast %48 : vector<1x32x128xf32> to vector<32x128xf32>
    %cst_33 = arith.constant dense<0.000000e+00> : vector<8x128xf32>
    %50 = tpu.matmul %47, %49, %cst_33 {dimension_numbers = #tpu.dot_dimension_numbers<[1], [0], [0], [1], [0, 0, 1, 1], [], []>} : vector<8x32xf32>, vector<32x128xf32>, vector<8x128xf32> -> vector<8x128xf32>
    %c1 = arith.constant 1 : index
    %c0_34 = arith.constant 0 : index
    %c0_35 = arith.constant 0 : index
    %51 = vector.load %arg4[%c1, %c0_34, %c0_35] : memref<8x32x128xf32, #tpu.memory_space<vmem>>, vector<1x32x128xf32>
    %52 = vector.shape_cast %51 : vector<1x32x128xf32> to vector<32x128xf32>
    %cst_36 = arith.constant dense<0.000000e+00> : vector<8x128xf32>
    %53 = tpu.matmul %6, %52, %cst_36 {dimension_numbers = #tpu.dot_dimension_numbers<[1], [0], [0], [1], [0, 0, 1, 1], [], []>} : vector<8x32xf32>, vector<32x128xf32>, vector<8x128xf32> -> vector<8x128xf32>
    %54 = arith.addf %50, %53 : vector<8x128xf32>
    %c1_37 = arith.constant 1 : index
    %c0_38 = arith.constant 0 : index
    %c0_39 = arith.constant 0 : index
    %55 = vector.load %arg5[%c1_37, %c0_38, %c0_39] : memref<8x1x128xf32, #tpu.memory_space<vmem>>, vector<1x1x128xf32>
    %56 = vector.shape_cast %55 : vector<1x1x128xf32> to vector<1x128xf32>
    %57 = vector.broadcast %56 : vector<1x128xf32> to vector<8x128xf32>
    %58 = arith.addf %54, %57 : vector<8x128xf32>
    %59 = arith.negf %58 : vector<8x128xf32>
    %60 = math.exp %59 : vector<8x128xf32>
    %cst_40 = arith.constant 1.000000e+00 : f32
    %61 = vector.broadcast %cst_40 : f32 to vector<8x128xf32>
    %62 = arith.addf %61, %60 : vector<8x128xf32>
    %63 = arith.divf %61, %62 : vector<8x128xf32>
    %64 = vector.extract_strided_slice %63 {offsets = [0, 0], sizes = [8, 32], strides = [1, 1]} : vector<8x128xf32> to vector<8x32xf32>
    %65 = vector.extract_strided_slice %63 {offsets = [0, 32], sizes = [8, 32], strides = [1, 1]} : vector<8x128xf32> to vector<8x32xf32>
    %66 = vector.extract_strided_slice %58 {offsets = [0, 64], sizes = [8, 32], strides = [1, 1]} : vector<8x128xf32> to vector<8x32xf32>
    %67 = math.tanh %66 : vector<8x32xf32>
    %68 = vector.extract_strided_slice %63 {offsets = [0, 96], sizes = [8, 32], strides = [1, 1]} : vector<8x128xf32> to vector<8x32xf32>
    %69 = arith.mulf %65, %14 : vector<8x32xf32>
    %70 = arith.mulf %64, %67 : vector<8x32xf32>
    %71 = arith.addf %69, %70 : vector<8x32xf32>
    %72 = math.tanh %71 : vector<8x32xf32>
    %73 = arith.mulf %68, %72 : vector<8x32xf32>
    %74 = vector.extract_strided_slice %4 {offsets = [1, 0, 0], sizes = [1, 8, 16], strides = [1, 1, 1]} : vector<4x8x16xf32> to vector<1x8x16xf32>
    %75 = vector.shape_cast %74 : vector<1x8x16xf32> to vector<8x16xf32>
    %c0_41 = arith.constant 0 : index
    %c0_42 = arith.constant 0 : index
    %76 = vector.load %arg2[%c0_41, %c0_42] : memref<16x128xf32, #tpu.memory_space<vmem>>, vector<16x128xf32>
    %cst_43 = arith.constant dense<0.000000e+00> : vector<8x128xf32>
    %77 = tpu.matmul %75, %76, %cst_43 {dimension_numbers = #tpu.dot_dimension_numbers<[1], [0], [0], [1], [0, 0, 1, 1], [], []>} : vector<8x16xf32>, vector<16x128xf32>, vector<8x128xf32> -> vector<8x128xf32>
    %c0_44 = arith.constant 0 : index
    %c0_45 = arith.constant 0 : index
    %c0_46 = arith.constant 0 : index
    %78 = vector.load %arg4[%c0_44, %c0_45, %c0_46] : memref<8x32x128xf32, #tpu.memory_space<vmem>>, vector<1x32x128xf32>
    %79 = vector.shape_cast %78 : vector<1x32x128xf32> to vector<32x128xf32>
    %cst_47 = arith.constant dense<0.000000e+00> : vector<8x128xf32>
    %80 = tpu.matmul %47, %79, %cst_47 {dimension_numbers = #tpu.dot_dimension_numbers<[1], [0], [0], [1], [0, 0, 1, 1], [], []>} : vector<8x32xf32>, vector<32x128xf32>, vector<8x128xf32> -> vector<8x128xf32>
    %81 = arith.addf %77, %80 : vector<8x128xf32>
    %c0_48 = arith.constant 0 : index
    %c0_49 = arith.constant 0 : index
    %c0_50 = arith.constant 0 : index
    %82 = vector.load %arg5[%c0_48, %c0_49, %c0_50] : memref<8x1x128xf32, #tpu.memory_space<vmem>>, vector<1x1x128xf32>
    %83 = vector.shape_cast %82 : vector<1x1x128xf32> to vector<1x128xf32>
    %84 = vector.broadcast %83 : vector<1x128xf32> to vector<8x128xf32>
    %85 = arith.addf %81, %84 : vector<8x128xf32>
    %86 = arith.negf %85 : vector<8x128xf32>
    %87 = math.exp %86 : vector<8x128xf32>
    %cst_51 = arith.constant 1.000000e+00 : f32
    %88 = vector.broadcast %cst_51 : f32 to vector<8x128xf32>
    %89 = arith.addf %88, %87 : vector<8x128xf32>
    %90 = arith.divf %88, %89 : vector<8x128xf32>
    %91 = vector.extract_strided_slice %90 {offsets = [0, 0], sizes = [8, 32], strides = [1, 1]} : vector<8x128xf32> to vector<8x32xf32>
    %92 = vector.extract_strided_slice %90 {offsets = [0, 32], sizes = [8, 32], strides = [1, 1]} : vector<8x128xf32> to vector<8x32xf32>
    %93 = vector.extract_strided_slice %85 {offsets = [0, 64], sizes = [8, 32], strides = [1, 1]} : vector<8x128xf32> to vector<8x32xf32>
    %94 = math.tanh %93 : vector<8x32xf32>
    %95 = vector.extract_strided_slice %90 {offsets = [0, 96], sizes = [8, 32], strides = [1, 1]} : vector<8x128xf32> to vector<8x32xf32>
    %96 = arith.mulf %92, %45 : vector<8x32xf32>
    %97 = arith.mulf %91, %94 : vector<8x32xf32>
    %98 = arith.addf %96, %97 : vector<8x32xf32>
    %99 = math.tanh %98 : vector<8x32xf32>
    %100 = arith.mulf %95, %99 : vector<8x32xf32>
    %c1_52 = arith.constant 1 : index
    %c0_53 = arith.constant 0 : index
    %c0_54 = arith.constant 0 : index
    %101 = vector.load %arg3[%c1_52, %c0_53, %c0_54] : memref<7x32x128xf32, #tpu.memory_space<vmem>>, vector<1x32x128xf32>
    %102 = vector.shape_cast %101 : vector<1x32x128xf32> to vector<32x128xf32>
    %cst_55 = arith.constant dense<0.000000e+00> : vector<8x128xf32>
    %103 = tpu.matmul %73, %102, %cst_55 {dimension_numbers = #tpu.dot_dimension_numbers<[1], [0], [0], [1], [0, 0, 1, 1], [], []>} : vector<8x32xf32>, vector<32x128xf32>, vector<8x128xf32> -> vector<8x128xf32>
    %c2 = arith.constant 2 : index
    %c0_56 = arith.constant 0 : index
    %c0_57 = arith.constant 0 : index
    %104 = vector.load %arg4[%c2, %c0_56, %c0_57] : memref<8x32x128xf32, #tpu.memory_space<vmem>>, vector<1x32x128xf32>
    %105 = vector.shape_cast %104 : vector<1x32x128xf32> to vector<32x128xf32>
    %cst_58 = arith.constant dense<0.000000e+00> : vector<8x128xf32>
    %106 = tpu.matmul %7, %105, %cst_58 {dimension_numbers = #tpu.dot_dimension_numbers<[1], [0], [0], [1], [0, 0, 1, 1], [], []>} : vector<8x32xf32>, vector<32x128xf32>, vector<8x128xf32> -> vector<8x128xf32>
    %107 = arith.addf %103, %106 : vector<8x128xf32>
    %c2_59 = arith.constant 2 : index
    %c0_60 = arith.constant 0 : index
    %c0_61 = arith.constant 0 : index
    %108 = vector.load %arg5[%c2_59, %c0_60, %c0_61] : memref<8x1x128xf32, #tpu.memory_space<vmem>>, vector<1x1x128xf32>
    %109 = vector.shape_cast %108 : vector<1x1x128xf32> to vector<1x128xf32>
    %110 = vector.broadcast %109 : vector<1x128xf32> to vector<8x128xf32>
    %111 = arith.addf %107, %110 : vector<8x128xf32>
    %112 = arith.negf %111 : vector<8x128xf32>
    %113 = math.exp %112 : vector<8x128xf32>
    %cst_62 = arith.constant 1.000000e+00 : f32
    %114 = vector.broadcast %cst_62 : f32 to vector<8x128xf32>
    %115 = arith.addf %114, %113 : vector<8x128xf32>
    %116 = arith.divf %114, %115 : vector<8x128xf32>
    %117 = vector.extract_strided_slice %116 {offsets = [0, 0], sizes = [8, 32], strides = [1, 1]} : vector<8x128xf32> to vector<8x32xf32>
    %118 = vector.extract_strided_slice %116 {offsets = [0, 32], sizes = [8, 32], strides = [1, 1]} : vector<8x128xf32> to vector<8x32xf32>
    %119 = vector.extract_strided_slice %111 {offsets = [0, 64], sizes = [8, 32], strides = [1, 1]} : vector<8x128xf32> to vector<8x32xf32>
    %120 = math.tanh %119 : vector<8x32xf32>
    %121 = vector.extract_strided_slice %116 {offsets = [0, 96], sizes = [8, 32], strides = [1, 1]} : vector<8x128xf32> to vector<8x32xf32>
    %122 = arith.mulf %118, %15 : vector<8x32xf32>
    %123 = arith.mulf %117, %120 : vector<8x32xf32>
    %124 = arith.addf %122, %123 : vector<8x32xf32>
    %125 = math.tanh %124 : vector<8x32xf32>
    %126 = arith.mulf %121, %125 : vector<8x32xf32>
    %c0_63 = arith.constant 0 : index
    %c0_64 = arith.constant 0 : index
    %c0_65 = arith.constant 0 : index
    %127 = vector.load %arg3[%c0_63, %c0_64, %c0_65] : memref<7x32x128xf32, #tpu.memory_space<vmem>>, vector<1x32x128xf32>
    %128 = vector.shape_cast %127 : vector<1x32x128xf32> to vector<32x128xf32>
    %cst_66 = arith.constant dense<0.000000e+00> : vector<8x128xf32>
    %129 = tpu.matmul %100, %128, %cst_66 {dimension_numbers = #tpu.dot_dimension_numbers<[1], [0], [0], [1], [0, 0, 1, 1], [], []>} : vector<8x32xf32>, vector<32x128xf32>, vector<8x128xf32> -> vector<8x128xf32>
    %c1_67 = arith.constant 1 : index
    %c0_68 = arith.constant 0 : index
    %c0_69 = arith.constant 0 : index
    %130 = vector.load %arg4[%c1_67, %c0_68, %c0_69] : memref<8x32x128xf32, #tpu.memory_space<vmem>>, vector<1x32x128xf32>
    %131 = vector.shape_cast %130 : vector<1x32x128xf32> to vector<32x128xf32>
    %cst_70 = arith.constant dense<0.000000e+00> : vector<8x128xf32>
    %132 = tpu.matmul %73, %131, %cst_70 {dimension_numbers = #tpu.dot_dimension_numbers<[1], [0], [0], [1], [0, 0, 1, 1], [], []>} : vector<8x32xf32>, vector<32x128xf32>, vector<8x128xf32> -> vector<8x128xf32>
    %133 = arith.addf %129, %132 : vector<8x128xf32>
    %c1_71 = arith.constant 1 : index
    %c0_72 = arith.constant 0 : index
    %c0_73 = arith.constant 0 : index
    %134 = vector.load %arg5[%c1_71, %c0_72, %c0_73] : memref<8x1x128xf32, #tpu.memory_space<vmem>>, vector<1x1x128xf32>
    %135 = vector.shape_cast %134 : vector<1x1x128xf32> to vector<1x128xf32>
    %136 = vector.broadcast %135 : vector<1x128xf32> to vector<8x128xf32>
    %137 = arith.addf %133, %136 : vector<8x128xf32>
    %138 = arith.negf %137 : vector<8x128xf32>
    %139 = math.exp %138 : vector<8x128xf32>
    %cst_74 = arith.constant 1.000000e+00 : f32
    %140 = vector.broadcast %cst_74 : f32 to vector<8x128xf32>
    %141 = arith.addf %140, %139 : vector<8x128xf32>
    %142 = arith.divf %140, %141 : vector<8x128xf32>
    %143 = vector.extract_strided_slice %142 {offsets = [0, 0], sizes = [8, 32], strides = [1, 1]} : vector<8x128xf32> to vector<8x32xf32>
    %144 = vector.extract_strided_slice %142 {offsets = [0, 32], sizes = [8, 32], strides = [1, 1]} : vector<8x128xf32> to vector<8x32xf32>
    %145 = vector.extract_strided_slice %137 {offsets = [0, 64], sizes = [8, 32], strides = [1, 1]} : vector<8x128xf32> to vector<8x32xf32>
    %146 = math.tanh %145 : vector<8x32xf32>
    %147 = vector.extract_strided_slice %142 {offsets = [0, 96], sizes = [8, 32], strides = [1, 1]} : vector<8x128xf32> to vector<8x32xf32>
    %148 = arith.mulf %144, %71 : vector<8x32xf32>
    %149 = arith.mulf %143, %146 : vector<8x32xf32>
    %150 = arith.addf %148, %149 : vector<8x32xf32>
    %151 = math.tanh %150 : vector<8x32xf32>
    %152 = arith.mulf %147, %151 : vector<8x32xf32>
    %153 = vector.extract_strided_slice %4 {offsets = [2, 0, 0], sizes = [1, 8, 16], strides = [1, 1, 1]} : vector<4x8x16xf32> to vector<1x8x16xf32>
    %154 = vector.shape_cast %153 : vector<1x8x16xf32> to vector<8x16xf32>
    %c0_75 = arith.constant 0 : index
    %c0_76 = arith.constant 0 : index
    %155 = vector.load %arg2[%c0_75, %c0_76] : memref<16x128xf32, #tpu.memory_space<vmem>>, vector<16x128xf32>
    %cst_77 = arith.constant dense<0.000000e+00> : vector<8x128xf32>
    %156 = tpu.matmul %154, %155, %cst_77 {dimension_numbers = #tpu.dot_dimension_numbers<[1], [0], [0], [1], [0, 0, 1, 1], [], []>} : vector<8x16xf32>, vector<16x128xf32>, vector<8x128xf32> -> vector<8x128xf32>
    %c0_78 = arith.constant 0 : index
    %c0_79 = arith.constant 0 : index
    %c0_80 = arith.constant 0 : index
    %157 = vector.load %arg4[%c0_78, %c0_79, %c0_80] : memref<8x32x128xf32, #tpu.memory_space<vmem>>, vector<1x32x128xf32>
    %158 = vector.shape_cast %157 : vector<1x32x128xf32> to vector<32x128xf32>
    %cst_81 = arith.constant dense<0.000000e+00> : vector<8x128xf32>
    %159 = tpu.matmul %100, %158, %cst_81 {dimension_numbers = #tpu.dot_dimension_numbers<[1], [0], [0], [1], [0, 0, 1, 1], [], []>} : vector<8x32xf32>, vector<32x128xf32>, vector<8x128xf32> -> vector<8x128xf32>
    %160 = arith.addf %156, %159 : vector<8x128xf32>
    %c0_82 = arith.constant 0 : index
    %c0_83 = arith.constant 0 : index
    %c0_84 = arith.constant 0 : index
    %161 = vector.load %arg5[%c0_82, %c0_83, %c0_84] : memref<8x1x128xf32, #tpu.memory_space<vmem>>, vector<1x1x128xf32>
    %162 = vector.shape_cast %161 : vector<1x1x128xf32> to vector<1x128xf32>
    %163 = vector.broadcast %162 : vector<1x128xf32> to vector<8x128xf32>
    %164 = arith.addf %160, %163 : vector<8x128xf32>
    %165 = arith.negf %164 : vector<8x128xf32>
    %166 = math.exp %165 : vector<8x128xf32>
    %cst_85 = arith.constant 1.000000e+00 : f32
    %167 = vector.broadcast %cst_85 : f32 to vector<8x128xf32>
    %168 = arith.addf %167, %166 : vector<8x128xf32>
    %169 = arith.divf %167, %168 : vector<8x128xf32>
    %170 = vector.extract_strided_slice %169 {offsets = [0, 0], sizes = [8, 32], strides = [1, 1]} : vector<8x128xf32> to vector<8x32xf32>
    %171 = vector.extract_strided_slice %169 {offsets = [0, 32], sizes = [8, 32], strides = [1, 1]} : vector<8x128xf32> to vector<8x32xf32>
    %172 = vector.extract_strided_slice %164 {offsets = [0, 64], sizes = [8, 32], strides = [1, 1]} : vector<8x128xf32> to vector<8x32xf32>
    %173 = math.tanh %172 : vector<8x32xf32>
    %174 = vector.extract_strided_slice %169 {offsets = [0, 96], sizes = [8, 32], strides = [1, 1]} : vector<8x128xf32> to vector<8x32xf32>
    %175 = arith.mulf %171, %98 : vector<8x32xf32>
    %176 = arith.mulf %170, %173 : vector<8x32xf32>
    %177 = arith.addf %175, %176 : vector<8x32xf32>
    %178 = math.tanh %177 : vector<8x32xf32>
    %179 = arith.mulf %174, %178 : vector<8x32xf32>
    %c2_86 = arith.constant 2 : index
    %c0_87 = arith.constant 0 : index
    %c0_88 = arith.constant 0 : index
    %180 = vector.load %arg3[%c2_86, %c0_87, %c0_88] : memref<7x32x128xf32, #tpu.memory_space<vmem>>, vector<1x32x128xf32>
    %181 = vector.shape_cast %180 : vector<1x32x128xf32> to vector<32x128xf32>
    %cst_89 = arith.constant dense<0.000000e+00> : vector<8x128xf32>
    %182 = tpu.matmul %126, %181, %cst_89 {dimension_numbers = #tpu.dot_dimension_numbers<[1], [0], [0], [1], [0, 0, 1, 1], [], []>} : vector<8x32xf32>, vector<32x128xf32>, vector<8x128xf32> -> vector<8x128xf32>
    %c3 = arith.constant 3 : index
    %c0_90 = arith.constant 0 : index
    %c0_91 = arith.constant 0 : index
    %183 = vector.load %arg4[%c3, %c0_90, %c0_91] : memref<8x32x128xf32, #tpu.memory_space<vmem>>, vector<1x32x128xf32>
    %184 = vector.shape_cast %183 : vector<1x32x128xf32> to vector<32x128xf32>
    %cst_92 = arith.constant dense<0.000000e+00> : vector<8x128xf32>
    %185 = tpu.matmul %8, %184, %cst_92 {dimension_numbers = #tpu.dot_dimension_numbers<[1], [0], [0], [1], [0, 0, 1, 1], [], []>} : vector<8x32xf32>, vector<32x128xf32>, vector<8x128xf32> -> vector<8x128xf32>
    %186 = arith.addf %182, %185 : vector<8x128xf32>
    %c3_93 = arith.constant 3 : index
    %c0_94 = arith.constant 0 : index
    %c0_95 = arith.constant 0 : index
    %187 = vector.load %arg5[%c3_93, %c0_94, %c0_95] : memref<8x1x128xf32, #tpu.memory_space<vmem>>, vector<1x1x128xf32>
    %188 = vector.shape_cast %187 : vector<1x1x128xf32> to vector<1x128xf32>
    %189 = vector.broadcast %188 : vector<1x128xf32> to vector<8x128xf32>
    %190 = arith.addf %186, %189 : vector<8x128xf32>
    %191 = arith.negf %190 : vector<8x128xf32>
    %192 = math.exp %191 : vector<8x128xf32>
    %cst_96 = arith.constant 1.000000e+00 : f32
    %193 = vector.broadcast %cst_96 : f32 to vector<8x128xf32>
    %194 = arith.addf %193, %192 : vector<8x128xf32>
    %195 = arith.divf %193, %194 : vector<8x128xf32>
    %196 = vector.extract_strided_slice %195 {offsets = [0, 0], sizes = [8, 32], strides = [1, 1]} : vector<8x128xf32> to vector<8x32xf32>
    %197 = vector.extract_strided_slice %195 {offsets = [0, 32], sizes = [8, 32], strides = [1, 1]} : vector<8x128xf32> to vector<8x32xf32>
    %198 = vector.extract_strided_slice %190 {offsets = [0, 64], sizes = [8, 32], strides = [1, 1]} : vector<8x128xf32> to vector<8x32xf32>
    %199 = math.tanh %198 : vector<8x32xf32>
    %200 = vector.extract_strided_slice %195 {offsets = [0, 96], sizes = [8, 32], strides = [1, 1]} : vector<8x128xf32> to vector<8x32xf32>
    %201 = arith.mulf %197, %16 : vector<8x32xf32>
    %202 = arith.mulf %196, %199 : vector<8x32xf32>
    %203 = arith.addf %201, %202 : vector<8x32xf32>
    %204 = math.tanh %203 : vector<8x32xf32>
    %205 = arith.mulf %200, %204 : vector<8x32xf32>
    %c1_97 = arith.constant 1 : index
    %c0_98 = arith.constant 0 : index
    %c0_99 = arith.constant 0 : index
    %206 = vector.load %arg3[%c1_97, %c0_98, %c0_99] : memref<7x32x128xf32, #tpu.memory_space<vmem>>, vector<1x32x128xf32>
    %207 = vector.shape_cast %206 : vector<1x32x128xf32> to vector<32x128xf32>
    %cst_100 = arith.constant dense<0.000000e+00> : vector<8x128xf32>
    %208 = tpu.matmul %152, %207, %cst_100 {dimension_numbers = #tpu.dot_dimension_numbers<[1], [0], [0], [1], [0, 0, 1, 1], [], []>} : vector<8x32xf32>, vector<32x128xf32>, vector<8x128xf32> -> vector<8x128xf32>
    %c2_101 = arith.constant 2 : index
    %c0_102 = arith.constant 0 : index
    %c0_103 = arith.constant 0 : index
    %209 = vector.load %arg4[%c2_101, %c0_102, %c0_103] : memref<8x32x128xf32, #tpu.memory_space<vmem>>, vector<1x32x128xf32>
    %210 = vector.shape_cast %209 : vector<1x32x128xf32> to vector<32x128xf32>
    %cst_104 = arith.constant dense<0.000000e+00> : vector<8x128xf32>
    %211 = tpu.matmul %126, %210, %cst_104 {dimension_numbers = #tpu.dot_dimension_numbers<[1], [0], [0], [1], [0, 0, 1, 1], [], []>} : vector<8x32xf32>, vector<32x128xf32>, vector<8x128xf32> -> vector<8x128xf32>
    %212 = arith.addf %208, %211 : vector<8x128xf32>
    %c2_105 = arith.constant 2 : index
    %c0_106 = arith.constant 0 : index
    %c0_107 = arith.constant 0 : index
    %213 = vector.load %arg5[%c2_105, %c0_106, %c0_107] : memref<8x1x128xf32, #tpu.memory_space<vmem>>, vector<1x1x128xf32>
    %214 = vector.shape_cast %213 : vector<1x1x128xf32> to vector<1x128xf32>
    %215 = vector.broadcast %214 : vector<1x128xf32> to vector<8x128xf32>
    %216 = arith.addf %212, %215 : vector<8x128xf32>
    %217 = arith.negf %216 : vector<8x128xf32>
    %218 = math.exp %217 : vector<8x128xf32>
    %cst_108 = arith.constant 1.000000e+00 : f32
    %219 = vector.broadcast %cst_108 : f32 to vector<8x128xf32>
    %220 = arith.addf %219, %218 : vector<8x128xf32>
    %221 = arith.divf %219, %220 : vector<8x128xf32>
    %222 = vector.extract_strided_slice %221 {offsets = [0, 0], sizes = [8, 32], strides = [1, 1]} : vector<8x128xf32> to vector<8x32xf32>
    %223 = vector.extract_strided_slice %221 {offsets = [0, 32], sizes = [8, 32], strides = [1, 1]} : vector<8x128xf32> to vector<8x32xf32>
    %224 = vector.extract_strided_slice %216 {offsets = [0, 64], sizes = [8, 32], strides = [1, 1]} : vector<8x128xf32> to vector<8x32xf32>
    %225 = math.tanh %224 : vector<8x32xf32>
    %226 = vector.extract_strided_slice %221 {offsets = [0, 96], sizes = [8, 32], strides = [1, 1]} : vector<8x128xf32> to vector<8x32xf32>
    %227 = arith.mulf %223, %124 : vector<8x32xf32>
    %228 = arith.mulf %222, %225 : vector<8x32xf32>
    %229 = arith.addf %227, %228 : vector<8x32xf32>
    %230 = math.tanh %229 : vector<8x32xf32>
    %231 = arith.mulf %226, %230 : vector<8x32xf32>
    %c0_109 = arith.constant 0 : index
    %c0_110 = arith.constant 0 : index
    %c0_111 = arith.constant 0 : index
    %232 = vector.load %arg3[%c0_109, %c0_110, %c0_111] : memref<7x32x128xf32, #tpu.memory_space<vmem>>, vector<1x32x128xf32>
    %233 = vector.shape_cast %232 : vector<1x32x128xf32> to vector<32x128xf32>
    %cst_112 = arith.constant dense<0.000000e+00> : vector<8x128xf32>
    %234 = tpu.matmul %179, %233, %cst_112 {dimension_numbers = #tpu.dot_dimension_numbers<[1], [0], [0], [1], [0, 0, 1, 1], [], []>} : vector<8x32xf32>, vector<32x128xf32>, vector<8x128xf32> -> vector<8x128xf32>
    %c1_113 = arith.constant 1 : index
    %c0_114 = arith.constant 0 : index
    %c0_115 = arith.constant 0 : index
    %235 = vector.load %arg4[%c1_113, %c0_114, %c0_115] : memref<8x32x128xf32, #tpu.memory_space<vmem>>, vector<1x32x128xf32>
    %236 = vector.shape_cast %235 : vector<1x32x128xf32> to vector<32x128xf32>
    %cst_116 = arith.constant dense<0.000000e+00> : vector<8x128xf32>
    %237 = tpu.matmul %152, %236, %cst_116 {dimension_numbers = #tpu.dot_dimension_numbers<[1], [0], [0], [1], [0, 0, 1, 1], [], []>} : vector<8x32xf32>, vector<32x128xf32>, vector<8x128xf32> -> vector<8x128xf32>
    %238 = arith.addf %234, %237 : vector<8x128xf32>
    %c1_117 = arith.constant 1 : index
    %c0_118 = arith.constant 0 : index
    %c0_119 = arith.constant 0 : index
    %239 = vector.load %arg5[%c1_117, %c0_118, %c0_119] : memref<8x1x128xf32, #tpu.memory_space<vmem>>, vector<1x1x128xf32>
    %240 = vector.shape_cast %239 : vector<1x1x128xf32> to vector<1x128xf32>
    %241 = vector.broadcast %240 : vector<1x128xf32> to vector<8x128xf32>
    %242 = arith.addf %238, %241 : vector<8x128xf32>
    %243 = arith.negf %242 : vector<8x128xf32>
    %244 = math.exp %243 : vector<8x128xf32>
    %cst_120 = arith.constant 1.000000e+00 : f32
    %245 = vector.broadcast %cst_120 : f32 to vector<8x128xf32>
    %246 = arith.addf %245, %244 : vector<8x128xf32>
    %247 = arith.divf %245, %246 : vector<8x128xf32>
    %248 = vector.extract_strided_slice %247 {offsets = [0, 0], sizes = [8, 32], strides = [1, 1]} : vector<8x128xf32> to vector<8x32xf32>
    %249 = vector.extract_strided_slice %247 {offsets = [0, 32], sizes = [8, 32], strides = [1, 1]} : vector<8x128xf32> to vector<8x32xf32>
    %250 = vector.extract_strided_slice %242 {offsets = [0, 64], sizes = [8, 32], strides = [1, 1]} : vector<8x128xf32> to vector<8x32xf32>
    %251 = math.tanh %250 : vector<8x32xf32>
    %252 = vector.extract_strided_slice %247 {offsets = [0, 96], sizes = [8, 32], strides = [1, 1]} : vector<8x128xf32> to vector<8x32xf32>
    %253 = arith.mulf %249, %150 : vector<8x32xf32>
    %254 = arith.mulf %248, %251 : vector<8x32xf32>
    %255 = arith.addf %253, %254 : vector<8x32xf32>
    %256 = math.tanh %255 : vector<8x32xf32>
    %257 = arith.mulf %252, %256 : vector<8x32xf32>
    %258 = vector.extract_strided_slice %4 {offsets = [3, 0, 0], sizes = [1, 8, 16], strides = [1, 1, 1]} : vector<4x8x16xf32> to vector<1x8x16xf32>
    %259 = vector.shape_cast %258 : vector<1x8x16xf32> to vector<8x16xf32>
    %c0_121 = arith.constant 0 : index
    %c0_122 = arith.constant 0 : index
    %260 = vector.load %arg2[%c0_121, %c0_122] : memref<16x128xf32, #tpu.memory_space<vmem>>, vector<16x128xf32>
    %cst_123 = arith.constant dense<0.000000e+00> : vector<8x128xf32>
    %261 = tpu.matmul %259, %260, %cst_123 {dimension_numbers = #tpu.dot_dimension_numbers<[1], [0], [0], [1], [0, 0, 1, 1], [], []>} : vector<8x16xf32>, vector<16x128xf32>, vector<8x128xf32> -> vector<8x128xf32>
    %c0_124 = arith.constant 0 : index
    %c0_125 = arith.constant 0 : index
    %c0_126 = arith.constant 0 : index
    %262 = vector.load %arg4[%c0_124, %c0_125, %c0_126] : memref<8x32x128xf32, #tpu.memory_space<vmem>>, vector<1x32x128xf32>
    %263 = vector.shape_cast %262 : vector<1x32x128xf32> to vector<32x128xf32>
    %cst_127 = arith.constant dense<0.000000e+00> : vector<8x128xf32>
    %264 = tpu.matmul %179, %263, %cst_127 {dimension_numbers = #tpu.dot_dimension_numbers<[1], [0], [0], [1], [0, 0, 1, 1], [], []>} : vector<8x32xf32>, vector<32x128xf32>, vector<8x128xf32> -> vector<8x128xf32>
    %265 = arith.addf %261, %264 : vector<8x128xf32>
    %c0_128 = arith.constant 0 : index
    %c0_129 = arith.constant 0 : index
    %c0_130 = arith.constant 0 : index
    %266 = vector.load %arg5[%c0_128, %c0_129, %c0_130] : memref<8x1x128xf32, #tpu.memory_space<vmem>>, vector<1x1x128xf32>
    %267 = vector.shape_cast %266 : vector<1x1x128xf32> to vector<1x128xf32>
    %268 = vector.broadcast %267 : vector<1x128xf32> to vector<8x128xf32>
    %269 = arith.addf %265, %268 : vector<8x128xf32>
    %270 = arith.negf %269 : vector<8x128xf32>
    %271 = math.exp %270 : vector<8x128xf32>
    %cst_131 = arith.constant 1.000000e+00 : f32
    %272 = vector.broadcast %cst_131 : f32 to vector<8x128xf32>
    %273 = arith.addf %272, %271 : vector<8x128xf32>
    %274 = arith.divf %272, %273 : vector<8x128xf32>
    %275 = vector.extract_strided_slice %274 {offsets = [0, 0], sizes = [8, 32], strides = [1, 1]} : vector<8x128xf32> to vector<8x32xf32>
    %276 = vector.extract_strided_slice %274 {offsets = [0, 32], sizes = [8, 32], strides = [1, 1]} : vector<8x128xf32> to vector<8x32xf32>
    %277 = vector.extract_strided_slice %269 {offsets = [0, 64], sizes = [8, 32], strides = [1, 1]} : vector<8x128xf32> to vector<8x32xf32>
    %278 = math.tanh %277 : vector<8x32xf32>
    %279 = vector.extract_strided_slice %274 {offsets = [0, 96], sizes = [8, 32], strides = [1, 1]} : vector<8x128xf32> to vector<8x32xf32>
    %280 = arith.mulf %276, %177 : vector<8x32xf32>
    %281 = arith.mulf %275, %278 : vector<8x32xf32>
    %282 = arith.addf %280, %281 : vector<8x32xf32>
    %283 = math.tanh %282 : vector<8x32xf32>
    %284 = arith.mulf %279, %283 : vector<8x32xf32>
    %c3_132 = arith.constant 3 : index
    %c0_133 = arith.constant 0 : index
    %c0_134 = arith.constant 0 : index
    %285 = vector.load %arg3[%c3_132, %c0_133, %c0_134] : memref<7x32x128xf32, #tpu.memory_space<vmem>>, vector<1x32x128xf32>
    %286 = vector.shape_cast %285 : vector<1x32x128xf32> to vector<32x128xf32>
    %cst_135 = arith.constant dense<0.000000e+00> : vector<8x128xf32>
    %287 = tpu.matmul %205, %286, %cst_135 {dimension_numbers = #tpu.dot_dimension_numbers<[1], [0], [0], [1], [0, 0, 1, 1], [], []>} : vector<8x32xf32>, vector<32x128xf32>, vector<8x128xf32> -> vector<8x128xf32>
    %c4 = arith.constant 4 : index
    %c0_136 = arith.constant 0 : index
    %c0_137 = arith.constant 0 : index
    %288 = vector.load %arg4[%c4, %c0_136, %c0_137] : memref<8x32x128xf32, #tpu.memory_space<vmem>>, vector<1x32x128xf32>
    %289 = vector.shape_cast %288 : vector<1x32x128xf32> to vector<32x128xf32>
    %cst_138 = arith.constant dense<0.000000e+00> : vector<8x128xf32>
    %290 = tpu.matmul %9, %289, %cst_138 {dimension_numbers = #tpu.dot_dimension_numbers<[1], [0], [0], [1], [0, 0, 1, 1], [], []>} : vector<8x32xf32>, vector<32x128xf32>, vector<8x128xf32> -> vector<8x128xf32>
    %291 = arith.addf %287, %290 : vector<8x128xf32>
    %c4_139 = arith.constant 4 : index
    %c0_140 = arith.constant 0 : index
    %c0_141 = arith.constant 0 : index
    %292 = vector.load %arg5[%c4_139, %c0_140, %c0_141] : memref<8x1x128xf32, #tpu.memory_space<vmem>>, vector<1x1x128xf32>
    %293 = vector.shape_cast %292 : vector<1x1x128xf32> to vector<1x128xf32>
    %294 = vector.broadcast %293 : vector<1x128xf32> to vector<8x128xf32>
    %295 = arith.addf %291, %294 : vector<8x128xf32>
    %296 = arith.negf %295 : vector<8x128xf32>
    %297 = math.exp %296 : vector<8x128xf32>
    %cst_142 = arith.constant 1.000000e+00 : f32
    %298 = vector.broadcast %cst_142 : f32 to vector<8x128xf32>
    %299 = arith.addf %298, %297 : vector<8x128xf32>
    %300 = arith.divf %298, %299 : vector<8x128xf32>
    %301 = vector.extract_strided_slice %300 {offsets = [0, 0], sizes = [8, 32], strides = [1, 1]} : vector<8x128xf32> to vector<8x32xf32>
    %302 = vector.extract_strided_slice %300 {offsets = [0, 32], sizes = [8, 32], strides = [1, 1]} : vector<8x128xf32> to vector<8x32xf32>
    %303 = vector.extract_strided_slice %295 {offsets = [0, 64], sizes = [8, 32], strides = [1, 1]} : vector<8x128xf32> to vector<8x32xf32>
    %304 = math.tanh %303 : vector<8x32xf32>
    %305 = vector.extract_strided_slice %300 {offsets = [0, 96], sizes = [8, 32], strides = [1, 1]} : vector<8x128xf32> to vector<8x32xf32>
    %306 = arith.mulf %302, %17 : vector<8x32xf32>
    %307 = arith.mulf %301, %304 : vector<8x32xf32>
    %308 = arith.addf %306, %307 : vector<8x32xf32>
    %309 = math.tanh %308 : vector<8x32xf32>
    %310 = arith.mulf %305, %309 : vector<8x32xf32>
    %c2_143 = arith.constant 2 : index
    %c0_144 = arith.constant 0 : index
    %c0_145 = arith.constant 0 : index
    %311 = vector.load %arg3[%c2_143, %c0_144, %c0_145] : memref<7x32x128xf32, #tpu.memory_space<vmem>>, vector<1x32x128xf32>
    %312 = vector.shape_cast %311 : vector<1x32x128xf32> to vector<32x128xf32>
    %cst_146 = arith.constant dense<0.000000e+00> : vector<8x128xf32>
    %313 = tpu.matmul %231, %312, %cst_146 {dimension_numbers = #tpu.dot_dimension_numbers<[1], [0], [0], [1], [0, 0, 1, 1], [], []>} : vector<8x32xf32>, vector<32x128xf32>, vector<8x128xf32> -> vector<8x128xf32>
    %c3_147 = arith.constant 3 : index
    %c0_148 = arith.constant 0 : index
    %c0_149 = arith.constant 0 : index
    %314 = vector.load %arg4[%c3_147, %c0_148, %c0_149] : memref<8x32x128xf32, #tpu.memory_space<vmem>>, vector<1x32x128xf32>
    %315 = vector.shape_cast %314 : vector<1x32x128xf32> to vector<32x128xf32>
    %cst_150 = arith.constant dense<0.000000e+00> : vector<8x128xf32>
    %316 = tpu.matmul %205, %315, %cst_150 {dimension_numbers = #tpu.dot_dimension_numbers<[1], [0], [0], [1], [0, 0, 1, 1], [], []>} : vector<8x32xf32>, vector<32x128xf32>, vector<8x128xf32> -> vector<8x128xf32>
    %317 = arith.addf %313, %316 : vector<8x128xf32>
    %c3_151 = arith.constant 3 : index
    %c0_152 = arith.constant 0 : index
    %c0_153 = arith.constant 0 : index
    %318 = vector.load %arg5[%c3_151, %c0_152, %c0_153] : memref<8x1x128xf32, #tpu.memory_space<vmem>>, vector<1x1x128xf32>
    %319 = vector.shape_cast %318 : vector<1x1x128xf32> to vector<1x128xf32>
    %320 = vector.broadcast %319 : vector<1x128xf32> to vector<8x128xf32>
    %321 = arith.addf %317, %320 : vector<8x128xf32>
    %322 = arith.negf %321 : vector<8x128xf32>
    %323 = math.exp %322 : vector<8x128xf32>
    %cst_154 = arith.constant 1.000000e+00 : f32
    %324 = vector.broadcast %cst_154 : f32 to vector<8x128xf32>
    %325 = arith.addf %324, %323 : vector<8x128xf32>
    %326 = arith.divf %324, %325 : vector<8x128xf32>
    %327 = vector.extract_strided_slice %326 {offsets = [0, 0], sizes = [8, 32], strides = [1, 1]} : vector<8x128xf32> to vector<8x32xf32>
    %328 = vector.extract_strided_slice %326 {offsets = [0, 32], sizes = [8, 32], strides = [1, 1]} : vector<8x128xf32> to vector<8x32xf32>
    %329 = vector.extract_strided_slice %321 {offsets = [0, 64], sizes = [8, 32], strides = [1, 1]} : vector<8x128xf32> to vector<8x32xf32>
    %330 = math.tanh %329 : vector<8x32xf32>
    %331 = vector.extract_strided_slice %326 {offsets = [0, 96], sizes = [8, 32], strides = [1, 1]} : vector<8x128xf32> to vector<8x32xf32>
    %332 = arith.mulf %328, %203 : vector<8x32xf32>
    %333 = arith.mulf %327, %330 : vector<8x32xf32>
    %334 = arith.addf %332, %333 : vector<8x32xf32>
    %335 = math.tanh %334 : vector<8x32xf32>
    %336 = arith.mulf %331, %335 : vector<8x32xf32>
    %c1_155 = arith.constant 1 : index
    %c0_156 = arith.constant 0 : index
    %c0_157 = arith.constant 0 : index
    %337 = vector.load %arg3[%c1_155, %c0_156, %c0_157] : memref<7x32x128xf32, #tpu.memory_space<vmem>>, vector<1x32x128xf32>
    %338 = vector.shape_cast %337 : vector<1x32x128xf32> to vector<32x128xf32>
    %cst_158 = arith.constant dense<0.000000e+00> : vector<8x128xf32>
    %339 = tpu.matmul %257, %338, %cst_158 {dimension_numbers = #tpu.dot_dimension_numbers<[1], [0], [0], [1], [0, 0, 1, 1], [], []>} : vector<8x32xf32>, vector<32x128xf32>, vector<8x128xf32> -> vector<8x128xf32>
    %c2_159 = arith.constant 2 : index
    %c0_160 = arith.constant 0 : index
    %c0_161 = arith.constant 0 : index
    %340 = vector.load %arg4[%c2_159, %c0_160, %c0_161] : memref<8x32x128xf32, #tpu.memory_space<vmem>>, vector<1x32x128xf32>
    %341 = vector.shape_cast %340 : vector<1x32x128xf32> to vector<32x128xf32>
    %cst_162 = arith.constant dense<0.000000e+00> : vector<8x128xf32>
    %342 = tpu.matmul %231, %341, %cst_162 {dimension_numbers = #tpu.dot_dimension_numbers<[1], [0], [0], [1], [0, 0, 1, 1], [], []>} : vector<8x32xf32>, vector<32x128xf32>, vector<8x128xf32> -> vector<8x128xf32>
    %343 = arith.addf %339, %342 : vector<8x128xf32>
    %c2_163 = arith.constant 2 : index
    %c0_164 = arith.constant 0 : index
    %c0_165 = arith.constant 0 : index
    %344 = vector.load %arg5[%c2_163, %c0_164, %c0_165] : memref<8x1x128xf32, #tpu.memory_space<vmem>>, vector<1x1x128xf32>
    %345 = vector.shape_cast %344 : vector<1x1x128xf32> to vector<1x128xf32>
    %346 = vector.broadcast %345 : vector<1x128xf32> to vector<8x128xf32>
    %347 = arith.addf %343, %346 : vector<8x128xf32>
    %348 = arith.negf %347 : vector<8x128xf32>
    %349 = math.exp %348 : vector<8x128xf32>
    %cst_166 = arith.constant 1.000000e+00 : f32
    %350 = vector.broadcast %cst_166 : f32 to vector<8x128xf32>
    %351 = arith.addf %350, %349 : vector<8x128xf32>
    %352 = arith.divf %350, %351 : vector<8x128xf32>
    %353 = vector.extract_strided_slice %352 {offsets = [0, 0], sizes = [8, 32], strides = [1, 1]} : vector<8x128xf32> to vector<8x32xf32>
    %354 = vector.extract_strided_slice %352 {offsets = [0, 32], sizes = [8, 32], strides = [1, 1]} : vector<8x128xf32> to vector<8x32xf32>
    %355 = vector.extract_strided_slice %347 {offsets = [0, 64], sizes = [8, 32], strides = [1, 1]} : vector<8x128xf32> to vector<8x32xf32>
    %356 = math.tanh %355 : vector<8x32xf32>
    %357 = vector.extract_strided_slice %352 {offsets = [0, 96], sizes = [8, 32], strides = [1, 1]} : vector<8x128xf32> to vector<8x32xf32>
    %358 = arith.mulf %354, %229 : vector<8x32xf32>
    %359 = arith.mulf %353, %356 : vector<8x32xf32>
    %360 = arith.addf %358, %359 : vector<8x32xf32>
    %361 = math.tanh %360 : vector<8x32xf32>
    %362 = arith.mulf %357, %361 : vector<8x32xf32>
    %c0_167 = arith.constant 0 : index
    %c0_168 = arith.constant 0 : index
    %c0_169 = arith.constant 0 : index
    %363 = vector.load %arg3[%c0_167, %c0_168, %c0_169] : memref<7x32x128xf32, #tpu.memory_space<vmem>>, vector<1x32x128xf32>
    %364 = vector.shape_cast %363 : vector<1x32x128xf32> to vector<32x128xf32>
    %cst_170 = arith.constant dense<0.000000e+00> : vector<8x128xf32>
    %365 = tpu.matmul %284, %364, %cst_170 {dimension_numbers = #tpu.dot_dimension_numbers<[1], [0], [0], [1], [0, 0, 1, 1], [], []>} : vector<8x32xf32>, vector<32x128xf32>, vector<8x128xf32> -> vector<8x128xf32>
    %c1_171 = arith.constant 1 : index
    %c0_172 = arith.constant 0 : index
    %c0_173 = arith.constant 0 : index
    %366 = vector.load %arg4[%c1_171, %c0_172, %c0_173] : memref<8x32x128xf32, #tpu.memory_space<vmem>>, vector<1x32x128xf32>
    %367 = vector.shape_cast %366 : vector<1x32x128xf32> to vector<32x128xf32>
    %cst_174 = arith.constant dense<0.000000e+00> : vector<8x128xf32>
    %368 = tpu.matmul %257, %367, %cst_174 {dimension_numbers = #tpu.dot_dimension_numbers<[1], [0], [0], [1], [0, 0, 1, 1], [], []>} : vector<8x32xf32>, vector<32x128xf32>, vector<8x128xf32> -> vector<8x128xf32>
    %369 = arith.addf %365, %368 : vector<8x128xf32>
    %c1_175 = arith.constant 1 : index
    %c0_176 = arith.constant 0 : index
    %c0_177 = arith.constant 0 : index
    %370 = vector.load %arg5[%c1_175, %c0_176, %c0_177] : memref<8x1x128xf32, #tpu.memory_space<vmem>>, vector<1x1x128xf32>
    %371 = vector.shape_cast %370 : vector<1x1x128xf32> to vector<1x128xf32>
    %372 = vector.broadcast %371 : vector<1x128xf32> to vector<8x128xf32>
    %373 = arith.addf %369, %372 : vector<8x128xf32>
    %374 = arith.negf %373 : vector<8x128xf32>
    %375 = math.exp %374 : vector<8x128xf32>
    %cst_178 = arith.constant 1.000000e+00 : f32
    %376 = vector.broadcast %cst_178 : f32 to vector<8x128xf32>
    %377 = arith.addf %376, %375 : vector<8x128xf32>
    %378 = arith.divf %376, %377 : vector<8x128xf32>
    %379 = vector.extract_strided_slice %378 {offsets = [0, 0], sizes = [8, 32], strides = [1, 1]} : vector<8x128xf32> to vector<8x32xf32>
    %380 = vector.extract_strided_slice %378 {offsets = [0, 32], sizes = [8, 32], strides = [1, 1]} : vector<8x128xf32> to vector<8x32xf32>
    %381 = vector.extract_strided_slice %373 {offsets = [0, 64], sizes = [8, 32], strides = [1, 1]} : vector<8x128xf32> to vector<8x32xf32>
    %382 = math.tanh %381 : vector<8x32xf32>
    %383 = vector.extract_strided_slice %378 {offsets = [0, 96], sizes = [8, 32], strides = [1, 1]} : vector<8x128xf32> to vector<8x32xf32>
    %384 = arith.mulf %380, %255 : vector<8x32xf32>
    %385 = arith.mulf %379, %382 : vector<8x32xf32>
    %386 = arith.addf %384, %385 : vector<8x32xf32>
    %387 = math.tanh %386 : vector<8x32xf32>
    %388 = arith.mulf %383, %387 : vector<8x32xf32>
    %c4_179 = arith.constant 4 : index
    %c0_180 = arith.constant 0 : index
    %c0_181 = arith.constant 0 : index
    %389 = vector.load %arg3[%c4_179, %c0_180, %c0_181] : memref<7x32x128xf32, #tpu.memory_space<vmem>>, vector<1x32x128xf32>
    %390 = vector.shape_cast %389 : vector<1x32x128xf32> to vector<32x128xf32>
    %cst_182 = arith.constant dense<0.000000e+00> : vector<8x128xf32>
    %391 = tpu.matmul %310, %390, %cst_182 {dimension_numbers = #tpu.dot_dimension_numbers<[1], [0], [0], [1], [0, 0, 1, 1], [], []>} : vector<8x32xf32>, vector<32x128xf32>, vector<8x128xf32> -> vector<8x128xf32>
    %c5 = arith.constant 5 : index
    %c0_183 = arith.constant 0 : index
    %c0_184 = arith.constant 0 : index
    %392 = vector.load %arg4[%c5, %c0_183, %c0_184] : memref<8x32x128xf32, #tpu.memory_space<vmem>>, vector<1x32x128xf32>
    %393 = vector.shape_cast %392 : vector<1x32x128xf32> to vector<32x128xf32>
    %cst_185 = arith.constant dense<0.000000e+00> : vector<8x128xf32>
    %394 = tpu.matmul %10, %393, %cst_185 {dimension_numbers = #tpu.dot_dimension_numbers<[1], [0], [0], [1], [0, 0, 1, 1], [], []>} : vector<8x32xf32>, vector<32x128xf32>, vector<8x128xf32> -> vector<8x128xf32>
    %395 = arith.addf %391, %394 : vector<8x128xf32>
    %c5_186 = arith.constant 5 : index
    %c0_187 = arith.constant 0 : index
    %c0_188 = arith.constant 0 : index
    %396 = vector.load %arg5[%c5_186, %c0_187, %c0_188] : memref<8x1x128xf32, #tpu.memory_space<vmem>>, vector<1x1x128xf32>
    %397 = vector.shape_cast %396 : vector<1x1x128xf32> to vector<1x128xf32>
    %398 = vector.broadcast %397 : vector<1x128xf32> to vector<8x128xf32>
    %399 = arith.addf %395, %398 : vector<8x128xf32>
    %400 = arith.negf %399 : vector<8x128xf32>
    %401 = math.exp %400 : vector<8x128xf32>
    %cst_189 = arith.constant 1.000000e+00 : f32
    %402 = vector.broadcast %cst_189 : f32 to vector<8x128xf32>
    %403 = arith.addf %402, %401 : vector<8x128xf32>
    %404 = arith.divf %402, %403 : vector<8x128xf32>
    %405 = vector.extract_strided_slice %404 {offsets = [0, 0], sizes = [8, 32], strides = [1, 1]} : vector<8x128xf32> to vector<8x32xf32>
    %406 = vector.extract_strided_slice %404 {offsets = [0, 32], sizes = [8, 32], strides = [1, 1]} : vector<8x128xf32> to vector<8x32xf32>
    %407 = vector.extract_strided_slice %399 {offsets = [0, 64], sizes = [8, 32], strides = [1, 1]} : vector<8x128xf32> to vector<8x32xf32>
    %408 = math.tanh %407 : vector<8x32xf32>
    %409 = vector.extract_strided_slice %404 {offsets = [0, 96], sizes = [8, 32], strides = [1, 1]} : vector<8x128xf32> to vector<8x32xf32>
    %410 = arith.mulf %406, %18 : vector<8x32xf32>
    %411 = arith.mulf %405, %408 : vector<8x32xf32>
    %412 = arith.addf %410, %411 : vector<8x32xf32>
    %413 = math.tanh %412 : vector<8x32xf32>
    %414 = arith.mulf %409, %413 : vector<8x32xf32>
    %c3_190 = arith.constant 3 : index
    %c0_191 = arith.constant 0 : index
    %c0_192 = arith.constant 0 : index
    %415 = vector.load %arg3[%c3_190, %c0_191, %c0_192] : memref<7x32x128xf32, #tpu.memory_space<vmem>>, vector<1x32x128xf32>
    %416 = vector.shape_cast %415 : vector<1x32x128xf32> to vector<32x128xf32>
    %cst_193 = arith.constant dense<0.000000e+00> : vector<8x128xf32>
    %417 = tpu.matmul %336, %416, %cst_193 {dimension_numbers = #tpu.dot_dimension_numbers<[1], [0], [0], [1], [0, 0, 1, 1], [], []>} : vector<8x32xf32>, vector<32x128xf32>, vector<8x128xf32> -> vector<8x128xf32>
    %c4_194 = arith.constant 4 : index
    %c0_195 = arith.constant 0 : index
    %c0_196 = arith.constant 0 : index
    %418 = vector.load %arg4[%c4_194, %c0_195, %c0_196] : memref<8x32x128xf32, #tpu.memory_space<vmem>>, vector<1x32x128xf32>
    %419 = vector.shape_cast %418 : vector<1x32x128xf32> to vector<32x128xf32>
    %cst_197 = arith.constant dense<0.000000e+00> : vector<8x128xf32>
    %420 = tpu.matmul %310, %419, %cst_197 {dimension_numbers = #tpu.dot_dimension_numbers<[1], [0], [0], [1], [0, 0, 1, 1], [], []>} : vector<8x32xf32>, vector<32x128xf32>, vector<8x128xf32> -> vector<8x128xf32>
    %421 = arith.addf %417, %420 : vector<8x128xf32>
    %c4_198 = arith.constant 4 : index
    %c0_199 = arith.constant 0 : index
    %c0_200 = arith.constant 0 : index
    %422 = vector.load %arg5[%c4_198, %c0_199, %c0_200] : memref<8x1x128xf32, #tpu.memory_space<vmem>>, vector<1x1x128xf32>
    %423 = vector.shape_cast %422 : vector<1x1x128xf32> to vector<1x128xf32>
    %424 = vector.broadcast %423 : vector<1x128xf32> to vector<8x128xf32>
    %425 = arith.addf %421, %424 : vector<8x128xf32>
    %426 = arith.negf %425 : vector<8x128xf32>
    %427 = math.exp %426 : vector<8x128xf32>
    %cst_201 = arith.constant 1.000000e+00 : f32
    %428 = vector.broadcast %cst_201 : f32 to vector<8x128xf32>
    %429 = arith.addf %428, %427 : vector<8x128xf32>
    %430 = arith.divf %428, %429 : vector<8x128xf32>
    %431 = vector.extract_strided_slice %430 {offsets = [0, 0], sizes = [8, 32], strides = [1, 1]} : vector<8x128xf32> to vector<8x32xf32>
    %432 = vector.extract_strided_slice %430 {offsets = [0, 32], sizes = [8, 32], strides = [1, 1]} : vector<8x128xf32> to vector<8x32xf32>
    %433 = vector.extract_strided_slice %425 {offsets = [0, 64], sizes = [8, 32], strides = [1, 1]} : vector<8x128xf32> to vector<8x32xf32>
    %434 = math.tanh %433 : vector<8x32xf32>
    %435 = vector.extract_strided_slice %430 {offsets = [0, 96], sizes = [8, 32], strides = [1, 1]} : vector<8x128xf32> to vector<8x32xf32>
    %436 = arith.mulf %432, %308 : vector<8x32xf32>
    %437 = arith.mulf %431, %434 : vector<8x32xf32>
    %438 = arith.addf %436, %437 : vector<8x32xf32>
    %439 = math.tanh %438 : vector<8x32xf32>
    %440 = arith.mulf %435, %439 : vector<8x32xf32>
    %c2_202 = arith.constant 2 : index
    %c0_203 = arith.constant 0 : index
    %c0_204 = arith.constant 0 : index
    %441 = vector.load %arg3[%c2_202, %c0_203, %c0_204] : memref<7x32x128xf32, #tpu.memory_space<vmem>>, vector<1x32x128xf32>
    %442 = vector.shape_cast %441 : vector<1x32x128xf32> to vector<32x128xf32>
    %cst_205 = arith.constant dense<0.000000e+00> : vector<8x128xf32>
    %443 = tpu.matmul %362, %442, %cst_205 {dimension_numbers = #tpu.dot_dimension_numbers<[1], [0], [0], [1], [0, 0, 1, 1], [], []>} : vector<8x32xf32>, vector<32x128xf32>, vector<8x128xf32> -> vector<8x128xf32>
    %c3_206 = arith.constant 3 : index
    %c0_207 = arith.constant 0 : index
    %c0_208 = arith.constant 0 : index
    %444 = vector.load %arg4[%c3_206, %c0_207, %c0_208] : memref<8x32x128xf32, #tpu.memory_space<vmem>>, vector<1x32x128xf32>
    %445 = vector.shape_cast %444 : vector<1x32x128xf32> to vector<32x128xf32>
    %cst_209 = arith.constant dense<0.000000e+00> : vector<8x128xf32>
    %446 = tpu.matmul %336, %445, %cst_209 {dimension_numbers = #tpu.dot_dimension_numbers<[1], [0], [0], [1], [0, 0, 1, 1], [], []>} : vector<8x32xf32>, vector<32x128xf32>, vector<8x128xf32> -> vector<8x128xf32>
    %447 = arith.addf %443, %446 : vector<8x128xf32>
    %c3_210 = arith.constant 3 : index
    %c0_211 = arith.constant 0 : index
    %c0_212 = arith.constant 0 : index
    %448 = vector.load %arg5[%c3_210, %c0_211, %c0_212] : memref<8x1x128xf32, #tpu.memory_space<vmem>>, vector<1x1x128xf32>
    %449 = vector.shape_cast %448 : vector<1x1x128xf32> to vector<1x128xf32>
    %450 = vector.broadcast %449 : vector<1x128xf32> to vector<8x128xf32>
    %451 = arith.addf %447, %450 : vector<8x128xf32>
    %452 = arith.negf %451 : vector<8x128xf32>
    %453 = math.exp %452 : vector<8x128xf32>
    %cst_213 = arith.constant 1.000000e+00 : f32
    %454 = vector.broadcast %cst_213 : f32 to vector<8x128xf32>
    %455 = arith.addf %454, %453 : vector<8x128xf32>
    %456 = arith.divf %454, %455 : vector<8x128xf32>
    %457 = vector.extract_strided_slice %456 {offsets = [0, 0], sizes = [8, 32], strides = [1, 1]} : vector<8x128xf32> to vector<8x32xf32>
    %458 = vector.extract_strided_slice %456 {offsets = [0, 32], sizes = [8, 32], strides = [1, 1]} : vector<8x128xf32> to vector<8x32xf32>
    %459 = vector.extract_strided_slice %451 {offsets = [0, 64], sizes = [8, 32], strides = [1, 1]} : vector<8x128xf32> to vector<8x32xf32>
    %460 = math.tanh %459 : vector<8x32xf32>
    %461 = vector.extract_strided_slice %456 {offsets = [0, 96], sizes = [8, 32], strides = [1, 1]} : vector<8x128xf32> to vector<8x32xf32>
    %462 = arith.mulf %458, %334 : vector<8x32xf32>
    %463 = arith.mulf %457, %460 : vector<8x32xf32>
    %464 = arith.addf %462, %463 : vector<8x32xf32>
    %465 = math.tanh %464 : vector<8x32xf32>
    %466 = arith.mulf %461, %465 : vector<8x32xf32>
    %c1_214 = arith.constant 1 : index
    %c0_215 = arith.constant 0 : index
    %c0_216 = arith.constant 0 : index
    %467 = vector.load %arg3[%c1_214, %c0_215, %c0_216] : memref<7x32x128xf32, #tpu.memory_space<vmem>>, vector<1x32x128xf32>
    %468 = vector.shape_cast %467 : vector<1x32x128xf32> to vector<32x128xf32>
    %cst_217 = arith.constant dense<0.000000e+00> : vector<8x128xf32>
    %469 = tpu.matmul %388, %468, %cst_217 {dimension_numbers = #tpu.dot_dimension_numbers<[1], [0], [0], [1], [0, 0, 1, 1], [], []>} : vector<8x32xf32>, vector<32x128xf32>, vector<8x128xf32> -> vector<8x128xf32>
    %c2_218 = arith.constant 2 : index
    %c0_219 = arith.constant 0 : index
    %c0_220 = arith.constant 0 : index
    %470 = vector.load %arg4[%c2_218, %c0_219, %c0_220] : memref<8x32x128xf32, #tpu.memory_space<vmem>>, vector<1x32x128xf32>
    %471 = vector.shape_cast %470 : vector<1x32x128xf32> to vector<32x128xf32>
    %cst_221 = arith.constant dense<0.000000e+00> : vector<8x128xf32>
    %472 = tpu.matmul %362, %471, %cst_221 {dimension_numbers = #tpu.dot_dimension_numbers<[1], [0], [0], [1], [0, 0, 1, 1], [], []>} : vector<8x32xf32>, vector<32x128xf32>, vector<8x128xf32> -> vector<8x128xf32>
    %473 = arith.addf %469, %472 : vector<8x128xf32>
    %c2_222 = arith.constant 2 : index
    %c0_223 = arith.constant 0 : index
    %c0_224 = arith.constant 0 : index
    %474 = vector.load %arg5[%c2_222, %c0_223, %c0_224] : memref<8x1x128xf32, #tpu.memory_space<vmem>>, vector<1x1x128xf32>
    %475 = vector.shape_cast %474 : vector<1x1x128xf32> to vector<1x128xf32>
    %476 = vector.broadcast %475 : vector<1x128xf32> to vector<8x128xf32>
    %477 = arith.addf %473, %476 : vector<8x128xf32>
    %478 = arith.negf %477 : vector<8x128xf32>
    %479 = math.exp %478 : vector<8x128xf32>
    %cst_225 = arith.constant 1.000000e+00 : f32
    %480 = vector.broadcast %cst_225 : f32 to vector<8x128xf32>
    %481 = arith.addf %480, %479 : vector<8x128xf32>
    %482 = arith.divf %480, %481 : vector<8x128xf32>
    %483 = vector.extract_strided_slice %482 {offsets = [0, 0], sizes = [8, 32], strides = [1, 1]} : vector<8x128xf32> to vector<8x32xf32>
    %484 = vector.extract_strided_slice %482 {offsets = [0, 32], sizes = [8, 32], strides = [1, 1]} : vector<8x128xf32> to vector<8x32xf32>
    %485 = vector.extract_strided_slice %477 {offsets = [0, 64], sizes = [8, 32], strides = [1, 1]} : vector<8x128xf32> to vector<8x32xf32>
    %486 = math.tanh %485 : vector<8x32xf32>
    %487 = vector.extract_strided_slice %482 {offsets = [0, 96], sizes = [8, 32], strides = [1, 1]} : vector<8x128xf32> to vector<8x32xf32>
    %488 = arith.mulf %484, %360 : vector<8x32xf32>
    %489 = arith.mulf %483, %486 : vector<8x32xf32>
    %490 = arith.addf %488, %489 : vector<8x32xf32>
    %491 = math.tanh %490 : vector<8x32xf32>
    %492 = arith.mulf %487, %491 : vector<8x32xf32>
    %c5_226 = arith.constant 5 : index
    %c0_227 = arith.constant 0 : index
    %c0_228 = arith.constant 0 : index
    %493 = vector.load %arg3[%c5_226, %c0_227, %c0_228] : memref<7x32x128xf32, #tpu.memory_space<vmem>>, vector<1x32x128xf32>
    %494 = vector.shape_cast %493 : vector<1x32x128xf32> to vector<32x128xf32>
    %cst_229 = arith.constant dense<0.000000e+00> : vector<8x128xf32>
    %495 = tpu.matmul %414, %494, %cst_229 {dimension_numbers = #tpu.dot_dimension_numbers<[1], [0], [0], [1], [0, 0, 1, 1], [], []>} : vector<8x32xf32>, vector<32x128xf32>, vector<8x128xf32> -> vector<8x128xf32>
    %c6 = arith.constant 6 : index
    %c0_230 = arith.constant 0 : index
    %c0_231 = arith.constant 0 : index
    %496 = vector.load %arg4[%c6, %c0_230, %c0_231] : memref<8x32x128xf32, #tpu.memory_space<vmem>>, vector<1x32x128xf32>
    %497 = vector.shape_cast %496 : vector<1x32x128xf32> to vector<32x128xf32>
    %cst_232 = arith.constant dense<0.000000e+00> : vector<8x128xf32>
    %498 = tpu.matmul %11, %497, %cst_232 {dimension_numbers = #tpu.dot_dimension_numbers<[1], [0], [0], [1], [0, 0, 1, 1], [], []>} : vector<8x32xf32>, vector<32x128xf32>, vector<8x128xf32> -> vector<8x128xf32>
    %499 = arith.addf %495, %498 : vector<8x128xf32>
    %c6_233 = arith.constant 6 : index
    %c0_234 = arith.constant 0 : index
    %c0_235 = arith.constant 0 : index
    %500 = vector.load %arg5[%c6_233, %c0_234, %c0_235] : memref<8x1x128xf32, #tpu.memory_space<vmem>>, vector<1x1x128xf32>
    %501 = vector.shape_cast %500 : vector<1x1x128xf32> to vector<1x128xf32>
    %502 = vector.broadcast %501 : vector<1x128xf32> to vector<8x128xf32>
    %503 = arith.addf %499, %502 : vector<8x128xf32>
    %504 = arith.negf %503 : vector<8x128xf32>
    %505 = math.exp %504 : vector<8x128xf32>
    %cst_236 = arith.constant 1.000000e+00 : f32
    %506 = vector.broadcast %cst_236 : f32 to vector<8x128xf32>
    %507 = arith.addf %506, %505 : vector<8x128xf32>
    %508 = arith.divf %506, %507 : vector<8x128xf32>
    %509 = vector.extract_strided_slice %508 {offsets = [0, 0], sizes = [8, 32], strides = [1, 1]} : vector<8x128xf32> to vector<8x32xf32>
    %510 = vector.extract_strided_slice %508 {offsets = [0, 32], sizes = [8, 32], strides = [1, 1]} : vector<8x128xf32> to vector<8x32xf32>
    %511 = vector.extract_strided_slice %503 {offsets = [0, 64], sizes = [8, 32], strides = [1, 1]} : vector<8x128xf32> to vector<8x32xf32>
    %512 = math.tanh %511 : vector<8x32xf32>
    %513 = vector.extract_strided_slice %508 {offsets = [0, 96], sizes = [8, 32], strides = [1, 1]} : vector<8x128xf32> to vector<8x32xf32>
    %514 = arith.mulf %510, %19 : vector<8x32xf32>
    %515 = arith.mulf %509, %512 : vector<8x32xf32>
    %516 = arith.addf %514, %515 : vector<8x32xf32>
    %517 = math.tanh %516 : vector<8x32xf32>
    %518 = arith.mulf %513, %517 : vector<8x32xf32>
    %c4_237 = arith.constant 4 : index
    %c0_238 = arith.constant 0 : index
    %c0_239 = arith.constant 0 : index
    %519 = vector.load %arg3[%c4_237, %c0_238, %c0_239] : memref<7x32x128xf32, #tpu.memory_space<vmem>>, vector<1x32x128xf32>
    %520 = vector.shape_cast %519 : vector<1x32x128xf32> to vector<32x128xf32>
    %cst_240 = arith.constant dense<0.000000e+00> : vector<8x128xf32>
    %521 = tpu.matmul %440, %520, %cst_240 {dimension_numbers = #tpu.dot_dimension_numbers<[1], [0], [0], [1], [0, 0, 1, 1], [], []>} : vector<8x32xf32>, vector<32x128xf32>, vector<8x128xf32> -> vector<8x128xf32>
    %c5_241 = arith.constant 5 : index
    %c0_242 = arith.constant 0 : index
    %c0_243 = arith.constant 0 : index
    %522 = vector.load %arg4[%c5_241, %c0_242, %c0_243] : memref<8x32x128xf32, #tpu.memory_space<vmem>>, vector<1x32x128xf32>
    %523 = vector.shape_cast %522 : vector<1x32x128xf32> to vector<32x128xf32>
    %cst_244 = arith.constant dense<0.000000e+00> : vector<8x128xf32>
    %524 = tpu.matmul %414, %523, %cst_244 {dimension_numbers = #tpu.dot_dimension_numbers<[1], [0], [0], [1], [0, 0, 1, 1], [], []>} : vector<8x32xf32>, vector<32x128xf32>, vector<8x128xf32> -> vector<8x128xf32>
    %525 = arith.addf %521, %524 : vector<8x128xf32>
    %c5_245 = arith.constant 5 : index
    %c0_246 = arith.constant 0 : index
    %c0_247 = arith.constant 0 : index
    %526 = vector.load %arg5[%c5_245, %c0_246, %c0_247] : memref<8x1x128xf32, #tpu.memory_space<vmem>>, vector<1x1x128xf32>
    %527 = vector.shape_cast %526 : vector<1x1x128xf32> to vector<1x128xf32>
    %528 = vector.broadcast %527 : vector<1x128xf32> to vector<8x128xf32>
    %529 = arith.addf %525, %528 : vector<8x128xf32>
    %530 = arith.negf %529 : vector<8x128xf32>
    %531 = math.exp %530 : vector<8x128xf32>
    %cst_248 = arith.constant 1.000000e+00 : f32
    %532 = vector.broadcast %cst_248 : f32 to vector<8x128xf32>
    %533 = arith.addf %532, %531 : vector<8x128xf32>
    %534 = arith.divf %532, %533 : vector<8x128xf32>
    %535 = vector.extract_strided_slice %534 {offsets = [0, 0], sizes = [8, 32], strides = [1, 1]} : vector<8x128xf32> to vector<8x32xf32>
    %536 = vector.extract_strided_slice %534 {offsets = [0, 32], sizes = [8, 32], strides = [1, 1]} : vector<8x128xf32> to vector<8x32xf32>
    %537 = vector.extract_strided_slice %529 {offsets = [0, 64], sizes = [8, 32], strides = [1, 1]} : vector<8x128xf32> to vector<8x32xf32>
    %538 = math.tanh %537 : vector<8x32xf32>
    %539 = vector.extract_strided_slice %534 {offsets = [0, 96], sizes = [8, 32], strides = [1, 1]} : vector<8x128xf32> to vector<8x32xf32>
    %540 = arith.mulf %536, %412 : vector<8x32xf32>
    %541 = arith.mulf %535, %538 : vector<8x32xf32>
    %542 = arith.addf %540, %541 : vector<8x32xf32>
    %543 = math.tanh %542 : vector<8x32xf32>
    %544 = arith.mulf %539, %543 : vector<8x32xf32>
    %c3_249 = arith.constant 3 : index
    %c0_250 = arith.constant 0 : index
    %c0_251 = arith.constant 0 : index
    %545 = vector.load %arg3[%c3_249, %c0_250, %c0_251] : memref<7x32x128xf32, #tpu.memory_space<vmem>>, vector<1x32x128xf32>
    %546 = vector.shape_cast %545 : vector<1x32x128xf32> to vector<32x128xf32>
    %cst_252 = arith.constant dense<0.000000e+00> : vector<8x128xf32>
    %547 = tpu.matmul %466, %546, %cst_252 {dimension_numbers = #tpu.dot_dimension_numbers<[1], [0], [0], [1], [0, 0, 1, 1], [], []>} : vector<8x32xf32>, vector<32x128xf32>, vector<8x128xf32> -> vector<8x128xf32>
    %c4_253 = arith.constant 4 : index
    %c0_254 = arith.constant 0 : index
    %c0_255 = arith.constant 0 : index
    %548 = vector.load %arg4[%c4_253, %c0_254, %c0_255] : memref<8x32x128xf32, #tpu.memory_space<vmem>>, vector<1x32x128xf32>
    %549 = vector.shape_cast %548 : vector<1x32x128xf32> to vector<32x128xf32>
    %cst_256 = arith.constant dense<0.000000e+00> : vector<8x128xf32>
    %550 = tpu.matmul %440, %549, %cst_256 {dimension_numbers = #tpu.dot_dimension_numbers<[1], [0], [0], [1], [0, 0, 1, 1], [], []>} : vector<8x32xf32>, vector<32x128xf32>, vector<8x128xf32> -> vector<8x128xf32>
    %551 = arith.addf %547, %550 : vector<8x128xf32>
    %c4_257 = arith.constant 4 : index
    %c0_258 = arith.constant 0 : index
    %c0_259 = arith.constant 0 : index
    %552 = vector.load %arg5[%c4_257, %c0_258, %c0_259] : memref<8x1x128xf32, #tpu.memory_space<vmem>>, vector<1x1x128xf32>
    %553 = vector.shape_cast %552 : vector<1x1x128xf32> to vector<1x128xf32>
    %554 = vector.broadcast %553 : vector<1x128xf32> to vector<8x128xf32>
    %555 = arith.addf %551, %554 : vector<8x128xf32>
    %556 = arith.negf %555 : vector<8x128xf32>
    %557 = math.exp %556 : vector<8x128xf32>
    %cst_260 = arith.constant 1.000000e+00 : f32
    %558 = vector.broadcast %cst_260 : f32 to vector<8x128xf32>
    %559 = arith.addf %558, %557 : vector<8x128xf32>
    %560 = arith.divf %558, %559 : vector<8x128xf32>
    %561 = vector.extract_strided_slice %560 {offsets = [0, 0], sizes = [8, 32], strides = [1, 1]} : vector<8x128xf32> to vector<8x32xf32>
    %562 = vector.extract_strided_slice %560 {offsets = [0, 32], sizes = [8, 32], strides = [1, 1]} : vector<8x128xf32> to vector<8x32xf32>
    %563 = vector.extract_strided_slice %555 {offsets = [0, 64], sizes = [8, 32], strides = [1, 1]} : vector<8x128xf32> to vector<8x32xf32>
    %564 = math.tanh %563 : vector<8x32xf32>
    %565 = vector.extract_strided_slice %560 {offsets = [0, 96], sizes = [8, 32], strides = [1, 1]} : vector<8x128xf32> to vector<8x32xf32>
    %566 = arith.mulf %562, %438 : vector<8x32xf32>
    %567 = arith.mulf %561, %564 : vector<8x32xf32>
    %568 = arith.addf %566, %567 : vector<8x32xf32>
    %569 = math.tanh %568 : vector<8x32xf32>
    %570 = arith.mulf %565, %569 : vector<8x32xf32>
    %c2_261 = arith.constant 2 : index
    %c0_262 = arith.constant 0 : index
    %c0_263 = arith.constant 0 : index
    %571 = vector.load %arg3[%c2_261, %c0_262, %c0_263] : memref<7x32x128xf32, #tpu.memory_space<vmem>>, vector<1x32x128xf32>
    %572 = vector.shape_cast %571 : vector<1x32x128xf32> to vector<32x128xf32>
    %cst_264 = arith.constant dense<0.000000e+00> : vector<8x128xf32>
    %573 = tpu.matmul %492, %572, %cst_264 {dimension_numbers = #tpu.dot_dimension_numbers<[1], [0], [0], [1], [0, 0, 1, 1], [], []>} : vector<8x32xf32>, vector<32x128xf32>, vector<8x128xf32> -> vector<8x128xf32>
    %c3_265 = arith.constant 3 : index
    %c0_266 = arith.constant 0 : index
    %c0_267 = arith.constant 0 : index
    %574 = vector.load %arg4[%c3_265, %c0_266, %c0_267] : memref<8x32x128xf32, #tpu.memory_space<vmem>>, vector<1x32x128xf32>
    %575 = vector.shape_cast %574 : vector<1x32x128xf32> to vector<32x128xf32>
    %cst_268 = arith.constant dense<0.000000e+00> : vector<8x128xf32>
    %576 = tpu.matmul %466, %575, %cst_268 {dimension_numbers = #tpu.dot_dimension_numbers<[1], [0], [0], [1], [0, 0, 1, 1], [], []>} : vector<8x32xf32>, vector<32x128xf32>, vector<8x128xf32> -> vector<8x128xf32>
    %577 = arith.addf %573, %576 : vector<8x128xf32>
    %c3_269 = arith.constant 3 : index
    %c0_270 = arith.constant 0 : index
    %c0_271 = arith.constant 0 : index
    %578 = vector.load %arg5[%c3_269, %c0_270, %c0_271] : memref<8x1x128xf32, #tpu.memory_space<vmem>>, vector<1x1x128xf32>
    %579 = vector.shape_cast %578 : vector<1x1x128xf32> to vector<1x128xf32>
    %580 = vector.broadcast %579 : vector<1x128xf32> to vector<8x128xf32>
    %581 = arith.addf %577, %580 : vector<8x128xf32>
    %582 = arith.negf %581 : vector<8x128xf32>
    %583 = math.exp %582 : vector<8x128xf32>
    %cst_272 = arith.constant 1.000000e+00 : f32
    %584 = vector.broadcast %cst_272 : f32 to vector<8x128xf32>
    %585 = arith.addf %584, %583 : vector<8x128xf32>
    %586 = arith.divf %584, %585 : vector<8x128xf32>
    %587 = vector.extract_strided_slice %586 {offsets = [0, 0], sizes = [8, 32], strides = [1, 1]} : vector<8x128xf32> to vector<8x32xf32>
    %588 = vector.extract_strided_slice %586 {offsets = [0, 32], sizes = [8, 32], strides = [1, 1]} : vector<8x128xf32> to vector<8x32xf32>
    %589 = vector.extract_strided_slice %581 {offsets = [0, 64], sizes = [8, 32], strides = [1, 1]} : vector<8x128xf32> to vector<8x32xf32>
    %590 = math.tanh %589 : vector<8x32xf32>
    %591 = vector.extract_strided_slice %586 {offsets = [0, 96], sizes = [8, 32], strides = [1, 1]} : vector<8x128xf32> to vector<8x32xf32>
    %592 = arith.mulf %588, %464 : vector<8x32xf32>
    %593 = arith.mulf %587, %590 : vector<8x32xf32>
    %594 = arith.addf %592, %593 : vector<8x32xf32>
    %595 = math.tanh %594 : vector<8x32xf32>
    %596 = arith.mulf %591, %595 : vector<8x32xf32>
    %c6_273 = arith.constant 6 : index
    %c0_274 = arith.constant 0 : index
    %c0_275 = arith.constant 0 : index
    %597 = vector.load %arg3[%c6_273, %c0_274, %c0_275] : memref<7x32x128xf32, #tpu.memory_space<vmem>>, vector<1x32x128xf32>
    %598 = vector.shape_cast %597 : vector<1x32x128xf32> to vector<32x128xf32>
    %cst_276 = arith.constant dense<0.000000e+00> : vector<8x128xf32>
    %599 = tpu.matmul %518, %598, %cst_276 {dimension_numbers = #tpu.dot_dimension_numbers<[1], [0], [0], [1], [0, 0, 1, 1], [], []>} : vector<8x32xf32>, vector<32x128xf32>, vector<8x128xf32> -> vector<8x128xf32>
    %c7 = arith.constant 7 : index
    %c0_277 = arith.constant 0 : index
    %c0_278 = arith.constant 0 : index
    %600 = vector.load %arg4[%c7, %c0_277, %c0_278] : memref<8x32x128xf32, #tpu.memory_space<vmem>>, vector<1x32x128xf32>
    %601 = vector.shape_cast %600 : vector<1x32x128xf32> to vector<32x128xf32>
    %cst_279 = arith.constant dense<0.000000e+00> : vector<8x128xf32>
    %602 = tpu.matmul %12, %601, %cst_279 {dimension_numbers = #tpu.dot_dimension_numbers<[1], [0], [0], [1], [0, 0, 1, 1], [], []>} : vector<8x32xf32>, vector<32x128xf32>, vector<8x128xf32> -> vector<8x128xf32>
    %603 = arith.addf %599, %602 : vector<8x128xf32>
    %c7_280 = arith.constant 7 : index
    %c0_281 = arith.constant 0 : index
    %c0_282 = arith.constant 0 : index
    %604 = vector.load %arg5[%c7_280, %c0_281, %c0_282] : memref<8x1x128xf32, #tpu.memory_space<vmem>>, vector<1x1x128xf32>
    %605 = vector.shape_cast %604 : vector<1x1x128xf32> to vector<1x128xf32>
    %606 = vector.broadcast %605 : vector<1x128xf32> to vector<8x128xf32>
    %607 = arith.addf %603, %606 : vector<8x128xf32>
    %608 = arith.negf %607 : vector<8x128xf32>
    %609 = math.exp %608 : vector<8x128xf32>
    %cst_283 = arith.constant 1.000000e+00 : f32
    %610 = vector.broadcast %cst_283 : f32 to vector<8x128xf32>
    %611 = arith.addf %610, %609 : vector<8x128xf32>
    %612 = arith.divf %610, %611 : vector<8x128xf32>
    %613 = vector.extract_strided_slice %612 {offsets = [0, 0], sizes = [8, 32], strides = [1, 1]} : vector<8x128xf32> to vector<8x32xf32>
    %614 = vector.extract_strided_slice %612 {offsets = [0, 32], sizes = [8, 32], strides = [1, 1]} : vector<8x128xf32> to vector<8x32xf32>
    %615 = vector.extract_strided_slice %607 {offsets = [0, 64], sizes = [8, 32], strides = [1, 1]} : vector<8x128xf32> to vector<8x32xf32>
    %616 = math.tanh %615 : vector<8x32xf32>
    %617 = vector.extract_strided_slice %612 {offsets = [0, 96], sizes = [8, 32], strides = [1, 1]} : vector<8x128xf32> to vector<8x32xf32>
    %618 = arith.mulf %614, %20 : vector<8x32xf32>
    %619 = arith.mulf %613, %616 : vector<8x32xf32>
    %620 = arith.addf %618, %619 : vector<8x32xf32>
    %621 = math.tanh %620 : vector<8x32xf32>
    %622 = arith.mulf %617, %621 : vector<8x32xf32>
    %c5_284 = arith.constant 5 : index
    %c0_285 = arith.constant 0 : index
    %c0_286 = arith.constant 0 : index
    %623 = vector.load %arg3[%c5_284, %c0_285, %c0_286] : memref<7x32x128xf32, #tpu.memory_space<vmem>>, vector<1x32x128xf32>
    %624 = vector.shape_cast %623 : vector<1x32x128xf32> to vector<32x128xf32>
    %cst_287 = arith.constant dense<0.000000e+00> : vector<8x128xf32>
    %625 = tpu.matmul %544, %624, %cst_287 {dimension_numbers = #tpu.dot_dimension_numbers<[1], [0], [0], [1], [0, 0, 1, 1], [], []>} : vector<8x32xf32>, vector<32x128xf32>, vector<8x128xf32> -> vector<8x128xf32>
    %c6_288 = arith.constant 6 : index
    %c0_289 = arith.constant 0 : index
    %c0_290 = arith.constant 0 : index
    %626 = vector.load %arg4[%c6_288, %c0_289, %c0_290] : memref<8x32x128xf32, #tpu.memory_space<vmem>>, vector<1x32x128xf32>
    %627 = vector.shape_cast %626 : vector<1x32x128xf32> to vector<32x128xf32>
    %cst_291 = arith.constant dense<0.000000e+00> : vector<8x128xf32>
    %628 = tpu.matmul %518, %627, %cst_291 {dimension_numbers = #tpu.dot_dimension_numbers<[1], [0], [0], [1], [0, 0, 1, 1], [], []>} : vector<8x32xf32>, vector<32x128xf32>, vector<8x128xf32> -> vector<8x128xf32>
    %629 = arith.addf %625, %628 : vector<8x128xf32>
    %c6_292 = arith.constant 6 : index
    %c0_293 = arith.constant 0 : index
    %c0_294 = arith.constant 0 : index
    %630 = vector.load %arg5[%c6_292, %c0_293, %c0_294] : memref<8x1x128xf32, #tpu.memory_space<vmem>>, vector<1x1x128xf32>
    %631 = vector.shape_cast %630 : vector<1x1x128xf32> to vector<1x128xf32>
    %632 = vector.broadcast %631 : vector<1x128xf32> to vector<8x128xf32>
    %633 = arith.addf %629, %632 : vector<8x128xf32>
    %634 = arith.negf %633 : vector<8x128xf32>
    %635 = math.exp %634 : vector<8x128xf32>
    %cst_295 = arith.constant 1.000000e+00 : f32
    %636 = vector.broadcast %cst_295 : f32 to vector<8x128xf32>
    %637 = arith.addf %636, %635 : vector<8x128xf32>
    %638 = arith.divf %636, %637 : vector<8x128xf32>
    %639 = vector.extract_strided_slice %638 {offsets = [0, 0], sizes = [8, 32], strides = [1, 1]} : vector<8x128xf32> to vector<8x32xf32>
    %640 = vector.extract_strided_slice %638 {offsets = [0, 32], sizes = [8, 32], strides = [1, 1]} : vector<8x128xf32> to vector<8x32xf32>
    %641 = vector.extract_strided_slice %633 {offsets = [0, 64], sizes = [8, 32], strides = [1, 1]} : vector<8x128xf32> to vector<8x32xf32>
    %642 = math.tanh %641 : vector<8x32xf32>
    %643 = vector.extract_strided_slice %638 {offsets = [0, 96], sizes = [8, 32], strides = [1, 1]} : vector<8x128xf32> to vector<8x32xf32>
    %644 = arith.mulf %640, %516 : vector<8x32xf32>
    %645 = arith.mulf %639, %642 : vector<8x32xf32>
    %646 = arith.addf %644, %645 : vector<8x32xf32>
    %647 = math.tanh %646 : vector<8x32xf32>
    %648 = arith.mulf %643, %647 : vector<8x32xf32>
    %c4_296 = arith.constant 4 : index
    %c0_297 = arith.constant 0 : index
    %c0_298 = arith.constant 0 : index
    %649 = vector.load %arg3[%c4_296, %c0_297, %c0_298] : memref<7x32x128xf32, #tpu.memory_space<vmem>>, vector<1x32x128xf32>
    %650 = vector.shape_cast %649 : vector<1x32x128xf32> to vector<32x128xf32>
    %cst_299 = arith.constant dense<0.000000e+00> : vector<8x128xf32>
    %651 = tpu.matmul %570, %650, %cst_299 {dimension_numbers = #tpu.dot_dimension_numbers<[1], [0], [0], [1], [0, 0, 1, 1], [], []>} : vector<8x32xf32>, vector<32x128xf32>, vector<8x128xf32> -> vector<8x128xf32>
    %c5_300 = arith.constant 5 : index
    %c0_301 = arith.constant 0 : index
    %c0_302 = arith.constant 0 : index
    %652 = vector.load %arg4[%c5_300, %c0_301, %c0_302] : memref<8x32x128xf32, #tpu.memory_space<vmem>>, vector<1x32x128xf32>
    %653 = vector.shape_cast %652 : vector<1x32x128xf32> to vector<32x128xf32>
    %cst_303 = arith.constant dense<0.000000e+00> : vector<8x128xf32>
    %654 = tpu.matmul %544, %653, %cst_303 {dimension_numbers = #tpu.dot_dimension_numbers<[1], [0], [0], [1], [0, 0, 1, 1], [], []>} : vector<8x32xf32>, vector<32x128xf32>, vector<8x128xf32> -> vector<8x128xf32>
    %655 = arith.addf %651, %654 : vector<8x128xf32>
    %c5_304 = arith.constant 5 : index
    %c0_305 = arith.constant 0 : index
    %c0_306 = arith.constant 0 : index
    %656 = vector.load %arg5[%c5_304, %c0_305, %c0_306] : memref<8x1x128xf32, #tpu.memory_space<vmem>>, vector<1x1x128xf32>
    %657 = vector.shape_cast %656 : vector<1x1x128xf32> to vector<1x128xf32>
    %658 = vector.broadcast %657 : vector<1x128xf32> to vector<8x128xf32>
    %659 = arith.addf %655, %658 : vector<8x128xf32>
    %660 = arith.negf %659 : vector<8x128xf32>
    %661 = math.exp %660 : vector<8x128xf32>
    %cst_307 = arith.constant 1.000000e+00 : f32
    %662 = vector.broadcast %cst_307 : f32 to vector<8x128xf32>
    %663 = arith.addf %662, %661 : vector<8x128xf32>
    %664 = arith.divf %662, %663 : vector<8x128xf32>
    %665 = vector.extract_strided_slice %664 {offsets = [0, 0], sizes = [8, 32], strides = [1, 1]} : vector<8x128xf32> to vector<8x32xf32>
    %666 = vector.extract_strided_slice %664 {offsets = [0, 32], sizes = [8, 32], strides = [1, 1]} : vector<8x128xf32> to vector<8x32xf32>
    %667 = vector.extract_strided_slice %659 {offsets = [0, 64], sizes = [8, 32], strides = [1, 1]} : vector<8x128xf32> to vector<8x32xf32>
    %668 = math.tanh %667 : vector<8x32xf32>
    %669 = vector.extract_strided_slice %664 {offsets = [0, 96], sizes = [8, 32], strides = [1, 1]} : vector<8x128xf32> to vector<8x32xf32>
    %670 = arith.mulf %666, %542 : vector<8x32xf32>
    %671 = arith.mulf %665, %668 : vector<8x32xf32>
    %672 = arith.addf %670, %671 : vector<8x32xf32>
    %673 = math.tanh %672 : vector<8x32xf32>
    %674 = arith.mulf %669, %673 : vector<8x32xf32>
    %c3_308 = arith.constant 3 : index
    %c0_309 = arith.constant 0 : index
    %c0_310 = arith.constant 0 : index
    %675 = vector.load %arg3[%c3_308, %c0_309, %c0_310] : memref<7x32x128xf32, #tpu.memory_space<vmem>>, vector<1x32x128xf32>
    %676 = vector.shape_cast %675 : vector<1x32x128xf32> to vector<32x128xf32>
    %cst_311 = arith.constant dense<0.000000e+00> : vector<8x128xf32>
    %677 = tpu.matmul %596, %676, %cst_311 {dimension_numbers = #tpu.dot_dimension_numbers<[1], [0], [0], [1], [0, 0, 1, 1], [], []>} : vector<8x32xf32>, vector<32x128xf32>, vector<8x128xf32> -> vector<8x128xf32>
    %c4_312 = arith.constant 4 : index
    %c0_313 = arith.constant 0 : index
    %c0_314 = arith.constant 0 : index
    %678 = vector.load %arg4[%c4_312, %c0_313, %c0_314] : memref<8x32x128xf32, #tpu.memory_space<vmem>>, vector<1x32x128xf32>
    %679 = vector.shape_cast %678 : vector<1x32x128xf32> to vector<32x128xf32>
    %cst_315 = arith.constant dense<0.000000e+00> : vector<8x128xf32>
    %680 = tpu.matmul %570, %679, %cst_315 {dimension_numbers = #tpu.dot_dimension_numbers<[1], [0], [0], [1], [0, 0, 1, 1], [], []>} : vector<8x32xf32>, vector<32x128xf32>, vector<8x128xf32> -> vector<8x128xf32>
    %681 = arith.addf %677, %680 : vector<8x128xf32>
    %c4_316 = arith.constant 4 : index
    %c0_317 = arith.constant 0 : index
    %c0_318 = arith.constant 0 : index
    %682 = vector.load %arg5[%c4_316, %c0_317, %c0_318] : memref<8x1x128xf32, #tpu.memory_space<vmem>>, vector<1x1x128xf32>
    %683 = vector.shape_cast %682 : vector<1x1x128xf32> to vector<1x128xf32>
    %684 = vector.broadcast %683 : vector<1x128xf32> to vector<8x128xf32>
    %685 = arith.addf %681, %684 : vector<8x128xf32>
    %686 = arith.negf %685 : vector<8x128xf32>
    %687 = math.exp %686 : vector<8x128xf32>
    %cst_319 = arith.constant 1.000000e+00 : f32
    %688 = vector.broadcast %cst_319 : f32 to vector<8x128xf32>
    %689 = arith.addf %688, %687 : vector<8x128xf32>
    %690 = arith.divf %688, %689 : vector<8x128xf32>
    %691 = vector.extract_strided_slice %690 {offsets = [0, 0], sizes = [8, 32], strides = [1, 1]} : vector<8x128xf32> to vector<8x32xf32>
    %692 = vector.extract_strided_slice %690 {offsets = [0, 32], sizes = [8, 32], strides = [1, 1]} : vector<8x128xf32> to vector<8x32xf32>
    %693 = vector.extract_strided_slice %685 {offsets = [0, 64], sizes = [8, 32], strides = [1, 1]} : vector<8x128xf32> to vector<8x32xf32>
    %694 = math.tanh %693 : vector<8x32xf32>
    %695 = vector.extract_strided_slice %690 {offsets = [0, 96], sizes = [8, 32], strides = [1, 1]} : vector<8x128xf32> to vector<8x32xf32>
    %696 = arith.mulf %692, %568 : vector<8x32xf32>
    %697 = arith.mulf %691, %694 : vector<8x32xf32>
    %698 = arith.addf %696, %697 : vector<8x32xf32>
    %699 = math.tanh %698 : vector<8x32xf32>
    %700 = arith.mulf %695, %699 : vector<8x32xf32>
    %c6_320 = arith.constant 6 : index
    %c0_321 = arith.constant 0 : index
    %c0_322 = arith.constant 0 : index
    %701 = vector.load %arg3[%c6_320, %c0_321, %c0_322] : memref<7x32x128xf32, #tpu.memory_space<vmem>>, vector<1x32x128xf32>
    %702 = vector.shape_cast %701 : vector<1x32x128xf32> to vector<32x128xf32>
    %cst_323 = arith.constant dense<0.000000e+00> : vector<8x128xf32>
    %703 = tpu.matmul %648, %702, %cst_323 {dimension_numbers = #tpu.dot_dimension_numbers<[1], [0], [0], [1], [0, 0, 1, 1], [], []>} : vector<8x32xf32>, vector<32x128xf32>, vector<8x128xf32> -> vector<8x128xf32>
    %c7_324 = arith.constant 7 : index
    %c0_325 = arith.constant 0 : index
    %c0_326 = arith.constant 0 : index
    %704 = vector.load %arg4[%c7_324, %c0_325, %c0_326] : memref<8x32x128xf32, #tpu.memory_space<vmem>>, vector<1x32x128xf32>
    %705 = vector.shape_cast %704 : vector<1x32x128xf32> to vector<32x128xf32>
    %cst_327 = arith.constant dense<0.000000e+00> : vector<8x128xf32>
    %706 = tpu.matmul %622, %705, %cst_327 {dimension_numbers = #tpu.dot_dimension_numbers<[1], [0], [0], [1], [0, 0, 1, 1], [], []>} : vector<8x32xf32>, vector<32x128xf32>, vector<8x128xf32> -> vector<8x128xf32>
    %707 = arith.addf %703, %706 : vector<8x128xf32>
    %c7_328 = arith.constant 7 : index
    %c0_329 = arith.constant 0 : index
    %c0_330 = arith.constant 0 : index
    %708 = vector.load %arg5[%c7_328, %c0_329, %c0_330] : memref<8x1x128xf32, #tpu.memory_space<vmem>>, vector<1x1x128xf32>
    %709 = vector.shape_cast %708 : vector<1x1x128xf32> to vector<1x128xf32>
    %710 = vector.broadcast %709 : vector<1x128xf32> to vector<8x128xf32>
    %711 = arith.addf %707, %710 : vector<8x128xf32>
    %712 = arith.negf %711 : vector<8x128xf32>
    %713 = math.exp %712 : vector<8x128xf32>
    %cst_331 = arith.constant 1.000000e+00 : f32
    %714 = vector.broadcast %cst_331 : f32 to vector<8x128xf32>
    %715 = arith.addf %714, %713 : vector<8x128xf32>
    %716 = arith.divf %714, %715 : vector<8x128xf32>
    %717 = vector.extract_strided_slice %716 {offsets = [0, 0], sizes = [8, 32], strides = [1, 1]} : vector<8x128xf32> to vector<8x32xf32>
    %718 = vector.extract_strided_slice %716 {offsets = [0, 32], sizes = [8, 32], strides = [1, 1]} : vector<8x128xf32> to vector<8x32xf32>
    %719 = vector.extract_strided_slice %711 {offsets = [0, 64], sizes = [8, 32], strides = [1, 1]} : vector<8x128xf32> to vector<8x32xf32>
    %720 = math.tanh %719 : vector<8x32xf32>
    %721 = vector.extract_strided_slice %716 {offsets = [0, 96], sizes = [8, 32], strides = [1, 1]} : vector<8x128xf32> to vector<8x32xf32>
    %722 = arith.mulf %718, %620 : vector<8x32xf32>
    %723 = arith.mulf %717, %720 : vector<8x32xf32>
    %724 = arith.addf %722, %723 : vector<8x32xf32>
    %725 = math.tanh %724 : vector<8x32xf32>
    %726 = arith.mulf %721, %725 : vector<8x32xf32>
    %c5_332 = arith.constant 5 : index
    %c0_333 = arith.constant 0 : index
    %c0_334 = arith.constant 0 : index
    %727 = vector.load %arg3[%c5_332, %c0_333, %c0_334] : memref<7x32x128xf32, #tpu.memory_space<vmem>>, vector<1x32x128xf32>
    %728 = vector.shape_cast %727 : vector<1x32x128xf32> to vector<32x128xf32>
    %cst_335 = arith.constant dense<0.000000e+00> : vector<8x128xf32>
    %729 = tpu.matmul %674, %728, %cst_335 {dimension_numbers = #tpu.dot_dimension_numbers<[1], [0], [0], [1], [0, 0, 1, 1], [], []>} : vector<8x32xf32>, vector<32x128xf32>, vector<8x128xf32> -> vector<8x128xf32>
    %c6_336 = arith.constant 6 : index
    %c0_337 = arith.constant 0 : index
    %c0_338 = arith.constant 0 : index
    %730 = vector.load %arg4[%c6_336, %c0_337, %c0_338] : memref<8x32x128xf32, #tpu.memory_space<vmem>>, vector<1x32x128xf32>
    %731 = vector.shape_cast %730 : vector<1x32x128xf32> to vector<32x128xf32>
    %cst_339 = arith.constant dense<0.000000e+00> : vector<8x128xf32>
    %732 = tpu.matmul %648, %731, %cst_339 {dimension_numbers = #tpu.dot_dimension_numbers<[1], [0], [0], [1], [0, 0, 1, 1], [], []>} : vector<8x32xf32>, vector<32x128xf32>, vector<8x128xf32> -> vector<8x128xf32>
    %733 = arith.addf %729, %732 : vector<8x128xf32>
    %c6_340 = arith.constant 6 : index
    %c0_341 = arith.constant 0 : index
    %c0_342 = arith.constant 0 : index
    %734 = vector.load %arg5[%c6_340, %c0_341, %c0_342] : memref<8x1x128xf32, #tpu.memory_space<vmem>>, vector<1x1x128xf32>
    %735 = vector.shape_cast %734 : vector<1x1x128xf32> to vector<1x128xf32>
    %736 = vector.broadcast %735 : vector<1x128xf32> to vector<8x128xf32>
    %737 = arith.addf %733, %736 : vector<8x128xf32>
    %738 = arith.negf %737 : vector<8x128xf32>
    %739 = math.exp %738 : vector<8x128xf32>
    %cst_343 = arith.constant 1.000000e+00 : f32
    %740 = vector.broadcast %cst_343 : f32 to vector<8x128xf32>
    %741 = arith.addf %740, %739 : vector<8x128xf32>
    %742 = arith.divf %740, %741 : vector<8x128xf32>
    %743 = vector.extract_strided_slice %742 {offsets = [0, 0], sizes = [8, 32], strides = [1, 1]} : vector<8x128xf32> to vector<8x32xf32>
    %744 = vector.extract_strided_slice %742 {offsets = [0, 32], sizes = [8, 32], strides = [1, 1]} : vector<8x128xf32> to vector<8x32xf32>
    %745 = vector.extract_strided_slice %737 {offsets = [0, 64], sizes = [8, 32], strides = [1, 1]} : vector<8x128xf32> to vector<8x32xf32>
    %746 = math.tanh %745 : vector<8x32xf32>
    %747 = vector.extract_strided_slice %742 {offsets = [0, 96], sizes = [8, 32], strides = [1, 1]} : vector<8x128xf32> to vector<8x32xf32>
    %748 = arith.mulf %744, %646 : vector<8x32xf32>
    %749 = arith.mulf %743, %746 : vector<8x32xf32>
    %750 = arith.addf %748, %749 : vector<8x32xf32>
    %751 = math.tanh %750 : vector<8x32xf32>
    %752 = arith.mulf %747, %751 : vector<8x32xf32>
    %c4_344 = arith.constant 4 : index
    %c0_345 = arith.constant 0 : index
    %c0_346 = arith.constant 0 : index
    %753 = vector.load %arg3[%c4_344, %c0_345, %c0_346] : memref<7x32x128xf32, #tpu.memory_space<vmem>>, vector<1x32x128xf32>
    %754 = vector.shape_cast %753 : vector<1x32x128xf32> to vector<32x128xf32>
    %cst_347 = arith.constant dense<0.000000e+00> : vector<8x128xf32>
    %755 = tpu.matmul %700, %754, %cst_347 {dimension_numbers = #tpu.dot_dimension_numbers<[1], [0], [0], [1], [0, 0, 1, 1], [], []>} : vector<8x32xf32>, vector<32x128xf32>, vector<8x128xf32> -> vector<8x128xf32>
    %c5_348 = arith.constant 5 : index
    %c0_349 = arith.constant 0 : index
    %c0_350 = arith.constant 0 : index
    %756 = vector.load %arg4[%c5_348, %c0_349, %c0_350] : memref<8x32x128xf32, #tpu.memory_space<vmem>>, vector<1x32x128xf32>
    %757 = vector.shape_cast %756 : vector<1x32x128xf32> to vector<32x128xf32>
    %cst_351 = arith.constant dense<0.000000e+00> : vector<8x128xf32>
    %758 = tpu.matmul %674, %757, %cst_351 {dimension_numbers = #tpu.dot_dimension_numbers<[1], [0], [0], [1], [0, 0, 1, 1], [], []>} : vector<8x32xf32>, vector<32x128xf32>, vector<8x128xf32> -> vector<8x128xf32>
    %759 = arith.addf %755, %758 : vector<8x128xf32>
    %c5_352 = arith.constant 5 : index
    %c0_353 = arith.constant 0 : index
    %c0_354 = arith.constant 0 : index
    %760 = vector.load %arg5[%c5_352, %c0_353, %c0_354] : memref<8x1x128xf32, #tpu.memory_space<vmem>>, vector<1x1x128xf32>
    %761 = vector.shape_cast %760 : vector<1x1x128xf32> to vector<1x128xf32>
    %762 = vector.broadcast %761 : vector<1x128xf32> to vector<8x128xf32>
    %763 = arith.addf %759, %762 : vector<8x128xf32>
    %764 = arith.negf %763 : vector<8x128xf32>
    %765 = math.exp %764 : vector<8x128xf32>
    %cst_355 = arith.constant 1.000000e+00 : f32
    %766 = vector.broadcast %cst_355 : f32 to vector<8x128xf32>
    %767 = arith.addf %766, %765 : vector<8x128xf32>
    %768 = arith.divf %766, %767 : vector<8x128xf32>
    %769 = vector.extract_strided_slice %768 {offsets = [0, 0], sizes = [8, 32], strides = [1, 1]} : vector<8x128xf32> to vector<8x32xf32>
    %770 = vector.extract_strided_slice %768 {offsets = [0, 32], sizes = [8, 32], strides = [1, 1]} : vector<8x128xf32> to vector<8x32xf32>
    %771 = vector.extract_strided_slice %763 {offsets = [0, 64], sizes = [8, 32], strides = [1, 1]} : vector<8x128xf32> to vector<8x32xf32>
    %772 = math.tanh %771 : vector<8x32xf32>
    %773 = vector.extract_strided_slice %768 {offsets = [0, 96], sizes = [8, 32], strides = [1, 1]} : vector<8x128xf32> to vector<8x32xf32>
    %774 = arith.mulf %770, %672 : vector<8x32xf32>
    %775 = arith.mulf %769, %772 : vector<8x32xf32>
    %776 = arith.addf %774, %775 : vector<8x32xf32>
    %777 = math.tanh %776 : vector<8x32xf32>
    %778 = arith.mulf %773, %777 : vector<8x32xf32>
    %c6_356 = arith.constant 6 : index
    %c0_357 = arith.constant 0 : index
    %c0_358 = arith.constant 0 : index
    %779 = vector.load %arg3[%c6_356, %c0_357, %c0_358] : memref<7x32x128xf32, #tpu.memory_space<vmem>>, vector<1x32x128xf32>
    %780 = vector.shape_cast %779 : vector<1x32x128xf32> to vector<32x128xf32>
    %cst_359 = arith.constant dense<0.000000e+00> : vector<8x128xf32>
    %781 = tpu.matmul %752, %780, %cst_359 {dimension_numbers = #tpu.dot_dimension_numbers<[1], [0], [0], [1], [0, 0, 1, 1], [], []>} : vector<8x32xf32>, vector<32x128xf32>, vector<8x128xf32> -> vector<8x128xf32>
    %c7_360 = arith.constant 7 : index
    %c0_361 = arith.constant 0 : index
    %c0_362 = arith.constant 0 : index
    %782 = vector.load %arg4[%c7_360, %c0_361, %c0_362] : memref<8x32x128xf32, #tpu.memory_space<vmem>>, vector<1x32x128xf32>
    %783 = vector.shape_cast %782 : vector<1x32x128xf32> to vector<32x128xf32>
    %cst_363 = arith.constant dense<0.000000e+00> : vector<8x128xf32>
    %784 = tpu.matmul %726, %783, %cst_363 {dimension_numbers = #tpu.dot_dimension_numbers<[1], [0], [0], [1], [0, 0, 1, 1], [], []>} : vector<8x32xf32>, vector<32x128xf32>, vector<8x128xf32> -> vector<8x128xf32>
    %785 = arith.addf %781, %784 : vector<8x128xf32>
    %c7_364 = arith.constant 7 : index
    %c0_365 = arith.constant 0 : index
    %c0_366 = arith.constant 0 : index
    %786 = vector.load %arg5[%c7_364, %c0_365, %c0_366] : memref<8x1x128xf32, #tpu.memory_space<vmem>>, vector<1x1x128xf32>
    %787 = vector.shape_cast %786 : vector<1x1x128xf32> to vector<1x128xf32>
    %788 = vector.broadcast %787 : vector<1x128xf32> to vector<8x128xf32>
    %789 = arith.addf %785, %788 : vector<8x128xf32>
    %790 = arith.negf %789 : vector<8x128xf32>
    %791 = math.exp %790 : vector<8x128xf32>
    %cst_367 = arith.constant 1.000000e+00 : f32
    %792 = vector.broadcast %cst_367 : f32 to vector<8x128xf32>
    %793 = arith.addf %792, %791 : vector<8x128xf32>
    %794 = arith.divf %792, %793 : vector<8x128xf32>
    %795 = vector.extract_strided_slice %794 {offsets = [0, 0], sizes = [8, 32], strides = [1, 1]} : vector<8x128xf32> to vector<8x32xf32>
    %796 = vector.extract_strided_slice %794 {offsets = [0, 32], sizes = [8, 32], strides = [1, 1]} : vector<8x128xf32> to vector<8x32xf32>
    %797 = vector.extract_strided_slice %789 {offsets = [0, 64], sizes = [8, 32], strides = [1, 1]} : vector<8x128xf32> to vector<8x32xf32>
    %798 = math.tanh %797 : vector<8x32xf32>
    %799 = vector.extract_strided_slice %794 {offsets = [0, 96], sizes = [8, 32], strides = [1, 1]} : vector<8x128xf32> to vector<8x32xf32>
    %800 = arith.mulf %796, %724 : vector<8x32xf32>
    %801 = arith.mulf %795, %798 : vector<8x32xf32>
    %802 = arith.addf %800, %801 : vector<8x32xf32>
    %803 = math.tanh %802 : vector<8x32xf32>
    %804 = arith.mulf %799, %803 : vector<8x32xf32>
    %c5_368 = arith.constant 5 : index
    %c0_369 = arith.constant 0 : index
    %c0_370 = arith.constant 0 : index
    %805 = vector.load %arg3[%c5_368, %c0_369, %c0_370] : memref<7x32x128xf32, #tpu.memory_space<vmem>>, vector<1x32x128xf32>
    %806 = vector.shape_cast %805 : vector<1x32x128xf32> to vector<32x128xf32>
    %cst_371 = arith.constant dense<0.000000e+00> : vector<8x128xf32>
    %807 = tpu.matmul %778, %806, %cst_371 {dimension_numbers = #tpu.dot_dimension_numbers<[1], [0], [0], [1], [0, 0, 1, 1], [], []>} : vector<8x32xf32>, vector<32x128xf32>, vector<8x128xf32> -> vector<8x128xf32>
    %c6_372 = arith.constant 6 : index
    %c0_373 = arith.constant 0 : index
    %c0_374 = arith.constant 0 : index
    %808 = vector.load %arg4[%c6_372, %c0_373, %c0_374] : memref<8x32x128xf32, #tpu.memory_space<vmem>>, vector<1x32x128xf32>
    %809 = vector.shape_cast %808 : vector<1x32x128xf32> to vector<32x128xf32>
    %cst_375 = arith.constant dense<0.000000e+00> : vector<8x128xf32>
    %810 = tpu.matmul %752, %809, %cst_375 {dimension_numbers = #tpu.dot_dimension_numbers<[1], [0], [0], [1], [0, 0, 1, 1], [], []>} : vector<8x32xf32>, vector<32x128xf32>, vector<8x128xf32> -> vector<8x128xf32>
    %811 = arith.addf %807, %810 : vector<8x128xf32>
    %c6_376 = arith.constant 6 : index
    %c0_377 = arith.constant 0 : index
    %c0_378 = arith.constant 0 : index
    %812 = vector.load %arg5[%c6_376, %c0_377, %c0_378] : memref<8x1x128xf32, #tpu.memory_space<vmem>>, vector<1x1x128xf32>
    %813 = vector.shape_cast %812 : vector<1x1x128xf32> to vector<1x128xf32>
    %814 = vector.broadcast %813 : vector<1x128xf32> to vector<8x128xf32>
    %815 = arith.addf %811, %814 : vector<8x128xf32>
    %816 = arith.negf %815 : vector<8x128xf32>
    %817 = math.exp %816 : vector<8x128xf32>
    %cst_379 = arith.constant 1.000000e+00 : f32
    %818 = vector.broadcast %cst_379 : f32 to vector<8x128xf32>
    %819 = arith.addf %818, %817 : vector<8x128xf32>
    %820 = arith.divf %818, %819 : vector<8x128xf32>
    %821 = vector.extract_strided_slice %820 {offsets = [0, 0], sizes = [8, 32], strides = [1, 1]} : vector<8x128xf32> to vector<8x32xf32>
    %822 = vector.extract_strided_slice %820 {offsets = [0, 32], sizes = [8, 32], strides = [1, 1]} : vector<8x128xf32> to vector<8x32xf32>
    %823 = vector.extract_strided_slice %815 {offsets = [0, 64], sizes = [8, 32], strides = [1, 1]} : vector<8x128xf32> to vector<8x32xf32>
    %824 = math.tanh %823 : vector<8x32xf32>
    %825 = vector.extract_strided_slice %820 {offsets = [0, 96], sizes = [8, 32], strides = [1, 1]} : vector<8x128xf32> to vector<8x32xf32>
    %826 = arith.mulf %822, %750 : vector<8x32xf32>
    %827 = arith.mulf %821, %824 : vector<8x32xf32>
    %828 = arith.addf %826, %827 : vector<8x32xf32>
    %829 = math.tanh %828 : vector<8x32xf32>
    %830 = arith.mulf %825, %829 : vector<8x32xf32>
    %c6_380 = arith.constant 6 : index
    %c0_381 = arith.constant 0 : index
    %c0_382 = arith.constant 0 : index
    %831 = vector.load %arg3[%c6_380, %c0_381, %c0_382] : memref<7x32x128xf32, #tpu.memory_space<vmem>>, vector<1x32x128xf32>
    %832 = vector.shape_cast %831 : vector<1x32x128xf32> to vector<32x128xf32>
    %cst_383 = arith.constant dense<0.000000e+00> : vector<8x128xf32>
    %833 = tpu.matmul %830, %832, %cst_383 {dimension_numbers = #tpu.dot_dimension_numbers<[1], [0], [0], [1], [0, 0, 1, 1], [], []>} : vector<8x32xf32>, vector<32x128xf32>, vector<8x128xf32> -> vector<8x128xf32>
    %c7_384 = arith.constant 7 : index
    %c0_385 = arith.constant 0 : index
    %c0_386 = arith.constant 0 : index
    %834 = vector.load %arg4[%c7_384, %c0_385, %c0_386] : memref<8x32x128xf32, #tpu.memory_space<vmem>>, vector<1x32x128xf32>
    %835 = vector.shape_cast %834 : vector<1x32x128xf32> to vector<32x128xf32>
    %cst_387 = arith.constant dense<0.000000e+00> : vector<8x128xf32>
    %836 = tpu.matmul %804, %835, %cst_387 {dimension_numbers = #tpu.dot_dimension_numbers<[1], [0], [0], [1], [0, 0, 1, 1], [], []>} : vector<8x32xf32>, vector<32x128xf32>, vector<8x128xf32> -> vector<8x128xf32>
    %837 = arith.addf %833, %836 : vector<8x128xf32>
    %c7_388 = arith.constant 7 : index
    %c0_389 = arith.constant 0 : index
    %c0_390 = arith.constant 0 : index
    %838 = vector.load %arg5[%c7_388, %c0_389, %c0_390] : memref<8x1x128xf32, #tpu.memory_space<vmem>>, vector<1x1x128xf32>
    %839 = vector.shape_cast %838 : vector<1x1x128xf32> to vector<1x128xf32>
    %840 = vector.broadcast %839 : vector<1x128xf32> to vector<8x128xf32>
    %841 = arith.addf %837, %840 : vector<8x128xf32>
    %842 = arith.negf %841 : vector<8x128xf32>
    %843 = math.exp %842 : vector<8x128xf32>
    %cst_391 = arith.constant 1.000000e+00 : f32
    %844 = vector.broadcast %cst_391 : f32 to vector<8x128xf32>
    %845 = arith.addf %844, %843 : vector<8x128xf32>
    %846 = arith.divf %844, %845 : vector<8x128xf32>
    %847 = vector.extract_strided_slice %846 {offsets = [0, 0], sizes = [8, 32], strides = [1, 1]} : vector<8x128xf32> to vector<8x32xf32>
    %848 = vector.extract_strided_slice %846 {offsets = [0, 32], sizes = [8, 32], strides = [1, 1]} : vector<8x128xf32> to vector<8x32xf32>
    %849 = vector.extract_strided_slice %841 {offsets = [0, 64], sizes = [8, 32], strides = [1, 1]} : vector<8x128xf32> to vector<8x32xf32>
    %850 = math.tanh %849 : vector<8x32xf32>
    %851 = vector.extract_strided_slice %846 {offsets = [0, 96], sizes = [8, 32], strides = [1, 1]} : vector<8x128xf32> to vector<8x32xf32>
    %852 = arith.mulf %848, %802 : vector<8x32xf32>
    %853 = arith.mulf %847, %850 : vector<8x32xf32>
    %854 = arith.addf %852, %853 : vector<8x32xf32>
    %855 = math.tanh %854 : vector<8x32xf32>
    %856 = arith.mulf %851, %855 : vector<8x32xf32>
    %cst_392 = arith.constant dense<0.000000e+00> : vector<32xf32>
    %857 = vector.multi_reduction <add>, %622, %cst_392 [0] : vector<8x32xf32> to vector<32xf32>
    %858 = vector.shape_cast %857 : vector<32xf32> to vector<1x32xf32>
    %cst_393 = arith.constant 8.000000e+00 : f32
    %859 = vector.broadcast %cst_393 : f32 to vector<1x32xf32>
    %860 = arith.divf %858, %859 : vector<1x32xf32>
    %cst_394 = arith.constant dense<0.000000e+00> : vector<32xf32>
    %861 = vector.multi_reduction <add>, %726, %cst_394 [0] : vector<8x32xf32> to vector<32xf32>
    %862 = vector.shape_cast %861 : vector<32xf32> to vector<1x32xf32>
    %cst_395 = arith.constant 8.000000e+00 : f32
    %863 = vector.broadcast %cst_395 : f32 to vector<1x32xf32>
    %864 = arith.divf %862, %863 : vector<1x32xf32>
    %cst_396 = arith.constant dense<0.000000e+00> : vector<32xf32>
    %865 = vector.multi_reduction <add>, %804, %cst_396 [0] : vector<8x32xf32> to vector<32xf32>
    %866 = vector.shape_cast %865 : vector<32xf32> to vector<1x32xf32>
    %cst_397 = arith.constant 8.000000e+00 : f32
    %867 = vector.broadcast %cst_397 : f32 to vector<1x32xf32>
    %868 = arith.divf %866, %867 : vector<1x32xf32>
    %cst_398 = arith.constant dense<0.000000e+00> : vector<32xf32>
    %869 = vector.multi_reduction <add>, %856, %cst_398 [0] : vector<8x32xf32> to vector<32xf32>
    %870 = vector.shape_cast %869 : vector<32xf32> to vector<1x32xf32>
    %cst_399 = arith.constant 8.000000e+00 : f32
    %871 = vector.broadcast %cst_399 : f32 to vector<1x32xf32>
    %872 = arith.divf %870, %871 : vector<1x32xf32>
    %873 = tpu.concatenate %860, %864, %868, %872 in 0 : vector<1x32xf32>, vector<1x32xf32>, vector<1x32xf32>, vector<1x32xf32> -> vector<4x32xf32>
    %c0_400 = arith.constant 0 : index
    %c0_401 = arith.constant 0 : index
    %874 = vector.load %arg6[%c0_400, %c0_401] : memref<32x5xf32, #tpu.memory_space<vmem>>, vector<32x5xf32>
    %cst_402 = arith.constant dense<0.000000e+00> : vector<4x5xf32>
    %875 = tpu.matmul %873, %874, %cst_402 {dimension_numbers = #tpu.dot_dimension_numbers<[1], [0], [0], [1], [0, 0, 1, 1], [], []>} : vector<4x32xf32>, vector<32x5xf32>, vector<4x5xf32> -> vector<4x5xf32>
    %c0_403 = arith.constant 0 : index
    %c0_404 = arith.constant 0 : index
    %876 = vector.load %arg7[%c0_403, %c0_404] : memref<1x5xf32, #tpu.memory_space<vmem>>, vector<1x5xf32>
    %877 = vector.broadcast %876 : vector<1x5xf32> to vector<4x5xf32>
    %878 = arith.addf %875, %877 : vector<4x5xf32>
    %c0_405 = arith.constant 0 : index
    %c0_406 = arith.constant 0 : index
    %879 = vector.load %arg8[%c0_405, %c0_406] : memref<4x5xf32, #tpu.memory_space<vmem>>, vector<4x5xf32>
    tpu.vector_store %arg8[%c0_405, %c0_406], %878 {strides = array<i32>} : memref<4x5xf32, #tpu.memory_space<vmem>>, vector<4x5xf32>,
    return
  }
}

</mosaic_0001>

<bundles_post_ra>
// kernel: model_forward.1
= control target key start
LH: loop header
LB: loop body
LE: loop exit
PB: predicated region body
PF: predicated region fallthrough
CT: control target
= control target key end

     0   :  { %13 = vsyncpa [#allocation3], 0  ;;  %s8669_s0 = inlined_call_operand.vmem [shape: f32[4,8,16], index: 0, kind: input, shape index: {}]   ;;  %s8670_s1 = inlined_call_operand.vmem [shape: f32[4,8], index: 1, kind: input, shape index: {}]   ;;  %s8671_s2 = inlined_call_operand.vmem [shape: f32[16,128], index: 2, kind: input, shape index: {}]   ;;  %s8672_s3 = inlined_call_operand.hbm [shape: f32[7,32,128], index: 3, kind: input, shape index: {}]   ;;  %s8673_s4 = inlined_call_operand.hbm [shape: f32[8,32,128], index: 4, kind: input, shape index: {}]   ;;  %s8674_s5 = inlined_call_operand.hbm [shape: f32[8,1,128], index: 5, kind: input, shape index: {}]   ;;  %s8675_s6 = inlined_call_operand.vmem [shape: f32[32,5], index: 6, kind: input, shape index: {}]   ;;  %s8676_s7 = inlined_call_operand.hbm [shape: f32[1,5], index: 7, kind: input, shape index: {}]   ;;  %s8677_s8 = inlined_call_operand.hbm [shape: f32[4,5], index: 8, kind: output, shape index: {}]  }
   0x1   :  { %14 = vsyncpa [#allocation6], 0 }
   0x2   :  { %15 = vsyncpa [#allocation9], 0 }
   0x3   :  { %16 = vsyncpa [#allocation4], 0  ;;  %s7400_s27 = smov [#allocation5]   ;;  %s7401_s29 = smov [#allocation2]  }
   0x4   :  { %s40_s28 = sshll.u32 %s7400_s27, 4  ;;  %s28_s30 = sshll.u32 %s7401_s29, 4  ;;  %s41_s28 = int_to_ptr.vmem [resolvable:$true] %s40_s28  ;;  %s29_s30 = int_to_ptr.vmem [resolvable:$true] %s28_s30 }
   0x5   :  { %s7300_s9 = scalar_lea.vmem %s41_s28, 4096  ;;  %p7305_p1 = scmp.lt.s32.totalorder %s41_s28, %s41_s28 }
   0x6   :  { %p7301_p0 = scmp.ne.s32.totalorder %s41_s28, %s7300_s9  ;;  %p7306_p2 = scmp.lt.s32.totalorder %s7300_s9, %s7300_s9 }
   0x8   :  { %p7307_p3 = por %p7306_p2, %p7305_p1 }
   0xa   :  { %p7308_p4 = pnand %p7307_p3, %p7301_p0 }
   0xc   :  { %7311 = shalt.err (!%p7308_p4)
}
   0xd   :  { %s7402_s10 = smov 128   ;;  %s7403_s11 = smov 8  }
   0xe   :  { %46 = dma.hbm_to_vmem [thread:$0]  %s8673_s4, 4096, %s41_s28, [#allocation6], %s7402_s10, %s7402_s10, %s7403_s11  }
   0xf   :  { %s7320_s14 = scalar_lea.vmem %s29_s30, 3584  ;;  %p7325_p6 = scmp.lt.s32.totalorder %s29_s30, %s29_s30 }
  0x10   :  { %p7321_p5 = scmp.ne.s32.totalorder %s29_s30, %s7320_s14  ;;  %p7326_p7 = scmp.lt.s32.totalorder %s7320_s14, %s7320_s14 }
  0x12   :  { %p7327_p8 = por %p7326_p7, %p7325_p6 }
  0x14   :  { %p7328_p9 = pnand %p7327_p8, %p7321_p5 }
  0x16   :  { %7331 = shalt.err (!%p7328_p9)
}
  0x17   :  { %34 = dma.hbm_to_vmem [thread:$0]  %s8672_s3, 3584, %s29_s30, [#allocation3], %s7402_s10, %s7402_s10, %s7403_s11  }
  0x18   :  { %s7404_s17 = smov [#allocation7]  }
  0x19   :  { %s52_s18 = sshll.u32 %s7404_s17, 4  ;;  %s53_s18 = int_to_ptr.vmem [resolvable:$true] %s52_s18 }
  0x1a   :  { %s7340_s19 = scalar_lea.vmem %s53_s18, 128  ;;  %p7345_p11 = scmp.lt.s32.totalorder %s53_s18, %s53_s18 }
  0x1b   :  { %p7341_p10 = scmp.ne.s32.totalorder %s53_s18, %s7340_s19  ;;  %p7346_p12 = scmp.lt.s32.totalorder %s7340_s19, %s7340_s19 }
  0x1d   :  { %p7347_p13 = por %p7346_p12, %p7345_p11 }
  0x1f   :  { %p7348_p0 = pnand %p7347_p13, %p7341_p10 }
  0x21   :  { %7351 = shalt.err (!%p7348_p0)
}
  0x22   :  { %s7405_s4 = smov 16   ;;  %s7406_s20 = smov 1  }
  0x23   :  { %58 = dma.hbm_to_vmem [thread:$0]  %s8674_s5, 128, %s53_s18, [#allocation6], %s7405_s4, %s7405_s4, %s7406_s20  }
  0x24   :  { %s7407_s23 = smov [#allocation8]  }
  0x25   :  { %s67_s24 = sshll.u32 %s7407_s23, 4  ;;  %s68_s24 = int_to_ptr.vmem [resolvable:$true] %s67_s24 }
  0x26   :  { %s7360_s3 = scalar_lea.vmem %s68_s24, 16  ;;  %s7364_s25 = scalar_lea.vmem %s68_s24, 32 }
  0x27   :  { %p7361_p1 = scmp.ne.s32.totalorder %s68_s24, %s7360_s3  ;;  %p7365_p2 = scmp.lt.s32.totalorder %s68_s24, %s68_s24 }
  0x28   :  { %p7366_p3 = scmp.lt.s32.totalorder %s7364_s25, %s7360_s3 }
  0x2a   :  { %p7367_p4 = por %p7366_p3, %p7365_p2 }
  0x2c   :  { %p7368_p5 = pnand %p7367_p4, %p7361_p1 }
  0x2e   :  { %7371 = shalt.err (!%p7368_p5)
}
  0x2f   :  { %70 = dma.hbm_to_vmem [thread:$0]  %s8676_s7, 16, %s68_s24, [#allocation9]  }
  0x30   :  { %7392 = dma.done.wait [#allocation3], 3584  }
  0x31   :  { %7393 = vsyncadd [#allocation3], 4294963712 }
  0x32   :  { %7394 = dma.done.wait [#allocation6], 4224  }
  0x33   :  { %7395 = vsyncadd [#allocation6], 4294963072 }
  0x34   :  { %7396 = dma.done.wait [#allocation9], 16  }
  0x35   :  { %7397 = vsyncadd [#allocation9], 4294967280  ;;  %v88_v0 = vlaneseq  ;;  %v7408_v1 = vmov 0.0   ;;  %vm7409_vm0 = vmmov 0   ;;  %v7482_v4 = vld [vmem:[%s8670_s1] sm:$0xf] }
  0x36   :  { %6270 = vmatprep.subr.mxu0 %v7408_v1  ;;  %6281 = vmatprep.subr.mxu1 %v7408_v1  ;;  %v7484_v5 = vld [vmem:[#allocation5 + $0x18] sm:$0xff]  ;;  %v7486_v6 = vld [vmem:[#allocation5 + $0x10] sm:$0xff]  ;;  %v7493_v8 = vld [vmem:[%s8671_s2 + $0x8] sm:$0xff]  ;;  %vm200_vm1 = vcmask 130048   ;;  %s7410_s10 = smov 64   ;;  %s7411_s11 = smov 32  }
  0x37   :  { %v7472_v2 = vshrl.u32 %v88_v0, 7  ;;  %6278 = vmatprep.mubr.msk.f32.mxu0 %vm7409_vm0, %v7408_v1  ;;  %6285 = vmatprep.mubr.msk.f32.mxu1 %vm7409_vm0, %v7408_v1  ;;  %v7496_v9 = vld [vmem:[#allocation5 + $0x8] sm:$0xff]  ;;  %v7502_v10 = vld [vmem:[%s8671_s2] sm:$0xff]  ;;  %v7532_v32 = vld [vmem:[#allocation5 + $0x38] sm:$0xff]  ;;  %vm126_vm2 = vcmask 261120   ;;  %vm5710_vm3 = vcmask 1048320  }
  0x38   :  { %6271 = vmatpush3.msra.mxu0 %v7484_v5  ;;  %6282 = vmatpush3.msra.mxu1 %v7493_v8  ;;  %v7506_v11 = vld [vmem:[#allocation5] sm:$0xff]  ;;  %v7534_v33 = vld [vmem:[#allocation5 + $0x30] sm:$0xff]  ;;  %v7537_v34 = vld [vmem:[#allocation2 + $0x18] sm:$0xff]  ;;  %vm5744_vm4 = vcmask 1040384   ;;  %vm5746_vm5 = vcmask 1041408   ;;  %vm5748_vm6 = vcmask 1042432  }
  0x39   :  { %v90_v3 = vsub.s32 0, %v7472_v2  ;;  %6272 = vmatprep.subr.mxu0 %v7408_v1  ;;  %6283 = vmatprep.subr.mxu1 %v7408_v1  ;;  %v83_v12 = vld [vmem:[%s8669_s0] sm:$0xff]  ;;  %v7539_v35 = vld [vmem:[#allocation2 + $0x10] sm:$0xff]  ;;  %v7542_v36 = vld [vmem:[#allocation5 + $0x28] sm:$0xff]  ;;  %v97_v40 = vsub.s32 1, %v7472_v2  ;;  %vm5836_vm7 = vcmask 35840  }
  0x3a   :  { %6273 = vmatpush3.msra.mxu0 %v7486_v6  ;;  %6284 = vmatpush3.msra.mxu1 %v7502_v10  ;;  %v7524_v18 = vld [vmem:[#allocation7] ss:$0 sm:$0xff]  ;;  %v7547_v37 = vld [vmem:[#allocation2 + $0x8] sm:$0xff]  ;;  %v7595_v52 = vld [vmem:[#allocation7 + $0x1] ss:$0 sm:$0xff] }
  0x3b   :  { %v91_v7 = vrot.slane %v7482_v4, %v90_v3  ;;  %6274 = vmatprep.subr.mxu0 %v7408_v1  ;;  %6288 = vmatprep.subr.mxu1 %v7408_v1  ;;  %v7550_v38 = vld [vmem:[#allocation5 + $0x20] sm:$0xff]  ;;  %v98_v42 = vrot.slane %v7482_v4, %v97_v40  ;;  %v84_v47 = vld [vmem:[%s8669_s0 + $0x8] sm:$0xff]  ;;  %v7617_v40 = vld [vmem:[#allocation2 + $0x30] sm:$0xff] }
  0x3c   :  { %6275 = vmatpush3.msra.mxu0 %v7496_v9  ;;  %v7557_v39 = vld [vmem:[#allocation2] sm:$0xff] }
  0x3d   :  { %93 = vbcast.lane.b32.xlu0 %v91_v7, 256  ;;  %6276 = vmatprep.subr.mxu0 %v7408_v1 }
  0x3e   :  { %6277 = vmatpush3.msra.mxu0 %v7506_v11 }
  0x3f   :  { %6279 = vmatmul.mubr.f32.vlgmr.msra.gmra.mxu0 %v7408_v1  ;;  %6299 = vmatprep.subr.mxu0 %v7408_v1 }
  0x40   :  { %6307 = vmatprep.mubr.msk.f32.mxu0 %vm7409_vm0, %v7408_v1  ;;  %6300 = vmatpush3.msra.mxu0 %v7537_v34 }
  0x41   :  { %6301 = vmatprep.subr.mxu0 %v7408_v1 }
  0x42   :  { %6302 = vmatpush3.msra.mxu0 %v7539_v35 }
  0x43   :  { %6303 = vmatprep.subr.mxu0 %v7408_v1 }
  0x44   :  { %6304 = vmatpush3.msra.mxu0 %v7547_v37 }
  0x45   :  { %6305 = vmatprep.subr.mxu0 %v7408_v1 }
  0x46   :  { %6306 = vmatpush3.msra.mxu0 %v7557_v39 }
  0x47   :  { %6328 = vmatprep.subr.mxu0 %v7408_v1 }
  0xaf   :  { %v94_v13 = vpop.permute.xlu0 %93 }
  0xb0   :  { %v116_v14 = vmul.f32 %v94_v13, %v83_v12 }
  0xb2   :  { %6286 = vmatmul.mubr.msk.f32.vlgmr.msra.gmra.mxu1 %vm200_vm1, %v116_v14 }
  0xb3   :  { %6296 = vmatprep.mubr.msk.f32.mxu1 %vm7409_vm0, %v7408_v1  ;;  %6289 = vmatpush3.msra.mxu1 %v7532_v32 }
  0xb4   :  { %6290 = vmatprep.subr.mxu1 %v7408_v1 }
  0xb5   :  { %6291 = vmatpush3.msra.mxu1 %v7534_v33 }
  0xb6   :  { %6292 = vmatprep.subr.mxu1 %v7408_v1 }
  0xb7   :  { %6293 = vmatpush3.msra.mxu1 %v7542_v36 }
  0xb8   :  { %6294 = vmatprep.subr.mxu1 %v7408_v1 }
  0xb9   :  { %6295 = vmatpush3.msra.mxu1 %v7550_v38 }
  0xba   :  { %6310 = vmatprep.subr.mxu1 %v7408_v1  ;;  %6297 = vmatmul.mubr.f32.vlgmr.msra.gmra.mxu1 %v7408_v1 }
  0xbb   :  { %6311 = vmatpush3.msra.mxu1 %v7484_v5  ;;  %6318 = vmatprep.mubr.msk.f32.mxu1 %vm7409_vm0, %v7408_v1 }
  0xbc   :  { %6312 = vmatprep.subr.mxu1 %v7408_v1 }
  0xbd   :  { %6313 = vmatpush3.msra.mxu1 %v7486_v6 }
  0xbe   :  { %6314 = vmatprep.subr.mxu1 %v7408_v1 }
  0xbf   :  { %6315 = vmatpush3.msra.mxu1 %v7496_v9 }
  0xc0   :  { %6316 = vmatprep.subr.mxu1 %v7408_v1 }
  0xc1   :  { %6317 = vmatpush3.msra.mxu1 %v7506_v11 }
  0xc2   :  { %6321 = vmatprep.subr.mxu1 %v7408_v1 }
  0xff   :  { %v196_v15 = vpop.f32.mrf.mxu0 }
 0x101   :  { %v6280_v16 = vpop.f32.mrf.mxu0 }
 0x172   :  { %v270_v17 = vpop.f32.mrf.mxu1 }
 0x173   :  { %v271_v19 = vadd.f32 %v270_v17, %v196_v15 }
 0x174   :  { %v6287_v20 = vpop.f32.mrf.mxu1 }
 0x175   :  { %v281_v21 = vadd.f32 %v7524_v18, %v271_v19 }
 0x177   :  { %6982 = vtanh.f32 %v281_v21  ;;  %v5857_v23 = vmul.f32 -1.442695, %v281_v21 }
 0x179   :  { %6984 = vpow2.f32 %v5857_v23 }
 0x17a   :  { %v381_v45 = vpop.f32.mrf.mxu1 }
 0x17c   :  { %v6298_v46 = vpop.f32.mrf.mxu1 }
 0x17d   :  { %v104_v46 = vsub.s32 2, %v7472_v2 }
 0x184   :  { %v6983_v22 = vpop.eup %6982 }
 0x185   :  { %291 = vrot.lane.b32.xlu0 %v6983_v22, %s7410_s10 }
 0x186   :  { %v6985_v24 = vpop.eup %6984 }
 0x187   :  { %v285_v25 = vadd.f32 1.0, %v6985_v24 }
 0x189   :  { %6986 = vrcp.f32 %v285_v25 }
 0x196   :  { %v6987_v26 = vpop.eup %6986 }
 0x197   :  { %v289_v29 = vmul.f32 0.0, %v6987_v26 }
 0x1f7   :  { %v292_v27 = vpop.permute.xlu0 %291 }
 0x1f8   :  { %v294_v28 = vmul.f32 %v6987_v26, %v292_v27 }
 0x1fa   :  { %296 = vrot.lane.b32.xlu1 %v294_v28, %s7411_s11  ;;  %v7610_v28 = vld [vmem:[#allocation5 + $0x58] sm:$0xff] }
 0x26c   :  { %v297_v30 = vpop.permute.xlu1 %296 }
 0x26d   :  { %v7529_v31 = vadd.f32 %v297_v30, %v289_v29  ;;  %v7612_v29 = vld [vmem:[#allocation5 + $0x50] sm:$0xff]  ;;  %v7615_v30 = vld [vmem:[#allocation2 + $0x38] sm:$0xff] }
 0x26f   :  { %6988 = vtanh.f32 %v7529_v31 }
 0x27c   :  { %v6989_v41 = vpop.eup %6988 }
 0x27d   :  { %302 = vrot.lane.b32.xlu1 %v6989_v41, %s7410_s10  ;;  %v7620_v41 = vld [vmem:[#allocation5 + $0x48] sm:$0xff] }
 0x281   :  { %100 = vbcast.lane.b32.xlu1 %v98_v42, 256  ;;  %v7628_v42 = vld [vmem:[#allocation5 + $0x40] sm:$0xff] }
 0x2ef   :  { %v303_v43 = vpop.permute.xlu1 %302 }
 0x2f0   :  { %v305_v44 = vmul.f32 %v6987_v26, %v303_v43 }
 0x2f2   :  { %386 = vrot.lane.b32.xlu0 %v305_v44, %s7411_s11  ;;  %v7637_v44 = vld [vmem:[#allocation2 + $0x20] sm:$0xff] }
 0x2f3   :  { %v101_v48 = vpop.permute.xlu1 %100 }
 0x2f4   :  { %v117_v50 = vmul.f32 %v101_v48, %v84_v47 }
 0x364   :  { %v387_v49 = vpop.permute.xlu0 %386 }
 0x365   :  { %6308 = vmatmul.mubr.msk.f32.vlgmr.msra.gmra.mxu0 %vm126_vm2, %v387_v49  ;;  %6319 = vmatmul.mubr.msk.f32.vlgmr.msra.gmra.mxu1 %vm126_vm2, %v387_v49  ;;  %v105_v49 = vrot.slane %v7482_v4, %v104_v46 }
 0x366   :  { %6322 = vmatpush3.msra.mxu1 %v7493_v8  ;;  %6325 = vmatprep.mubr.msk.f32.mxu1 %vm7409_vm0, %v7408_v1 }
 0x367   :  { %6323 = vmatprep.subr.mxu1 %v7408_v1  ;;  %6336 = vmatprep.mubr.msk.f32.mxu0 %vm7409_vm0, %v7408_v1 }
 0x368   :  { %6324 = vmatpush3.msra.mxu1 %v7502_v10  ;;  %6329 = vmatpush3.msra.mxu0 %v7610_v28 }
 0x369   :  { %6326 = vmatmul.mubr.msk.f32.vlgmr.msra.gmra.mxu1 %vm200_vm1, %v117_v50  ;;  %6339 = vmatprep.subr.mxu1 %v7408_v1 }
 0x36a   :  { %6347 = vmatprep.mubr.msk.f32.mxu1 %vm7409_vm0, %v7408_v1  ;;  %6330 = vmatprep.subr.mxu0 %v7408_v1 }
 0x36b   :  { %6340 = vmatpush3.msra.mxu1 %v7615_v30  ;;  %6331 = vmatpush3.msra.mxu0 %v7612_v29 }
 0x36c   :  { %6341 = vmatprep.subr.mxu1 %v7408_v1  ;;  %6332 = vmatprep.subr.mxu0 %v7408_v1 }
 0x36d   :  { %6342 = vmatpush3.msra.mxu1 %v7617_v40  ;;  %6333 = vmatpush3.msra.mxu0 %v7620_v41 }
 0x36e   :  { %6343 = vmatprep.subr.mxu1 %v7408_v1  ;;  %6334 = vmatprep.subr.mxu0 %v7408_v1 }
 0x36f   :  { %6335 = vmatpush3.msra.mxu0 %v7628_v42 }
 0x370   :  { %6350 = vmatprep.subr.mxu0 %v7408_v1  ;;  %6337 = vmatmul.mubr.f32.vlgmr.msra.gmra.mxu0 %v7408_v1 }
 0x371   :  { %6351 = vmatpush3.msra.mxu0 %v7532_v32  ;;  %6358 = vmatprep.mubr.msk.f32.mxu0 %vm7409_vm0, %v7408_v1 }
 0x372   :  { %6352 = vmatprep.subr.mxu0 %v7408_v1 }
 0x373   :  { %6353 = vmatpush3.msra.mxu0 %v7534_v33 }
 0x374   :  { %6354 = vmatprep.subr.mxu0 %v7408_v1 }
 0x375   :  { %6355 = vmatpush3.msra.mxu0 %v7542_v36 }
 0x376   :  { %6356 = vmatprep.subr.mxu0 %v7408_v1 }
 0x377   :  { %6357 = vmatpush3.msra.mxu0 %v7550_v38 }
 0x378   :  { %6372 = vmatprep.subr.mxu0 %v7408_v1 }
 0x425   :  { %v456_v51 = vpop.f32.mrf.mxu0  ;;  %v559_v53 = vpop.f32.mrf.mxu1 }
 0x426   :  { %v457_v54 = vadd.f32 %v456_v51, %v381_v45 }
 0x427   :  { %v6309_v55 = vpop.f32.mrf.mxu0  ;;  %v6320_v56 = vpop.f32.mrf.mxu1 }
 0x428   :  { %v468_v57 = vadd.f32 %v7595_v52, %v457_v54  ;;  %v85_v56 = vld [vmem:[%s8669_s0 + $0x10] sm:$0xff] }
 0x429   :  { %v632_v58 = vpop.f32.mrf.mxu1 }
 0x42a   :  { %6990 = vtanh.f32 %v468_v57  ;;  %v633_v59 = vadd.f32 %v632_v58, %v559_v53  ;;  %v5860_v0 = vmul.f32 -1.442695, %v468_v57 }
 0x42b   :  { %v6327_v60 = vpop.f32.mrf.mxu1 }
 0x42c   :  { %v636_v61 = vadd.f32 %v7524_v18, %v633_v59 }
 0x42e   :  { %6992 = vtanh.f32 %v636_v61  ;;  %v5863_v3 = vmul.f32 -1.442695, %v636_v61  ;;  %v7697_v61 = vld [vmem:[#allocation7 + $0x2] ss:$0 sm:$0xff] }
 0x42f   :  { %6994 = vpow2.f32 %v5860_v0 }
 0x430   :  { %6996 = vpow2.f32 %v5863_v3  ;;  %v737_v53 = vpop.f32.mrf.mxu0 }
 0x432   :  { %v6338_v54 = vpop.f32.mrf.mxu0 }
 0x437   :  { %v6991_v62 = vpop.eup %6990 }
 0x438   :  { %478 = vrot.lane.b32.xlu0 %v6991_v62, %s7410_s10 }
 0x43b   :  { %v6993_v63 = vpop.eup %6992 }
 0x43c   :  { %646 = vrot.lane.b32.xlu1 %v6993_v63, %s7410_s10  ;;  %v6995_v7 = vpop.eup %6994 }
 0x43d   :  { %v472_v12 = vadd.f32 1.0, %v6995_v7  ;;  %v6997_v13 = vpop.eup %6996 }
 0x43e   :  { %v640_v14 = vadd.f32 1.0, %v6997_v13 }
 0x43f   :  { %6998 = vrcp.f32 %v472_v12 }
 0x440   :  { %7000 = vrcp.f32 %v640_v14 }
 0x44c   :  { %v6999_v15 = vpop.eup %6998 }
 0x44d   :  { %v7001_v19 = vpop.eup %7000  ;;  %v476_v22 = vmul.f32 0.0, %v6999_v15 }
 0x44e   :  { %v644_v25 = vmul.f32 %v7001_v19, %v7529_v31  ;;  %v7625_v31 = vld [vmem:[#allocation2 + $0x28] sm:$0xff] }
 0x44f   :  { %6344 = vmatpush3.msra.mxu1 %v7625_v31 }
 0x450   :  { %6345 = vmatprep.subr.mxu1 %v7408_v1 }
 0x451   :  { %6346 = vmatpush3.msra.mxu1 %v7637_v44 }
 0x452   :  { %6361 = vmatprep.subr.mxu1 %v7408_v1 }
 0x4aa   :  { %v479_v16 = vpop.permute.xlu0 %478 }
 0x4ab   :  { %v481_v17 = vmul.f32 %v6999_v15, %v479_v16 }
 0x4ad   :  { %483 = vrot.lane.b32.xlu0 %v481_v17, %s7411_s11 }
 0x4ae   :  { %v647_v20 = vpop.permute.xlu1 %646 }
 0x4af   :  { %v649_v21 = vmul.f32 %v7001_v19, %v647_v20 }
 0x4b1   :  { %651 = vrot.lane.b32.xlu1 %v649_v21, %s7411_s11 }
 0x51f   :  { %v484_v23 = vpop.permute.xlu0 %483 }
 0x520   :  { %v7603_v24 = vadd.f32 %v484_v23, %v476_v22 }
 0x522   :  { %7002 = vtanh.f32 %v7603_v24 }
 0x523   :  { %v652_v26 = vpop.permute.xlu1 %651 }
 0x524   :  { %v7607_v27 = vadd.f32 %v652_v26, %v644_v25 }
 0x526   :  { %7004 = vtanh.f32 %v7607_v27 }
 0x52f   :  { %v7003_v43 = vpop.eup %7002 }
 0x530   :  { %489 = vrot.lane.b32.xlu0 %v7003_v43, %s7410_s10 }
 0x533   :  { %v7005_v45 = vpop.eup %7004 }
 0x534   :  { %657 = vrot.lane.b32.xlu1 %v7005_v45, %s7410_s10 }
 0x5a2   :  { %v490_v47 = vpop.permute.xlu0 %489 }
 0x5a3   :  { %v492_v48 = vmul.f32 %v6999_v15, %v490_v47 }
 0x5a5   :  { %742 = vrot.lane.b32.xlu0 %v492_v48, %s7411_s11 }
 0x5a6   :  { %v658_v50 = vpop.permute.xlu1 %657 }
 0x5a7   :  { %v660_v51 = vmul.f32 %v7001_v19, %v658_v50 }
 0x5a9   :  { %920 = vrot.lane.b32.xlu1 %v660_v51, %s7411_s11  ;;  %107 = vbcast.lane.b32.xlu0 %v105_v49, 256 }
 0x617   :  { %v743_v55 = vpop.permute.xlu0 %742 }
 0x618   :  { %6348 = vmatmul.mubr.msk.f32.vlgmr.msra.gmra.mxu1 %vm126_vm2, %v743_v55  ;;  %6359 = vmatmul.mubr.msk.f32.vlgmr.msra.gmra.mxu0 %vm126_vm2, %v743_v55 }
 0x619   :  { %6362 = vmatpush3.msra.mxu1 %v7537_v34  ;;  %6373 = vmatpush3.msra.mxu0 %v7484_v5 }
 0x61a   :  { %6363 = vmatprep.subr.mxu1 %v7408_v1  ;;  %6374 = vmatprep.subr.mxu0 %v7408_v1 }
 0x61b   :  { %6364 = vmatpush3.msra.mxu1 %v7539_v35  ;;  %6375 = vmatpush3.msra.mxu0 %v7486_v6  ;;  %v108_v57 = vpop.permute.xlu0 %107  ;;  %v921_v58 = vpop.permute.xlu1 %920 }
 0x61c   :  { %6365 = vmatprep.subr.mxu1 %v7408_v1  ;;  %6376 = vmatprep.subr.mxu0 %v7408_v1  ;;  %v118_v59 = vmul.f32 %v108_v57, %v85_v56 }
 0x61d   :  { %6366 = vmatpush3.msra.mxu1 %v7547_v37  ;;  %6377 = vmatpush3.msra.mxu0 %v7496_v9 }
 0x61e   :  { %6367 = vmatprep.subr.mxu1 %v7408_v1  ;;  %6378 = vmatprep.subr.mxu0 %v7408_v1 }
 0x61f   :  { %6368 = vmatpush3.msra.mxu1 %v7557_v39  ;;  %6369 = vmatprep.mubr.msk.f32.mxu1 %vm7409_vm0, %v7408_v1 }
 0x620   :  { %6379 = vmatpush3.msra.mxu0 %v7506_v11  ;;  %6380 = vmatprep.mubr.msk.f32.mxu0 %vm7409_vm0, %v7408_v1 }
 0x621   :  { %6370 = vmatmul.mubr.msk.f32.vlgmr.msra.gmra.mxu1 %vm126_vm2, %v921_v58  ;;  %6381 = vmatmul.mubr.msk.f32.vlgmr.msra.gmra.mxu0 %vm126_vm2, %v921_v58 }
 0x622   :  { %6383 = vmatprep.subr.mxu1 %v7408_v1  ;;  %6387 = vmatprep.mubr.msk.f32.mxu1 %vm7409_vm0, %v7408_v1 }
 0x623   :  { %6384 = vmatpush3.msra.mxu1 %v7493_v8  ;;  %6401 = vmatprep.subr.mxu0 %v7408_v1 }
 0x624   :  { %6385 = vmatprep.subr.mxu1 %v7408_v1  ;;  %6409 = vmatprep.mubr.msk.f32.mxu0 %vm7409_vm0, %v7408_v1 }
 0x625   :  { %6386 = vmatpush3.msra.mxu1 %v7502_v10 }
 0x626   :  { %6388 = vmatmul.mubr.msk.f32.vlgmr.msra.gmra.mxu1 %vm200_vm1, %v118_v59  ;;  %6390 = vmatprep.subr.mxu1 %v7408_v1 }
 0x627   :  { %6398 = vmatprep.mubr.msk.f32.mxu1 %vm7409_vm0, %v7408_v1 }
 0x6d8   :  { %v812_v60 = vpop.f32.mrf.mxu1  ;;  %v915_v62 = vpop.f32.mrf.mxu0 }
 0x6d9   :  { %v813_v63 = vadd.f32 %v812_v60, %v737_v53 }
 0x6da   :  { %v6349_v0 = vpop.f32.mrf.mxu1  ;;  %v6360_v3 = vpop.f32.mrf.mxu0 }
 0x6db   :  { %v824_v7 = vadd.f32 %v7697_v61, %v813_v63 }
 0x6dd   :  { %7006 = vtanh.f32 %v824_v7  ;;  %v5866_v43 = vmul.f32 -1.442695, %v824_v7 }
 0x6e1   :  { %v990_v12 = vpop.f32.mrf.mxu1  ;;  %v1085_v13 = vpop.f32.mrf.mxu0 }
 0x6e2   :  { %v991_v14 = vadd.f32 %v990_v12, %v915_v62 }
 0x6e3   :  { %v6371_v15 = vpop.f32.mrf.mxu1  ;;  %v6382_v16 = vpop.f32.mrf.mxu0 }
 0x6e4   :  { %v994_v17 = vadd.f32 %v7595_v52, %v991_v14 }
 0x6e6   :  { %7008 = vtanh.f32 %v994_v17  ;;  %v1158_v19 = vpop.f32.mrf.mxu1  ;;  %v5869_v45 = vmul.f32 -1.442695, %v994_v17 }
 0x6e7   :  { %v1159_v20 = vadd.f32 %v1158_v19, %v1085_v13 }
 0x6e8   :  { %v6389_v21 = vpop.f32.mrf.mxu1 }
 0x6e9   :  { %v1162_v22 = vadd.f32 %v7524_v18, %v1159_v20  ;;  %v7732_v20 = vld [vmem:[#allocation5 + $0x78] sm:$0xff]  ;;  %v7734_v21 = vld [vmem:[#allocation5 + $0x70] sm:$0xff] }
 0x6ea   :  { %v7007_v23 = vpop.eup %7006  ;;  %6391 = vmatpush3.msra.mxu1 %v7732_v20 }
 0x6eb   :  { %7010 = vtanh.f32 %v1162_v22  ;;  %834 = vrot.lane.b32.xlu1 %v7007_v23, %s7410_s10  ;;  %v5872_v46 = vmul.f32 -1.442695, %v1162_v22  ;;  %v7739_v22 = vld [vmem:[#allocation2 + $0x50] sm:$0xff]  ;;  %6392 = vmatprep.subr.mxu1 %v7408_v1  ;;  %v7748_v23 = vld [vmem:[#allocation5 + $0x60] sm:$0xff] }
 0x6ec   :  { %7012 = vpow2.f32 %v5866_v43  ;;  %6393 = vmatpush3.msra.mxu1 %v7734_v21  ;;  %v7759_v43 = vld [vmem:[#allocation2 + $0x40] sm:$0xff] }
 0x6ed   :  { %7014 = vpow2.f32 %v5869_v45  ;;  %6394 = vmatprep.subr.mxu1 %v7408_v1 }
 0x6ee   :  { %7016 = vpow2.f32 %v5872_v46 }
 0x6f3   :  { %v7009_v25 = vpop.eup %7008 }
 0x6f4   :  { %1004 = vrot.lane.b32.xlu0 %v7009_v25, %s7410_s10  ;;  %v7751_v25 = vld [vmem:[#allocation2 + $0x48] sm:$0xff] }
 0x6f8   :  { %v7011_v26 = vpop.eup %7010 }
 0x6f9   :  { %1172 = vrot.lane.b32.xlu1 %v7011_v26, %s7410_s10  ;;  %v7013_v47 = vpop.eup %7012 }
 0x6fa   :  { %v828_v48 = vadd.f32 1.0, %v7013_v47  ;;  %v7015_v49 = vpop.eup %7014 }
 0x6fb   :  { %v998_v50 = vadd.f32 1.0, %v7015_v49  ;;  %v7017_v51 = vpop.eup %7016 }
 0x6fc   :  { %7018 = vrcp.f32 %v828_v48  ;;  %v1166_v53 = vadd.f32 1.0, %v7017_v51  ;;  %v111_v48 = vsub.s32 3, %v7472_v2 }
 0x6fd   :  { %7020 = vrcp.f32 %v998_v50 }
 0x6fe   :  { %7022 = vrcp.f32 %v1166_v53  ;;  %v112_v51 = vrot.slane %v7482_v4, %v111_v48  ;;  %v86_v4 = vld [vmem:[%s8669_s0 + $0x18] sm:$0xff] }
 0x709   :  { %v7705_v54 = vpop.eup %7018 }
 0x70a   :  { %v7709_v57 = vpop.eup %7020  ;;  %v832_v0 = vmul.f32 0.0, %v7705_v54 }
 0x70b   :  { %v7713_v60 = vpop.eup %7022  ;;  %v1002_v12 = vmul.f32 %v7709_v57, %v7603_v24  ;;  %v7737_v24 = vld [vmem:[#allocation2 + $0x58] sm:$0xff] }
 0x70c   :  { %v1170_v15 = vmul.f32 %v7713_v60, %v7607_v27  ;;  %v7742_v27 = vld [vmem:[#allocation5 + $0x68] sm:$0xff]  ;;  %6402 = vmatpush3.msra.mxu0 %v7737_v24 }
 0x70d   :  { %6403 = vmatprep.subr.mxu0 %v7408_v1  ;;  %6395 = vmatpush3.msra.mxu1 %v7742_v27 }
 0x70e   :  { %6404 = vmatpush3.msra.mxu0 %v7739_v22  ;;  %6396 = vmatprep.subr.mxu1 %v7408_v1 }
 0x70f   :  { %6405 = vmatprep.subr.mxu0 %v7408_v1  ;;  %6397 = vmatpush3.msra.mxu1 %v7748_v23 }
 0x710   :  { %6406 = vmatpush3.msra.mxu0 %v7751_v25  ;;  %6412 = vmatprep.subr.mxu1 %v7408_v1 }
 0x711   :  { %6399 = vmatmul.mubr.f32.vlgmr.msra.gmra.mxu1 %v7408_v1  ;;  %6407 = vmatprep.subr.mxu0 %v7408_v1 }
 0x712   :  { %6413 = vmatpush3.msra.mxu1 %v7610_v28  ;;  %6408 = vmatpush3.msra.mxu0 %v7759_v43 }
 0x713   :  { %6414 = vmatprep.subr.mxu1 %v7408_v1  ;;  %6420 = vmatprep.mubr.msk.f32.mxu1 %vm7409_vm0, %v7408_v1 }
 0x714   :  { %6415 = vmatpush3.msra.mxu1 %v7612_v29  ;;  %6423 = vmatprep.subr.mxu0 %v7408_v1 }
 0x715   :  { %6416 = vmatprep.subr.mxu1 %v7408_v1 }
 0x716   :  { %6417 = vmatpush3.msra.mxu1 %v7620_v41 }
 0x717   :  { %6418 = vmatprep.subr.mxu1 %v7408_v1 }
 0x718   :  { %6419 = vmatpush3.msra.mxu1 %v7628_v42 }
 0x719   :  { %6434 = vmatprep.subr.mxu1 %v7408_v1 }
 0x75d   :  { %v835_v55 = vpop.permute.xlu1 %834 }
 0x75e   :  { %v837_v56 = vmul.f32 %v7705_v54, %v835_v55 }
 0x760   :  { %839 = vrot.lane.b32.xlu0 %v837_v56, %s7411_s11 }
 0x766   :  { %v1005_v58 = vpop.permute.xlu0 %1004 }
 0x767   :  { %v1007_v59 = vmul.f32 %v7709_v57, %v1005_v58 }
 0x769   :  { %1009 = vrot.lane.b32.xlu1 %v1007_v59, %s7411_s11 }
 0x76b   :  { %v1173_v62 = vpop.permute.xlu1 %1172 }
 0x76c   :  { %v1175_v63 = vmul.f32 %v7713_v60, %v1173_v62 }
 0x76e   :  { %1177 = vrot.lane.b32.xlu0 %v1175_v63, %s7411_s11 }
 0x7d1   :  { %v1263_v56 = vpop.f32.mrf.mxu1 }
 0x7d2   :  { %v840_v3 = vpop.permute.xlu0 %839 }
 0x7d3   :  { %v7718_v7 = vadd.f32 %v840_v3, %v832_v0  ;;  %v6400_v58 = vpop.f32.mrf.mxu1 }
 0x7d5   :  { %7024 = vtanh.f32 %v7718_v7 }
 0x7db   :  { %v1010_v13 = vpop.permute.xlu1 %1009 }
 0x7dc   :  { %v7723_v14 = vadd.f32 %v1010_v13, %v1002_v12 }
 0x7de   :  { %7026 = vtanh.f32 %v7723_v14 }
 0x7e0   :  { %v1178_v16 = vpop.permute.xlu0 %1177 }
 0x7e1   :  { %v7728_v17 = vadd.f32 %v1178_v16, %v1170_v15 }
 0x7e2   :  { %v7025_v19 = vpop.eup %7024 }
 0x7e3   :  { %7028 = vtanh.f32 %v7728_v17  ;;  %845 = vrot.lane.b32.xlu1 %v7025_v19, %s7410_s10 }
 0x7eb   :  { %v7027_v26 = vpop.eup %7026 }
 0x7ec   :  { %1015 = vrot.lane.b32.xlu0 %v7027_v26, %s7410_s10 }
 0x7f0   :  { %v7029_v45 = vpop.eup %7028 }
 0x7f1   :  { %1183 = vrot.lane.b32.xlu1 %v7029_v45, %s7410_s10 }
 0x855   :  { %v846_v46 = vpop.permute.xlu1 %845 }
 0x856   :  { %v848_v47 = vmul.f32 %v7705_v54, %v846_v46 }
 0x858   :  { %1268 = vrot.lane.b32.xlu0 %v848_v47, %s7411_s11 }
 0x85e   :  { %v1016_v49 = vpop.permute.xlu0 %1015 }
 0x85f   :  { %v1018_v50 = vmul.f32 %v7709_v57, %v1016_v49 }
 0x861   :  { %1446 = vrot.lane.b32.xlu1 %v1018_v50, %s7411_s11 }
 0x863   :  { %v1184_v53 = vpop.permute.xlu1 %1183 }
 0x864   :  { %v1186_v55 = vmul.f32 %v7713_v60, %v1184_v53 }
 0x865   :  { %114 = vbcast.lane.b32.xlu1 %v112_v51, 256 }
 0x866   :  { %1616 = vrot.lane.b32.xlu0 %v1186_v55, %s7411_s11 }
 0x8ca   :  { %v1269_v54 = vpop.permute.xlu0 %1268 }
 0x8cb   :  { %6410 = vmatmul.mubr.msk.f32.vlgmr.msra.gmra.mxu0 %vm126_vm2, %v1269_v54  ;;  %6421 = vmatmul.mubr.msk.f32.vlgmr.msra.gmra.mxu1 %vm126_vm2, %v1269_v54 }
 0x8cc   :  { %6424 = vmatpush3.msra.mxu0 %v7615_v30  ;;  %6435 = vmatpush3.msra.mxu1 %v7532_v32  ;;  %v7845_v32 = vld [vmem:[#allocation7 + $0x3] ss:$0 sm:$0xff] }
 0x8cd   :  { %6425 = vmatprep.subr.mxu0 %v7408_v1  ;;  %6436 = vmatprep.subr.mxu1 %v7408_v1 }
 0x8ce   :  { %6426 = vmatpush3.msra.mxu0 %v7617_v40  ;;  %6437 = vmatpush3.msra.mxu1 %v7534_v33 }
 0x8cf   :  { %6427 = vmatprep.subr.mxu0 %v7408_v1  ;;  %6438 = vmatprep.subr.mxu1 %v7408_v1 }
 0x8d0   :  { %6428 = vmatpush3.msra.mxu0 %v7625_v31  ;;  %6439 = vmatpush3.msra.mxu1 %v7542_v36 }
 0x8d1   :  { %6429 = vmatprep.subr.mxu0 %v7408_v1  ;;  %6440 = vmatprep.subr.mxu1 %v7408_v1 }
 0x8d2   :  { %6430 = vmatpush3.msra.mxu0 %v7637_v44  ;;  %6431 = vmatprep.mubr.msk.f32.mxu0 %vm7409_vm0, %v7408_v1 }
 0x8d3   :  { %6441 = vmatpush3.msra.mxu1 %v7550_v38  ;;  %6442 = vmatprep.mubr.msk.f32.mxu1 %vm7409_vm0, %v7408_v1  ;;  %v1447_v2 = vpop.permute.xlu1 %1446 }
 0x8d4   :  { %6432 = vmatmul.mubr.msk.f32.vlgmr.msra.gmra.mxu0 %vm126_vm2, %v1447_v2  ;;  %6443 = vmatmul.mubr.msk.f32.vlgmr.msra.gmra.mxu1 %vm126_vm2, %v1447_v2 }
 0x8d5   :  { %6445 = vmatprep.subr.mxu0 %v7408_v1  ;;  %6456 = vmatprep.subr.mxu1 %v7408_v1 }
 0x8d6   :  { %6446 = vmatpush3.msra.mxu0 %v7537_v34  ;;  %6457 = vmatpush3.msra.mxu1 %v7484_v5 }
 0x8d7   :  { %6447 = vmatprep.subr.mxu0 %v7408_v1  ;;  %6458 = vmatprep.subr.mxu1 %v7408_v1  ;;  %v115_v5 = vpop.permute.xlu1 %114 }
 0x8d8   :  { %6448 = vmatpush3.msra.mxu0 %v7539_v35  ;;  %6459 = vmatpush3.msra.mxu1 %v7486_v6  ;;  %v1617_v6 = vpop.permute.xlu0 %1616 }
 0x8d9   :  { %6449 = vmatprep.subr.mxu0 %v7408_v1  ;;  %6460 = vmatprep.subr.mxu1 %v7408_v1 }
 0x8da   :  { %6450 = vmatpush3.msra.mxu0 %v7547_v37  ;;  %6461 = vmatpush3.msra.mxu1 %v7496_v9  ;;  %v119_v9 = vmul.f32 %v115_v5, %v86_v4 }
 0x8db   :  { %6451 = vmatprep.subr.mxu0 %v7408_v1  ;;  %6462 = vmatprep.subr.mxu1 %v7408_v1 }
 0x8dc   :  { %6452 = vmatpush3.msra.mxu0 %v7557_v39  ;;  %6453 = vmatprep.mubr.msk.f32.mxu0 %vm7409_vm0, %v7408_v1 }
 0x8dd   :  { %6463 = vmatpush3.msra.mxu1 %v7506_v11  ;;  %6464 = vmatprep.mubr.msk.f32.mxu1 %vm7409_vm0, %v7408_v1 }
 0x8de   :  { %6454 = vmatmul.mubr.msk.f32.vlgmr.msra.gmra.mxu0 %vm126_vm2, %v1617_v6  ;;  %6465 = vmatmul.mubr.msk.f32.vlgmr.msra.gmra.mxu1 %vm126_vm2, %v1617_v6 }
 0x8df   :  { %6467 = vmatprep.subr.mxu0 %v7408_v1  ;;  %6471 = vmatprep.mubr.msk.f32.mxu0 %vm7409_vm0, %v7408_v1 }
 0x8e0   :  { %6468 = vmatpush3.msra.mxu0 %v7493_v8  ;;  %6485 = vmatprep.subr.mxu1 %v7408_v1 }
 0x8e1   :  { %6469 = vmatprep.subr.mxu0 %v7408_v1  ;;  %6493 = vmatprep.mubr.msk.f32.mxu1 %vm7409_vm0, %v7408_v1 }
 0x8e2   :  { %6470 = vmatpush3.msra.mxu0 %v7502_v10 }
 0x8e3   :  { %6472 = vmatmul.mubr.msk.f32.vlgmr.msra.gmra.mxu0 %vm200_vm1, %v119_v9  ;;  %6474 = vmatprep.subr.mxu0 %v7408_v1 }
 0x8e4   :  { %6482 = vmatprep.mubr.msk.f32.mxu0 %vm7409_vm0, %v7408_v1 }
 0x98b   :  { %v1338_v11 = vpop.f32.mrf.mxu0  ;;  %v1441_v8 = vpop.f32.mrf.mxu1 }
 0x98c   :  { %v1339_v33 = vadd.f32 %v1338_v11, %v1263_v56 }
 0x98d   :  { %v6411_v34 = vpop.f32.mrf.mxu0  ;;  %v6422_v35 = vpop.f32.mrf.mxu1 }
 0x98e   :  { %v1350_v36 = vadd.f32 %v7845_v32, %v1339_v33 }
 0x990   :  { %7030 = vtanh.f32 %v1350_v36  ;;  %v5875_v48 = vmul.f32 -1.442695, %v1350_v36 }
 0x994   :  { %v1516_v37 = vpop.f32.mrf.mxu0  ;;  %v1611_v38 = vpop.f32.mrf.mxu1 }
 0x995   :  { %v1517_v10 = vadd.f32 %v1516_v37, %v1441_v8 }
 0x996   :  { %v6433_v39 = vpop.f32.mrf.mxu0  ;;  %v6444_v57 = vpop.f32.mrf.mxu1 }
 0x997   :  { %v1520_v59 = vadd.f32 %v7697_v61, %v1517_v10 }
 0x999   :  { %7032 = vtanh.f32 %v1520_v59  ;;  %v5878_v49 = vmul.f32 -1.442695, %v1520_v59 }
 0x99d   :  { %v7031_v60 = vpop.eup %7030 }
 0x99e   :  { %v1686_v62 = vpop.f32.mrf.mxu0  ;;  %v1781_v63 = vpop.f32.mrf.mxu1  ;;  %1360 = vrot.lane.b32.xlu0 %v7031_v60, %s7410_s10 }
 0x99f   :  { %v1687_v0 = vadd.f32 %v1686_v62, %v1611_v38 }
 0x9a0   :  { %v6455_v3 = vpop.f32.mrf.mxu0  ;;  %v6466_v12 = vpop.f32.mrf.mxu1 }
 0x9a1   :  { %v1690_v13 = vadd.f32 %v7595_v52, %v1687_v0 }
 0x9a3   :  { %7034 = vtanh.f32 %v1690_v13  ;;  %v1854_v15 = vpop.f32.mrf.mxu0  ;;  %v5881_v50 = vmul.f32 -1.442695, %v1690_v13 }
 0x9a4   :  { %v1855_v16 = vadd.f32 %v1854_v15, %v1781_v63 }
 0x9a5   :  { %v6473_v19 = vpop.f32.mrf.mxu0 }
 0x9a6   :  { %v7033_v26 = vpop.eup %7032  ;;  %v1858_v45 = vadd.f32 %v7524_v18, %v1855_v16  ;;  %v7889_v19 = vld [vmem:[#allocation5 + $0x98] sm:$0xff] }
 0x9a7   :  { %1530 = vrot.lane.b32.xlu1 %v7033_v26, %s7410_s10  ;;  %v7891_v26 = vld [vmem:[#allocation5 + $0x90] sm:$0xff]  ;;  %6475 = vmatpush3.msra.mxu0 %v7889_v19 }
 0x9a8   :  { %7036 = vtanh.f32 %v1858_v45  ;;  %v5884_v53 = vmul.f32 -1.442695, %v1858_v45  ;;  %v7896_v45 = vld [vmem:[#allocation2 + $0x70] sm:$0xff]  ;;  %6476 = vmatprep.subr.mxu0 %v7408_v1 }
 0x9a9   :  { %7038 = vpow2.f32 %v5875_v48  ;;  %6477 = vmatpush3.msra.mxu0 %v7891_v26 }
 0x9aa   :  { %7040 = vpow2.f32 %v5878_v49  ;;  %6478 = vmatprep.subr.mxu0 %v7408_v1  ;;  %v7916_v49 = vld [vmem:[#allocation2 + $0x60] sm:$0xff] }
 0x9ab   :  { %7042 = vpow2.f32 %v5881_v50 }
 0x9b0   :  { %v7035_v46 = vpop.eup %7034 }
 0x9b1   :  { %1700 = vrot.lane.b32.xlu0 %v7035_v46, %s7410_s10  ;;  %v7899_v46 = vld [vmem:[#allocation5 + $0x88] sm:$0xff] }
 0x9b2   :  { %6479 = vmatpush3.msra.mxu0 %v7899_v46 }
 0x9b3   :  { %6480 = vmatprep.subr.mxu0 %v7408_v1 }
 0x9b5   :  { %v7037_v47 = vpop.eup %7036 }
 0x9b6   :  { %1868 = vrot.lane.b32.xlu1 %v7037_v47, %s7410_s10  ;;  %v7039_v52 = vpop.eup %7038  ;;  %v7908_v47 = vld [vmem:[#allocation2 + $0x68] sm:$0xff] }
 0x9b7   :  { %v1354_v51 = vadd.f32 1.0, %v7039_v52  ;;  %v7041_v18 = vpop.eup %7040 }
 0x9b8   :  { %v1524_v55 = vadd.f32 1.0, %v7041_v18  ;;  %v7043_v56 = vpop.eup %7042 }
 0x9b9   :  { %7044 = vrcp.f32 %v1354_v51  ;;  %v1694_v4 = vadd.f32 1.0, %v7043_v56 }
 0x9ba   :  { %7046 = vpow2.f32 %v5884_v53 }
 0x9bb   :  { %7048 = vrcp.f32 %v1524_v55 }
 0x9bc   :  { %7050 = vrcp.f32 %v1694_v4 }
 0x9c6   :  { %v7855_v58 = vpop.eup %7044 }
 0x9c7   :  { %v7047_v5 = vpop.eup %7046  ;;  %v1358_v10 = vmul.f32 0.0, %v7855_v58 }
 0x9c8   :  { %v1862_v6 = vadd.f32 1.0, %v7047_v5  ;;  %v7859_v9 = vpop.eup %7048 }
 0x9c9   :  { %v7863_v33 = vpop.eup %7050  ;;  %v1528_v59 = vmul.f32 %v7859_v9, %v7718_v7 }
 0x9ca   :  { %7052 = vrcp.f32 %v1862_v6  ;;  %v1698_v0 = vmul.f32 %v7863_v33, %v7723_v14  ;;  %v7894_v14 = vld [vmem:[#allocation2 + $0x78] sm:$0xff]  ;;  %v7244_v6 = vld [vmem:[#allocation2 + $0x8] sm:$0xff] }
 0x9cb   :  { %6486 = vmatpush3.msra.mxu1 %v7894_v14 }
 0x9cc   :  { %6487 = vmatprep.subr.mxu1 %v7408_v1 }
 0x9cd   :  { %6488 = vmatpush3.msra.mxu1 %v7896_v45 }
 0x9ce   :  { %6489 = vmatprep.subr.mxu1 %v7408_v1 }
 0x9cf   :  { %6490 = vmatpush3.msra.mxu1 %v7908_v47 }
 0x9d0   :  { %6491 = vmatprep.subr.mxu1 %v7408_v1 }
 0x9d1   :  { %6492 = vmatpush3.msra.mxu1 %v7916_v49 }
 0x9d2   :  { %6507 = vmatprep.subr.mxu1 %v7408_v1 }
 0x9d7   :  { %v7867_v36 = vpop.eup %7052 }
 0x9d8   :  { %v1866_v13 = vmul.f32 %v7867_v36, %v7728_v17  ;;  %v7905_v17 = vld [vmem:[#allocation5 + $0x80] sm:$0xff] }
 0x9d9   :  { %6481 = vmatpush3.msra.mxu0 %v7905_v17 }
 0x9da   :  { %6496 = vmatprep.subr.mxu0 %v7408_v1  ;;  %6483 = vmatmul.mubr.f32.vlgmr.msra.gmra.mxu0 %v7408_v1 }
 0x9db   :  { %6497 = vmatpush3.msra.mxu0 %v7732_v20  ;;  %6504 = vmatprep.mubr.msk.f32.mxu0 %vm7409_vm0, %v7408_v1 }
 0x9dc   :  { %6498 = vmatprep.subr.mxu0 %v7408_v1 }
 0x9dd   :  { %6499 = vmatpush3.msra.mxu0 %v7734_v21 }
 0x9de   :  { %6500 = vmatprep.subr.mxu0 %v7408_v1 }
 0x9df   :  { %6501 = vmatpush3.msra.mxu0 %v7742_v27 }
 0x9e0   :  { %6502 = vmatprep.subr.mxu0 %v7408_v1 }
 0x9e1   :  { %6503 = vmatpush3.msra.mxu0 %v7748_v23 }
 0x9e2   :  { %6518 = vmatprep.subr.mxu0 %v7408_v1 }
 0xa10   :  { %v1361_v54 = vpop.permute.xlu0 %1360 }
 0xa11   :  { %v1363_v2 = vmul.f32 %v7855_v58, %v1361_v54 }
 0xa13   :  { %1365 = vrot.lane.b32.xlu0 %v1363_v2, %s7411_s11 }
 0xa19   :  { %v1531_v11 = vpop.permute.xlu1 %1530 }
 0xa1a   :  { %v1533_v8 = vmul.f32 %v7859_v9, %v1531_v11  ;;  %v7245_v11 = vld [vmem:[#allocation2] sm:$0xff] }
 0xa1c   :  { %1535 = vrot.lane.b32.xlu1 %v1533_v8, %s7411_s11 }
 0xa23   :  { %v1701_v34 = vpop.permute.xlu0 %1700 }
 0xa24   :  { %v1703_v35 = vmul.f32 %v7863_v33, %v1701_v34 }
 0xa26   :  { %1705 = vrot.lane.b32.xlu0 %v1703_v35, %s7411_s11 }
 0xa28   :  { %v1869_v37 = vpop.permute.xlu1 %1868 }
 0xa29   :  { %v1871_v38 = vmul.f32 %v7867_v36, %v1869_v37 }
 0xa2b   :  { %1873 = vrot.lane.b32.xlu1 %v1871_v38, %s7411_s11 }
 0xa85   :  { %v1366_v39 = vpop.permute.xlu0 %1365 }
 0xa86   :  { %v7872_v57 = vadd.f32 %v1366_v39, %v1358_v10 }
 0xa88   :  { %7054 = vtanh.f32 %v7872_v57 }
 0xa8e   :  { %v1536_v60 = vpop.permute.xlu1 %1535 }
 0xa8f   :  { %v7877_v62 = vadd.f32 %v1536_v60, %v1528_v59 }
 0xa91   :  { %7056 = vtanh.f32 %v7877_v62 }
 0xa95   :  { %v7055_v63 = vpop.eup %7054 }
 0xa96   :  { %1371 = vrot.lane.b32.xlu0 %v7055_v63, %s7410_s10 }
 0xa98   :  { %v1706_v3 = vpop.permute.xlu0 %1705 }
 0xa99   :  { %v7883_v12 = vadd.f32 %v1706_v3, %v1698_v0 }
 0xa9a   :  { %v7942_v4 = vpop.f32.mrf.mxu0 }
 0xa9b   :  { %7058 = vtanh.f32 %v7883_v12 }
 0xa9d   :  { %v1874_v7 = vpop.permute.xlu1 %1873 }
 0xa9e   :  { %v7057_v15 = vpop.eup %7056  ;;  %v1876_v16 = vadd.f32 %v1874_v7, %v1866_v13 }
 0xa9f   :  { %1541 = vrot.lane.b32.xlu1 %v7057_v15, %s7410_s10 }
 0xaa0   :  { %7060 = vtanh.f32 %v1876_v16 }
 0xaa8   :  { %v7059_v48 = vpop.eup %7058 }
 0xaa9   :  { %1711 = vrot.lane.b32.xlu0 %v7059_v48, %s7410_s10 }
 0xaad   :  { %v7061_v52 = vpop.eup %7060 }
 0xaae   :  { %1879 = vrot.lane.b32.xlu1 %v7061_v52, %s7410_s10 }
 0xb08   :  { %v1372_v50 = vpop.permute.xlu0 %1371 }
 0xb09   :  { %v1374_v51 = vmul.f32 %v7855_v58, %v1372_v50  ;;  %v6484_v58 = vpop.f32.mrf.mxu0 }
 0xb0b   :  { %1964 = vrot.lane.b32.xlu0 %v1374_v51, %s7411_s11 }
 0xb11   :  { %v1542_v53 = vpop.permute.xlu1 %1541 }
 0xb12   :  { %v1544_v18 = vmul.f32 %v7859_v9, %v1542_v53 }
 0xb14   :  { %2142 = vrot.lane.b32.xlu1 %v1544_v18, %s7411_s11 }
 0xb1b   :  { %v1712_v55 = vpop.permute.xlu0 %1711 }
 0xb1c   :  { %v1714_v56 = vmul.f32 %v7863_v33, %v1712_v55  ;;  %v7997_v33 = vld [vmem:[#allocation7 + $0x4] ss:$0 sm:$0xff]  ;;  %v7246_v55 = vld [vmem:[#allocation7 + $0x1] ss:$0 sm:$0xff] }
 0xb1e   :  { %2312 = vrot.lane.b32.xlu0 %v1714_v56, %s7411_s11 }
 0xb20   :  { %v1880_v54 = vpop.permute.xlu1 %1879 }
 0xb21   :  { %v1882_v2 = vmul.f32 %v7867_v36, %v1880_v54 }
 0xb23   :  { %2482 = vrot.lane.b32.xlu1 %v1882_v2, %s7411_s11 }
 0xb7d   :  { %v1965_v5 = vpop.permute.xlu0 %1964 }
 0xb7e   :  { %6494 = vmatmul.mubr.msk.f32.vlgmr.msra.gmra.mxu1 %vm126_vm2, %v1965_v5  ;;  %6505 = vmatmul.mubr.msk.f32.vlgmr.msra.gmra.mxu0 %vm126_vm2, %v1965_v5 }
 0xb7f   :  { %6508 = vmatpush3.msra.mxu1 %v7737_v24  ;;  %6519 = vmatpush3.msra.mxu0 %v7610_v28 }
 0xb80   :  { %6509 = vmatprep.subr.mxu1 %v7408_v1  ;;  %6520 = vmatprep.subr.mxu0 %v7408_v1 }
 0xb81   :  { %6510 = vmatpush3.msra.mxu1 %v7739_v22  ;;  %6521 = vmatpush3.msra.mxu0 %v7612_v29  ;;  %v7238_v29 = vld [vmem:[#allocation5 + $0x38] sm:$0xff] }
 0xb82   :  { %6511 = vmatprep.subr.mxu1 %v7408_v1  ;;  %6522 = vmatprep.subr.mxu0 %v7408_v1 }
 0xb83   :  { %6512 = vmatpush3.msra.mxu1 %v7751_v25  ;;  %6523 = vmatpush3.msra.mxu0 %v7620_v41  ;;  %v7239_v41 = vld [vmem:[#allocation5 + $0x30] sm:$0xff] }
 0xb84   :  { %6513 = vmatprep.subr.mxu1 %v7408_v1  ;;  %6524 = vmatprep.subr.mxu0 %v7408_v1 }
 0xb85   :  { %6514 = vmatpush3.msra.mxu1 %v7759_v43  ;;  %6515 = vmatprep.mubr.msk.f32.mxu1 %vm7409_vm0, %v7408_v1 }
 0xb86   :  { %6525 = vmatpush3.msra.mxu0 %v7628_v42  ;;  %6526 = vmatprep.mubr.msk.f32.mxu0 %vm7409_vm0, %v7408_v1  ;;  %v2143_v28 = vpop.permute.xlu1 %2142  ;;  %v7240_v42 = vld [vmem:[#allocation5 + $0x28] sm:$0xff] }
 0xb87   :  { %6516 = vmatmul.mubr.msk.f32.vlgmr.msra.gmra.mxu1 %vm126_vm2, %v2143_v28  ;;  %6527 = vmatmul.mubr.msk.f32.vlgmr.msra.gmra.mxu0 %vm126_vm2, %v2143_v28 }
 0xb88   :  { %6529 = vmatprep.subr.mxu1 %v7408_v1  ;;  %6540 = vmatprep.subr.mxu0 %v7408_v1 }
 0xb89   :  { %6530 = vmatpush3.msra.mxu1 %v7615_v30  ;;  %6541 = vmatpush3.msra.mxu0 %v7238_v29 }
 0xb8a   :  { %6531 = vmatprep.subr.mxu1 %v7408_v1  ;;  %6542 = vmatprep.subr.mxu0 %v7408_v1 }
 0xb8b   :  { %6532 = vmatpush3.msra.mxu1 %v7617_v40  ;;  %6543 = vmatpush3.msra.mxu0 %v7239_v41  ;;  %v7241_v40 = vld [vmem:[#allocation5 + $0x20] sm:$0xff] }
 0xb8c   :  { %6533 = vmatprep.subr.mxu1 %v7408_v1  ;;  %6544 = vmatprep.subr.mxu0 %v7408_v1 }
 0xb8d   :  { %6534 = vmatpush3.msra.mxu1 %v7625_v31  ;;  %6545 = vmatpush3.msra.mxu0 %v7240_v42  ;;  %v7242_v31 = vld [vmem:[#allocation2 + $0x18] sm:$0xff] }
 0xb8e   :  { %6535 = vmatprep.subr.mxu1 %v7408_v1  ;;  %6546 = vmatprep.subr.mxu0 %v7408_v1 }
 0xb8f   :  { %6536 = vmatpush3.msra.mxu1 %v7637_v44  ;;  %6537 = vmatprep.mubr.msk.f32.mxu1 %vm7409_vm0, %v7408_v1  ;;  %v7243_v44 = vld [vmem:[#allocation2 + $0x10] sm:$0xff] }
 0xb90   :  { %v2313_v30 = vpop.permute.xlu0 %2312  ;;  %6547 = vmatpush3.msra.mxu0 %v7241_v40  ;;  %6548 = vmatprep.mubr.msk.f32.mxu0 %vm7409_vm0, %v7408_v1 }
 0xb91   :  { %6538 = vmatmul.mubr.msk.f32.vlgmr.msra.gmra.mxu1 %vm126_vm2, %v2313_v30  ;;  %6549 = vmatmul.mubr.msk.f32.vlgmr.msra.gmra.mxu0 %vm126_vm2, %v2313_v30 }
 0xb92   :  { %6551 = vmatprep.subr.mxu1 %v7408_v1  ;;  %6559 = vmatprep.mubr.msk.f32.mxu1 %vm7409_vm0, %v7408_v1 }
 0xb93   :  { %6552 = vmatpush3.msra.mxu1 %v7242_v31  ;;  %6562 = vmatprep.subr.mxu0 %v7408_v1 }
 0xb94   :  { %6553 = vmatprep.subr.mxu1 %v7408_v1  ;;  %6570 = vmatprep.mubr.msk.f32.mxu0 %vm7409_vm0, %v7408_v1 }
 0xb95   :  { %6554 = vmatpush3.msra.mxu1 %v7243_v44  ;;  %v2483_v9 = vpop.permute.xlu1 %2482 }
 0xb96   :  { %6555 = vmatprep.subr.mxu1 %v7408_v1 }
 0xb97   :  { %6556 = vmatpush3.msra.mxu1 %v7244_v6 }
 0xb98   :  { %6557 = vmatprep.subr.mxu1 %v7408_v1 }
 0xb99   :  { %6558 = vmatpush3.msra.mxu1 %v7245_v11 }
 0xb9a   :  { %6560 = vmatmul.mubr.msk.f32.vlgmr.msra.gmra.mxu1 %vm126_vm2, %v2483_v9  ;;  %6573 = vmatprep.subr.mxu1 %v7408_v1 }
 0xb9b   :  { %6581 = vmatprep.mubr.msk.f32.mxu1 %vm7409_vm0, %v7408_v1 }
 0xc3e   :  { %v2034_v8 = vpop.f32.mrf.mxu1  ;;  %v2137_v34 = vpop.f32.mrf.mxu0 }
 0xc3f   :  { %v2035_v35 = vadd.f32 %v2034_v8, %v7942_v4 }
 0xc40   :  { %v6495_v36 = vpop.f32.mrf.mxu1  ;;  %v6506_v37 = vpop.f32.mrf.mxu0 }
 0xc41   :  { %v2046_v38 = vadd.f32 %v7997_v33, %v2035_v35 }
 0xc43   :  { %7062 = vtanh.f32 %v2046_v38  ;;  %v5887_v4 = vmul.f32 -1.442695, %v2046_v38 }
 0xc47   :  { %v2212_v10 = vpop.f32.mrf.mxu1  ;;  %v2307_v39 = vpop.f32.mrf.mxu0 }
 0xc48   :  { %v2213_v59 = vadd.f32 %v2212_v10, %v2137_v34 }
 0xc49   :  { %v6517_v60 = vpop.f32.mrf.mxu1  ;;  %v6528_v63 = vpop.f32.mrf.mxu0 }
 0xc4a   :  { %v2216_v0 = vadd.f32 %v7845_v32, %v2213_v59 }
 0xc4c   :  { %7064 = vtanh.f32 %v2216_v0  ;;  %v5890_v58 = vmul.f32 -1.442695, %v2216_v0 }
 0xc50   :  { %v7063_v3 = vpop.eup %7062 }
 0xc51   :  { %v2382_v13 = vpop.f32.mrf.mxu1  ;;  %v2477_v7 = vpop.f32.mrf.mxu0  ;;  %2056 = vrot.lane.b32.xlu0 %v7063_v3, %s7410_s10 }
 0xc52   :  { %v2383_v15 = vadd.f32 %v2382_v13, %v2307_v39 }
 0xc53   :  { %v6539_v16 = vpop.f32.mrf.mxu1  ;;  %v6550_v48 = vpop.f32.mrf.mxu0 }
 0xc54   :  { %v2386_v52 = vadd.f32 %v7697_v61, %v2383_v15 }
 0xc56   :  { %7066 = vtanh.f32 %v2386_v52  ;;  %v5893_v5 = vmul.f32 -1.442695, %v2386_v52 }
 0xc59   :  { %v7065_v50 = vpop.eup %7064 }
 0xc5a   :  { %v2552_v51 = vpop.f32.mrf.mxu1  ;;  %2226 = vrot.lane.b32.xlu1 %v7065_v50, %s7410_s10 }
 0xc5b   :  { %v2553_v53 = vadd.f32 %v2552_v51, %v2477_v7 }
 0xc5c   :  { %v6561_v18 = vpop.f32.mrf.mxu1 }
 0xc5d   :  { %v2556_v56 = vadd.f32 %v7246_v55, %v2553_v53  ;;  %v8041_v18 = vld [vmem:[#allocation5 + $0xb8] sm:$0xff]  ;;  %v8043_v55 = vld [vmem:[#allocation5 + $0xb0] sm:$0xff] }
 0xc5e   :  { %6563 = vmatpush3.msra.mxu0 %v8041_v18 }
 0xc5f   :  { %7068 = vtanh.f32 %v2556_v56  ;;  %v5896_v41 = vmul.f32 -1.442695, %v2556_v56  ;;  %6564 = vmatprep.subr.mxu0 %v7408_v1 }
 0xc60   :  { %7070 = vpow2.f32 %v5887_v4  ;;  %6565 = vmatpush3.msra.mxu0 %v8043_v55  ;;  %v8060_v4 = vld [vmem:[#allocation2 + $0x88] sm:$0xff] }
 0xc61   :  { %7072 = vpow2.f32 %v5890_v58  ;;  %6566 = vmatprep.subr.mxu0 %v7408_v1  ;;  %v8068_v58 = vld [vmem:[#allocation2 + $0x80] sm:$0xff] }
 0xc62   :  { %7074 = vpow2.f32 %v5893_v5 }
 0xc63   :  { %v7067_v54 = vpop.eup %7066 }
 0xc64   :  { %2396 = vrot.lane.b32.xlu0 %v7067_v54, %s7410_s10  ;;  %v8050_v54 = vld [vmem:[#allocation5 + $0xa8] sm:$0xff] }
 0xc65   :  { %6567 = vmatpush3.msra.mxu0 %v8050_v54 }
 0xc66   :  { %6568 = vmatprep.subr.mxu0 %v7408_v1 }
 0xc6c   :  { %v7069_v2 = vpop.eup %7068 }
 0xc6d   :  { %2566 = vrot.lane.b32.xlu1 %v7069_v2, %s7410_s10  ;;  %v7071_v61 = vpop.eup %7070  ;;  %v8052_v2 = vld [vmem:[#allocation2 + $0x90] sm:$0xff] }
 0xc6e   :  { %v2050_v28 = vadd.f32 1.0, %v7071_v61  ;;  %v7073_v29 = vpop.eup %7072 }
 0xc6f   :  { %v2220_v42 = vadd.f32 1.0, %v7073_v29  ;;  %v7075_v30 = vpop.eup %7074 }
 0xc70   :  { %7076 = vrcp.f32 %v2050_v28  ;;  %v2390_v6 = vadd.f32 1.0, %v7075_v30 }
 0xc71   :  { %7078 = vpow2.f32 %v5896_v41 }
 0xc72   :  { %7080 = vrcp.f32 %v2220_v42 }
 0xc73   :  { %7082 = vrcp.f32 %v2390_v6 }
 0xc7d   :  { %v8007_v40 = vpop.eup %7076 }
 0xc7e   :  { %v7079_v9 = vpop.eup %7078  ;;  %v2054_v60 = vmul.f32 0.0, %v8007_v40 }
 0xc7f   :  { %v8011_v11 = vpop.eup %7080  ;;  %v2560_v35 = vadd.f32 1.0, %v7079_v9 }
 0xc80   :  { %v8015_v36 = vpop.eup %7082  ;;  %v2224_v3 = vmul.f32 %v8011_v11, %v7872_v57 }
 0xc81   :  { %7084 = vrcp.f32 %v2560_v35  ;;  %v2394_v16 = vmul.f32 %v8015_v36, %v7877_v62  ;;  %v8046_v62 = vld [vmem:[#allocation2 + $0x98] sm:$0xff] }
 0xc82   :  { %6574 = vmatpush3.msra.mxu1 %v8046_v62 }
 0xc83   :  { %6575 = vmatprep.subr.mxu1 %v7408_v1 }
 0xc84   :  { %6576 = vmatpush3.msra.mxu1 %v8052_v2 }
 0xc85   :  { %6577 = vmatprep.subr.mxu1 %v7408_v1 }
 0xc86   :  { %6578 = vmatpush3.msra.mxu1 %v8060_v4 }
 0xc87   :  { %6579 = vmatprep.subr.mxu1 %v7408_v1 }
 0xc88   :  { %6580 = vmatpush3.msra.mxu1 %v8068_v58 }
 0xc89   :  { %6595 = vmatprep.subr.mxu1 %v7408_v1 }
 0xc8e   :  { %v8019_v10 = vpop.eup %7084 }
 0xc8f   :  { %v2564_v57 = vmul.f32 %v8019_v10, %v7883_v12  ;;  %v8057_v12 = vld [vmem:[#allocation5 + $0xa0] sm:$0xff] }
 0xc90   :  { %6569 = vmatpush3.msra.mxu0 %v8057_v12 }
 0xc91   :  { %6584 = vmatprep.subr.mxu0 %v7408_v1  ;;  %6571 = vmatmul.mubr.f32.vlgmr.msra.gmra.mxu0 %v7408_v1 }
 0xc92   :  { %6585 = vmatpush3.msra.mxu0 %v7889_v19  ;;  %6592 = vmatprep.mubr.msk.f32.mxu0 %vm7409_vm0, %v7408_v1 }
 0xc93   :  { %6586 = vmatprep.subr.mxu0 %v7408_v1 }
 0xc94   :  { %6587 = vmatpush3.msra.mxu0 %v7891_v26 }
 0xc95   :  { %6588 = vmatprep.subr.mxu0 %v7408_v1 }
 0xc96   :  { %6589 = vmatpush3.msra.mxu0 %v7899_v46 }
 0xc97   :  { %6590 = vmatprep.subr.mxu0 %v7408_v1 }
 0xc98   :  { %6591 = vmatpush3.msra.mxu0 %v7905_v17 }
 0xc99   :  { %6606 = vmatprep.subr.mxu0 %v7408_v1 }
 0xcc3   :  { %v2057_v31 = vpop.permute.xlu0 %2056 }
 0xcc4   :  { %v2059_v44 = vmul.f32 %v8007_v40, %v2057_v31 }
 0xcc6   :  { %2061 = vrot.lane.b32.xlu0 %v2059_v44, %s7411_s11 }
 0xccc   :  { %v2227_v8 = vpop.permute.xlu1 %2226 }
 0xccd   :  { %v2229_v34 = vmul.f32 %v8011_v11, %v2227_v8  ;;  %v7254_v8 = vld [vmem:[#allocation2 + $0x20] sm:$0xff] }
 0xccf   :  { %2231 = vrot.lane.b32.xlu1 %v2229_v34, %s7411_s11 }
 0xcd6   :  { %v2397_v37 = vpop.permute.xlu0 %2396 }
 0xcd7   :  { %v2399_v38 = vmul.f32 %v8015_v36, %v2397_v37 }
 0xcd9   :  { %2401 = vrot.lane.b32.xlu0 %v2399_v38, %s7411_s11 }
 0xcdf   :  { %v2567_v39 = vpop.permute.xlu1 %2566 }
 0xce0   :  { %v2569_v59 = vmul.f32 %v8019_v10, %v2567_v39 }
 0xce2   :  { %2571 = vrot.lane.b32.xlu1 %v2569_v59, %s7411_s11 }
 0xd38   :  { %v2062_v63 = vpop.permute.xlu0 %2061 }
 0xd39   :  { %v8024_v0 = vadd.f32 %v2062_v63, %v2054_v60 }
 0xd3b   :  { %7086 = vtanh.f32 %v8024_v0 }
 0xd41   :  { %v2232_v13 = vpop.permute.xlu1 %2231 }
 0xd42   :  { %v8029_v7 = vadd.f32 %v2232_v13, %v2224_v3 }
 0xd44   :  { %7088 = vtanh.f32 %v8029_v7 }
 0xd48   :  { %v7087_v15 = vpop.eup %7086 }
 0xd49   :  { %2067 = vrot.lane.b32.xlu0 %v7087_v15, %s7410_s10 }
 0xd4b   :  { %v2402_v48 = vpop.permute.xlu0 %2401 }
 0xd4c   :  { %v8035_v52 = vadd.f32 %v2402_v48, %v2394_v16 }
 0xd4e   :  { %7090 = vtanh.f32 %v8035_v52 }
 0xd51   :  { %v7089_v50 = vpop.eup %7088  ;;  %v8094_v6 = vpop.f32.mrf.mxu0 }
 0xd52   :  { %2237 = vrot.lane.b32.xlu1 %v7089_v50, %s7410_s10 }
 0xd54   :  { %v2572_v51 = vpop.permute.xlu1 %2571 }
 0xd55   :  { %v2574_v53 = vadd.f32 %v2572_v51, %v2564_v57 }
 0xd57   :  { %7092 = vtanh.f32 %v2574_v53 }
 0xd5b   :  { %v7091_v56 = vpop.eup %7090 }
 0xd5c   :  { %2407 = vrot.lane.b32.xlu0 %v7091_v56, %s7410_s10 }
 0xd64   :  { %v7093_v61 = vpop.eup %7092 }
 0xd65   :  { %2577 = vrot.lane.b32.xlu1 %v7093_v61, %s7410_s10 }
 0xdbb   :  { %v2068_v5 = vpop.permute.xlu0 %2067 }
 0xdbc   :  { %v2070_v28 = vmul.f32 %v8007_v40, %v2068_v5  ;;  %v6572_v40 = vpop.f32.mrf.mxu0 }
 0xdbe   :  { %2662 = vrot.lane.b32.xlu0 %v2070_v28, %s7411_s11 }
 0xdc4   :  { %v2238_v29 = vpop.permute.xlu1 %2237 }
 0xdc5   :  { %v2240_v41 = vmul.f32 %v8011_v11, %v2238_v29  ;;  %v7253_v11 = vld [vmem:[#allocation2 + $0x28] sm:$0xff] }
 0xdc7   :  { %2840 = vrot.lane.b32.xlu1 %v2240_v41, %s7411_s11 }
 0xdce   :  { %v2408_v42 = vpop.permute.xlu0 %2407 }
 0xdcf   :  { %v2410_v30 = vmul.f32 %v8015_v36, %v2408_v42  ;;  %v8149_v36 = vld [vmem:[#allocation7 + $0x5] ss:$0 sm:$0xff]  ;;  %v7255_v42 = vld [vmem:[#allocation7 + $0x2] ss:$0 sm:$0xff] }
 0xdd1   :  { %3010 = vrot.lane.b32.xlu0 %v2410_v30, %s7411_s11 }
 0xdd7   :  { %v2578_v31 = vpop.permute.xlu1 %2577 }
 0xdd8   :  { %v2580_v44 = vmul.f32 %v8019_v10, %v2578_v31 }
 0xdda   :  { %3180 = vrot.lane.b32.xlu1 %v2580_v44, %s7411_s11 }
 0xe30   :  { %v2663_v9 = vpop.permute.xlu0 %2662 }
 0xe31   :  { %6582 = vmatmul.mubr.msk.f32.vlgmr.msra.gmra.mxu1 %vm126_vm2, %v2663_v9  ;;  %6593 = vmatmul.mubr.msk.f32.vlgmr.msra.gmra.mxu0 %vm126_vm2, %v2663_v9 }
 0xe32   :  { %6596 = vmatpush3.msra.mxu1 %v7894_v14  ;;  %6607 = vmatpush3.msra.mxu0 %v7732_v20 }
 0xe33   :  { %6597 = vmatprep.subr.mxu1 %v7408_v1  ;;  %6608 = vmatprep.subr.mxu0 %v7408_v1 }
 0xe34   :  { %6598 = vmatpush3.msra.mxu1 %v7896_v45  ;;  %6609 = vmatpush3.msra.mxu0 %v7734_v21  ;;  %v7247_v21 = vld [vmem:[#allocation5 + $0x58] sm:$0xff] }
 0xe35   :  { %6599 = vmatprep.subr.mxu1 %v7408_v1  ;;  %6610 = vmatprep.subr.mxu0 %v7408_v1 }
 0xe36   :  { %6600 = vmatpush3.msra.mxu1 %v7908_v47  ;;  %6611 = vmatpush3.msra.mxu0 %v7742_v27  ;;  %v7248_v27 = vld [vmem:[#allocation5 + $0x50] sm:$0xff] }
 0xe37   :  { %6601 = vmatprep.subr.mxu1 %v7408_v1  ;;  %6612 = vmatprep.subr.mxu0 %v7408_v1 }
 0xe38   :  { %6602 = vmatpush3.msra.mxu1 %v7916_v49  ;;  %6603 = vmatprep.mubr.msk.f32.mxu1 %vm7409_vm0, %v7408_v1 }
 0xe39   :  { %6613 = vmatpush3.msra.mxu0 %v7748_v23  ;;  %6614 = vmatprep.mubr.msk.f32.mxu0 %vm7409_vm0, %v7408_v1  ;;  %v2841_v20 = vpop.permute.xlu1 %2840  ;;  %v7249_v23 = vld [vmem:[#allocation5 + $0x48] sm:$0xff] }
 0xe3a   :  { %6604 = vmatmul.mubr.msk.f32.vlgmr.msra.gmra.mxu1 %vm126_vm2, %v2841_v20  ;;  %6615 = vmatmul.mubr.msk.f32.vlgmr.msra.gmra.mxu0 %vm126_vm2, %v2841_v20 }
 0xe3b   :  { %6617 = vmatprep.subr.mxu1 %v7408_v1  ;;  %6628 = vmatprep.subr.mxu0 %v7408_v1 }
 0xe3c   :  { %6618 = vmatpush3.msra.mxu1 %v7737_v24  ;;  %6629 = vmatpush3.msra.mxu0 %v7247_v21 }
 0xe3d   :  { %6619 = vmatprep.subr.mxu1 %v7408_v1  ;;  %6630 = vmatprep.subr.mxu0 %v7408_v1 }
 0xe3e   :  { %6620 = vmatpush3.msra.mxu1 %v7739_v22  ;;  %6631 = vmatpush3.msra.mxu0 %v7248_v27  ;;  %v7250_v22 = vld [vmem:[#allocation5 + $0x40] sm:$0xff] }
 0xe3f   :  { %6621 = vmatprep.subr.mxu1 %v7408_v1  ;;  %6632 = vmatprep.subr.mxu0 %v7408_v1 }
 0xe40   :  { %6622 = vmatpush3.msra.mxu1 %v7751_v25  ;;  %6633 = vmatpush3.msra.mxu0 %v7249_v23  ;;  %v7251_v25 = vld [vmem:[#allocation2 + $0x38] sm:$0xff] }
 0xe41   :  { %6623 = vmatprep.subr.mxu1 %v7408_v1  ;;  %6634 = vmatprep.subr.mxu0 %v7408_v1 }
 0xe42   :  { %6624 = vmatpush3.msra.mxu1 %v7759_v43  ;;  %6625 = vmatprep.mubr.msk.f32.mxu1 %vm7409_vm0, %v7408_v1  ;;  %v7252_v43 = vld [vmem:[#allocation2 + $0x30] sm:$0xff] }
 0xe43   :  { %v3011_v24 = vpop.permute.xlu0 %3010  ;;  %6635 = vmatpush3.msra.mxu0 %v7250_v22  ;;  %6636 = vmatprep.mubr.msk.f32.mxu0 %vm7409_vm0, %v7408_v1 }
 0xe44   :  { %6626 = vmatmul.mubr.msk.f32.vlgmr.msra.gmra.mxu1 %vm126_vm2, %v3011_v24  ;;  %6637 = vmatmul.mubr.msk.f32.vlgmr.msra.gmra.mxu0 %vm126_vm2, %v3011_v24 }
 0xe45   :  { %6639 = vmatprep.subr.mxu1 %v7408_v1  ;;  %6647 = vmatprep.mubr.msk.f32.mxu1 %vm7409_vm0, %v7408_v1 }
 0xe46   :  { %6640 = vmatpush3.msra.mxu1 %v7251_v25  ;;  %6650 = vmatprep.subr.mxu0 %v7408_v1 }
 0xe47   :  { %6641 = vmatprep.subr.mxu1 %v7408_v1  ;;  %6658 = vmatprep.mubr.msk.f32.mxu0 %vm7409_vm0, %v7408_v1 }
 0xe48   :  { %6642 = vmatpush3.msra.mxu1 %v7252_v43 }
 0xe49   :  { %6643 = vmatprep.subr.mxu1 %v7408_v1 }
 0xe4a   :  { %6644 = vmatpush3.msra.mxu1 %v7253_v11 }
 0xe4b   :  { %6645 = vmatprep.subr.mxu1 %v7408_v1 }
 0xe4c   :  { %6646 = vmatpush3.msra.mxu1 %v7254_v8  ;;  %v3181_v34 = vpop.permute.xlu1 %3180 }
 0xe4d   :  { %6648 = vmatmul.mubr.msk.f32.vlgmr.msra.gmra.mxu1 %vm126_vm2, %v3181_v34  ;;  %6661 = vmatprep.subr.mxu1 %v7408_v1 }
 0xe4e   :  { %6669 = vmatprep.mubr.msk.f32.mxu1 %vm7409_vm0, %v7408_v1 }
 0xef1   :  { %v2732_v35 = vpop.f32.mrf.mxu1  ;;  %v2835_v37 = vpop.f32.mrf.mxu0 }
 0xef2   :  { %v2733_v38 = vadd.f32 %v2732_v35, %v8094_v6 }
 0xef3   :  { %v6583_v10 = vpop.f32.mrf.mxu1  ;;  %v6594_v39 = vpop.f32.mrf.mxu0 }
 0xef4   :  { %v2744_v59 = vadd.f32 %v8149_v36, %v2733_v38 }
 0xef6   :  { %7094 = vtanh.f32 %v2744_v59  ;;  %v5899_v6 = vmul.f32 -1.442695, %v2744_v59 }
 0xefa   :  { %v2910_v60 = vpop.f32.mrf.mxu1  ;;  %v3005_v63 = vpop.f32.mrf.mxu0 }
 0xefb   :  { %v2911_v3 = vadd.f32 %v2910_v60, %v2835_v37 }
 0xefc   :  { %v6605_v13 = vpop.f32.mrf.mxu1  ;;  %v6616_v15 = vpop.f32.mrf.mxu0 }
 0xefd   :  { %v2914_v16 = vadd.f32 %v7997_v33, %v2911_v3 }
 0xeff   :  { %7096 = vtanh.f32 %v2914_v16  ;;  %v5902_v40 = vmul.f32 -1.442695, %v2914_v16 }
 0xf03   :  { %v7095_v48 = vpop.eup %7094 }
 0xf04   :  { %v3080_v50 = vpop.f32.mrf.mxu1  ;;  %v3175_v57 = vpop.f32.mrf.mxu0  ;;  %2754 = vrot.lane.b32.xlu0 %v7095_v48, %s7410_s10 }
 0xf05   :  { %v3081_v51 = vadd.f32 %v3080_v50, %v3005_v63 }
 0xf06   :  { %v6627_v53 = vpop.f32.mrf.mxu1  ;;  %v6638_v56 = vpop.f32.mrf.mxu0 }
 0xf07   :  { %v3084_v61 = vadd.f32 %v7845_v32, %v3081_v51 }
 0xf09   :  { %7098 = vtanh.f32 %v3084_v61  ;;  %v5905_v9 = vmul.f32 -1.442695, %v3084_v61 }
 0xf0c   :  { %v7097_v5 = vpop.eup %7096 }
 0xf0d   :  { %v3250_v28 = vpop.f32.mrf.mxu1  ;;  %2924 = vrot.lane.b32.xlu1 %v7097_v5, %s7410_s10 }
 0xf0e   :  { %v3251_v29 = vadd.f32 %v3250_v28, %v3175_v57 }
 0xf0f   :  { %v6649_v41 = vpop.f32.mrf.mxu1 }
 0xf10   :  { %v3254_v30 = vadd.f32 %v7255_v42, %v3251_v29  ;;  %v8193_v41 = vld [vmem:[#allocation5 + $0xd8] sm:$0xff]  ;;  %v8195_v42 = vld [vmem:[#allocation5 + $0xd0] sm:$0xff] }
 0xf11   :  { %6651 = vmatpush3.msra.mxu0 %v8193_v41 }
 0xf12   :  { %7100 = vtanh.f32 %v3254_v30  ;;  %v5908_v27 = vmul.f32 -1.442695, %v3254_v30  ;;  %6652 = vmatprep.subr.mxu0 %v7408_v1 }
 0xf13   :  { %7102 = vpow2.f32 %v5899_v6  ;;  %6653 = vmatpush3.msra.mxu0 %v8195_v42  ;;  %v8212_v6 = vld [vmem:[#allocation2 + $0xa8] sm:$0xff] }
 0xf14   :  { %7104 = vpow2.f32 %v5902_v40  ;;  %6654 = vmatprep.subr.mxu0 %v7408_v1  ;;  %v8220_v40 = vld [vmem:[#allocation2 + $0xa0] sm:$0xff] }
 0xf15   :  { %7106 = vpow2.f32 %v5905_v9 }
 0xf16   :  { %v7099_v31 = vpop.eup %7098 }
 0xf17   :  { %3094 = vrot.lane.b32.xlu0 %v7099_v31, %s7410_s10  ;;  %v8202_v31 = vld [vmem:[#allocation5 + $0xc8] sm:$0xff] }
 0xf18   :  { %6655 = vmatpush3.msra.mxu0 %v8202_v31 }
 0xf19   :  { %6656 = vmatprep.subr.mxu0 %v7408_v1 }
 0xf1f   :  { %v7101_v44 = vpop.eup %7100 }
 0xf20   :  { %3264 = vrot.lane.b32.xlu1 %v7101_v44, %s7410_s10  ;;  %v7103_v32 = vpop.eup %7102  ;;  %v8204_v44 = vld [vmem:[#allocation2 + $0xb0] sm:$0xff] }
 0xf21   :  { %v2748_v20 = vadd.f32 1.0, %v7103_v32  ;;  %v7105_v21 = vpop.eup %7104 }
 0xf22   :  { %v2918_v23 = vadd.f32 1.0, %v7105_v21  ;;  %v7107_v24 = vpop.eup %7106 }
 0xf23   :  { %7108 = vrcp.f32 %v2748_v20  ;;  %v3088_v11 = vadd.f32 1.0, %v7107_v24 }
 0xf24   :  { %7110 = vpow2.f32 %v5908_v27 }
 0xf25   :  { %7112 = vrcp.f32 %v2918_v23 }
 0xf26   :  { %7114 = vrcp.f32 %v3088_v11 }
 0xf30   :  { %v8159_v22 = vpop.eup %7108 }
 0xf31   :  { %v7111_v8 = vpop.eup %7110  ;;  %v2752_v13 = vmul.f32 0.0, %v8159_v22 }
 0xf32   :  { %v8163_v34 = vpop.eup %7112  ;;  %v3258_v38 = vadd.f32 1.0, %v7111_v8 }
 0xf33   :  { %v8167_v10 = vpop.eup %7114  ;;  %v2922_v48 = vmul.f32 %v8163_v34, %v8024_v0 }
 0xf34   :  { %7116 = vrcp.f32 %v3258_v38  ;;  %v3092_v53 = vmul.f32 %v8167_v10, %v8029_v7  ;;  %v8198_v7 = vld [vmem:[#allocation2 + $0xb8] sm:$0xff] }
 0xf35   :  { %6662 = vmatpush3.msra.mxu1 %v8198_v7 }
 0xf36   :  { %6663 = vmatprep.subr.mxu1 %v7408_v1 }
 0xf37   :  { %6664 = vmatpush3.msra.mxu1 %v8204_v44 }
 0xf38   :  { %6665 = vmatprep.subr.mxu1 %v7408_v1 }
 0xf39   :  { %6666 = vmatpush3.msra.mxu1 %v8212_v6 }
 0xf3a   :  { %6667 = vmatprep.subr.mxu1 %v7408_v1 }
 0xf3b   :  { %6668 = vmatpush3.msra.mxu1 %v8220_v40 }
 0xf3c   :  { %6683 = vmatprep.subr.mxu1 %v7408_v1 }
 0xf41   :  { %v8171_v60 = vpop.eup %7116 }
 0xf42   :  { %v3262_v0 = vmul.f32 %v8171_v60, %v8035_v52  ;;  %v8209_v52 = vld [vmem:[#allocation5 + $0xc0] sm:$0xff] }
 0xf43   :  { %6657 = vmatpush3.msra.mxu0 %v8209_v52 }
 0xf44   :  { %6672 = vmatprep.subr.mxu0 %v7408_v1  ;;  %6659 = vmatmul.mubr.f32.vlgmr.msra.gmra.mxu0 %v7408_v1 }
 0xf45   :  { %6673 = vmatpush3.msra.mxu0 %v8041_v18  ;;  %6680 = vmatprep.mubr.msk.f32.mxu0 %vm7409_vm0, %v7408_v1 }
 0xf46   :  { %6674 = vmatprep.subr.mxu0 %v7408_v1 }
 0xf47   :  { %6675 = vmatpush3.msra.mxu0 %v8043_v55 }
 0xf48   :  { %6676 = vmatprep.subr.mxu0 %v7408_v1 }
 0xf49   :  { %6677 = vmatpush3.msra.mxu0 %v8050_v54 }
 0xf4a   :  { %6678 = vmatprep.subr.mxu0 %v7408_v1 }
 0xf4b   :  { %6679 = vmatpush3.msra.mxu0 %v8057_v12 }
 0xf4c   :  { %6694 = vmatprep.subr.mxu0 %v7408_v1 }
 0xf76   :  { %v2755_v25 = vpop.permute.xlu0 %2754 }
 0xf77   :  { %v2757_v43 = vmul.f32 %v8159_v22, %v2755_v25 }
 0xf79   :  { %2759 = vrot.lane.b32.xlu0 %v2757_v43, %s7411_s11 }
 0xf7f   :  { %v2925_v35 = vpop.permute.xlu1 %2924 }
 0xf80   :  { %v2927_v37 = vmul.f32 %v8163_v34, %v2925_v35  ;;  %v7263_v35 = vld [vmem:[#allocation2 + $0x40] sm:$0xff] }
 0xf82   :  { %2929 = vrot.lane.b32.xlu1 %v2927_v37, %s7411_s11 }
 0xf89   :  { %v3095_v39 = vpop.permute.xlu0 %3094 }
 0xf8a   :  { %v3097_v59 = vmul.f32 %v8167_v10, %v3095_v39 }
 0xf8c   :  { %3099 = vrot.lane.b32.xlu0 %v3097_v59, %s7411_s11 }
 0xf92   :  { %v3265_v63 = vpop.permute.xlu1 %3264 }
 0xf93   :  { %v3267_v3 = vmul.f32 %v8171_v60, %v3265_v63 }
 0xf95   :  { %3269 = vrot.lane.b32.xlu1 %v3267_v3, %s7411_s11 }
 0xfeb   :  { %v2760_v15 = vpop.permute.xlu0 %2759 }
 0xfec   :  { %v8176_v16 = vadd.f32 %v2760_v15, %v2752_v13 }
 0xfee   :  { %7118 = vtanh.f32 %v8176_v16 }
 0xff4   :  { %v2930_v50 = vpop.permute.xlu1 %2929 }
 0xff5   :  { %v8181_v57 = vadd.f32 %v2930_v50, %v2922_v48 }
 0xff7   :  { %7120 = vtanh.f32 %v8181_v57 }
 0xffb   :  { %v7119_v51 = vpop.eup %7118 }
 0xffc   :  { %2765 = vrot.lane.b32.xlu0 %v7119_v51, %s7410_s10 }
 0xffe   :  { %v3100_v56 = vpop.permute.xlu0 %3099 }
 0xfff   :  { %v8187_v61 = vadd.f32 %v3100_v56, %v3092_v53 }
0x1001   :  { %7122 = vtanh.f32 %v8187_v61 }
0x1004   :  { %v7121_v5 = vpop.eup %7120  ;;  %v8246_v11 = vpop.f32.mrf.mxu0 }
0x1005   :  { %2935 = vrot.lane.b32.xlu1 %v7121_v5, %s7410_s10 }
0x1007   :  { %v3270_v28 = vpop.permute.xlu1 %3269 }
0x1008   :  { %v3272_v29 = vadd.f32 %v3270_v28, %v3262_v0 }
0x100a   :  { %7124 = vtanh.f32 %v3272_v29 }
0x100e   :  { %v7123_v30 = vpop.eup %7122 }
0x100f   :  { %3105 = vrot.lane.b32.xlu0 %v7123_v30, %s7410_s10 }
0x1017   :  { %v7125_v32 = vpop.eup %7124 }
0x1018   :  { %3275 = vrot.lane.b32.xlu1 %v7125_v32, %s7410_s10 }
0x106e   :  { %v2766_v9 = vpop.permute.xlu0 %2765 }
0x106f   :  { %v2768_v20 = vmul.f32 %v8159_v22, %v2766_v9  ;;  %v6660_v22 = vpop.f32.mrf.mxu0 }
0x1071   :  { %3360 = vrot.lane.b32.xlu0 %v2768_v20, %s7411_s11 }
0x1077   :  { %v2936_v21 = vpop.permute.xlu1 %2935 }
0x1078   :  { %v2938_v27 = vmul.f32 %v8163_v34, %v2936_v21  ;;  %v7262_v34 = vld [vmem:[#allocation2 + $0x48] sm:$0xff] }
0x107a   :  { %3538 = vrot.lane.b32.xlu1 %v2938_v27, %s7411_s11 }
0x1081   :  { %v3106_v23 = vpop.permute.xlu0 %3105 }
0x1082   :  { %v3108_v24 = vmul.f32 %v8167_v10, %v3106_v23  ;;  %v8301_v10 = vld [vmem:[#allocation7 + $0x6] ss:$0 sm:$0xff]  ;;  %v7264_v23 = vld [vmem:[#allocation7 + $0x3] ss:$0 sm:$0xff] }
0x1084   :  { %3708 = vrot.lane.b32.xlu0 %v3108_v24, %s7411_s11 }
0x108a   :  { %v3276_v25 = vpop.permute.xlu1 %3275 }
0x108b   :  { %v3278_v43 = vmul.f32 %v8171_v60, %v3276_v25 }
0x108d   :  { %3878 = vrot.lane.b32.xlu1 %v3278_v43, %s7411_s11 }
0x10e3   :  { %v3361_v8 = vpop.permute.xlu0 %3360 }
0x10e4   :  { %6670 = vmatmul.mubr.msk.f32.vlgmr.msra.gmra.mxu1 %vm126_vm2, %v3361_v8  ;;  %6681 = vmatmul.mubr.msk.f32.vlgmr.msra.gmra.mxu0 %vm126_vm2, %v3361_v8 }
0x10e5   :  { %6684 = vmatpush3.msra.mxu1 %v8046_v62  ;;  %6695 = vmatpush3.msra.mxu0 %v7889_v19 }
0x10e6   :  { %6685 = vmatprep.subr.mxu1 %v7408_v1  ;;  %6696 = vmatprep.subr.mxu0 %v7408_v1 }
0x10e7   :  { %6686 = vmatpush3.msra.mxu1 %v8052_v2  ;;  %6697 = vmatpush3.msra.mxu0 %v7891_v26  ;;  %v7256_v26 = vld [vmem:[#allocation5 + $0x78] sm:$0xff] }
0x10e8   :  { %6687 = vmatprep.subr.mxu1 %v7408_v1  ;;  %6698 = vmatprep.subr.mxu0 %v7408_v1 }
0x10e9   :  { %6688 = vmatpush3.msra.mxu1 %v8060_v4  ;;  %6699 = vmatpush3.msra.mxu0 %v7899_v46  ;;  %v7257_v46 = vld [vmem:[#allocation5 + $0x70] sm:$0xff] }
0x10ea   :  { %6689 = vmatprep.subr.mxu1 %v7408_v1  ;;  %6700 = vmatprep.subr.mxu0 %v7408_v1 }
0x10eb   :  { %6690 = vmatpush3.msra.mxu1 %v8068_v58  ;;  %6691 = vmatprep.mubr.msk.f32.mxu1 %vm7409_vm0, %v7408_v1 }
0x10ec   :  { %6701 = vmatpush3.msra.mxu0 %v7905_v17  ;;  %6702 = vmatprep.mubr.msk.f32.mxu0 %vm7409_vm0, %v7408_v1  ;;  %v3539_v19 = vpop.permute.xlu1 %3538  ;;  %v7258_v17 = vld [vmem:[#allocation5 + $0x68] sm:$0xff] }
0x10ed   :  { %6692 = vmatmul.mubr.msk.f32.vlgmr.msra.gmra.mxu1 %vm126_vm2, %v3539_v19  ;;  %6703 = vmatmul.mubr.msk.f32.vlgmr.msra.gmra.mxu0 %vm126_vm2, %v3539_v19 }
0x10ee   :  { %6705 = vmatprep.subr.mxu1 %v7408_v1  ;;  %6716 = vmatprep.subr.mxu0 %v7408_v1 }
0x10ef   :  { %6706 = vmatpush3.msra.mxu1 %v7894_v14  ;;  %6717 = vmatpush3.msra.mxu0 %v7256_v26 }
0x10f0   :  { %6707 = vmatprep.subr.mxu1 %v7408_v1  ;;  %6718 = vmatprep.subr.mxu0 %v7408_v1 }
0x10f1   :  { %6708 = vmatpush3.msra.mxu1 %v7896_v45  ;;  %6719 = vmatpush3.msra.mxu0 %v7257_v46  ;;  %v7259_v45 = vld [vmem:[#allocation5 + $0x60] sm:$0xff] }
0x10f2   :  { %6709 = vmatprep.subr.mxu1 %v7408_v1  ;;  %6720 = vmatprep.subr.mxu0 %v7408_v1 }
0x10f3   :  { %6710 = vmatpush3.msra.mxu1 %v7908_v47  ;;  %6721 = vmatpush3.msra.mxu0 %v7258_v17  ;;  %v7260_v47 = vld [vmem:[#allocation2 + $0x58] sm:$0xff] }
0x10f4   :  { %6711 = vmatprep.subr.mxu1 %v7408_v1  ;;  %6722 = vmatprep.subr.mxu0 %v7408_v1 }
0x10f5   :  { %6712 = vmatpush3.msra.mxu1 %v7916_v49  ;;  %6713 = vmatprep.mubr.msk.f32.mxu1 %vm7409_vm0, %v7408_v1  ;;  %v7261_v49 = vld [vmem:[#allocation2 + $0x50] sm:$0xff] }
0x10f6   :  { %v3709_v14 = vpop.permute.xlu0 %3708  ;;  %6723 = vmatpush3.msra.mxu0 %v7259_v45  ;;  %6724 = vmatprep.mubr.msk.f32.mxu0 %vm7409_vm0, %v7408_v1 }
0x10f7   :  { %6714 = vmatmul.mubr.msk.f32.vlgmr.msra.gmra.mxu1 %vm126_vm2, %v3709_v14  ;;  %6725 = vmatmul.mubr.msk.f32.vlgmr.msra.gmra.mxu0 %vm126_vm2, %v3709_v14 }
0x10f8   :  { %6727 = vmatprep.subr.mxu1 %v7408_v1  ;;  %6735 = vmatprep.mubr.msk.f32.mxu1 %vm7409_vm0, %v7408_v1 }
0x10f9   :  { %6728 = vmatpush3.msra.mxu1 %v7260_v47  ;;  %6738 = vmatprep.subr.mxu0 %v7408_v1 }
0x10fa   :  { %6729 = vmatprep.subr.mxu1 %v7408_v1  ;;  %6746 = vmatprep.mubr.msk.f32.mxu0 %vm7409_vm0, %v7408_v1 }
0x10fb   :  { %6730 = vmatpush3.msra.mxu1 %v7261_v49 }
0x10fc   :  { %6731 = vmatprep.subr.mxu1 %v7408_v1 }
0x10fd   :  { %6732 = vmatpush3.msra.mxu1 %v7262_v34 }
0x10fe   :  { %6733 = vmatprep.subr.mxu1 %v7408_v1 }
0x10ff   :  { %6734 = vmatpush3.msra.mxu1 %v7263_v35  ;;  %v3879_v37 = vpop.permute.xlu1 %3878 }
0x1100   :  { %6736 = vmatmul.mubr.msk.f32.vlgmr.msra.gmra.mxu1 %vm126_vm2, %v3879_v37  ;;  %6749 = vmatprep.subr.mxu1 %v7408_v1 }
0x1101   :  { %6757 = vmatprep.mubr.msk.f32.mxu1 %vm7409_vm0, %v7408_v1 }
0x11a4   :  { %v3430_v38 = vpop.f32.mrf.mxu1  ;;  %v3533_v39 = vpop.f32.mrf.mxu0 }
0x11a5   :  { %v3431_v59 = vadd.f32 %v3430_v38, %v8246_v11 }
0x11a6   :  { %v6671_v60 = vpop.f32.mrf.mxu1  ;;  %v6682_v63 = vpop.f32.mrf.mxu0 }
0x11a7   :  { %v3442_v3 = vadd.f32 %v8301_v10, %v3431_v59 }
0x11a9   :  { %7126 = vtanh.f32 %v3442_v3  ;;  %v5911_v11 = vmul.f32 -1.442695, %v3442_v3 }
0x11ad   :  { %v3608_v13 = vpop.f32.mrf.mxu1  ;;  %v3703_v15 = vpop.f32.mrf.mxu0 }
0x11ae   :  { %v3609_v48 = vadd.f32 %v3608_v13, %v3533_v39 }
0x11af   :  { %v6693_v50 = vpop.f32.mrf.mxu1  ;;  %v6704_v51 = vpop.f32.mrf.mxu0 }
0x11b0   :  { %v3612_v53 = vadd.f32 %v8149_v36, %v3609_v48 }
0x11b2   :  { %7128 = vtanh.f32 %v3612_v53  ;;  %v5914_v22 = vmul.f32 -1.442695, %v3612_v53 }
0x11b6   :  { %v7127_v56 = vpop.eup %7126 }
0x11b7   :  { %v3778_v5 = vpop.f32.mrf.mxu1  ;;  %v3873_v0 = vpop.f32.mrf.mxu0  ;;  %3452 = vrot.lane.b32.xlu0 %v7127_v56, %s7410_s10 }
0x11b8   :  { %v3779_v28 = vadd.f32 %v3778_v5, %v3703_v15 }
0x11b9   :  { %v6715_v29 = vpop.f32.mrf.mxu1  ;;  %v6726_v30 = vpop.f32.mrf.mxu0 }
0x11ba   :  { %v3782_v32 = vadd.f32 %v7997_v33, %v3779_v28 }
0x11bc   :  { %7130 = vtanh.f32 %v3782_v32  ;;  %v5917_v8 = vmul.f32 -1.442695, %v3782_v32 }
0x11bf   :  { %v7129_v9 = vpop.eup %7128 }
0x11c0   :  { %v3948_v20 = vpop.f32.mrf.mxu1  ;;  %3622 = vrot.lane.b32.xlu1 %v7129_v9, %s7410_s10 }
0x11c1   :  { %v3949_v21 = vadd.f32 %v3948_v20, %v3873_v0 }
0x11c2   :  { %v6737_v27 = vpop.f32.mrf.mxu1 }
0x11c3   :  { %v3952_v24 = vadd.f32 %v7264_v23, %v3949_v21  ;;  %v8345_v27 = vld [vmem:[#allocation5 + $0xf8] sm:$0xff]  ;;  %v8347_v23 = vld [vmem:[#allocation5 + $0xf0] sm:$0xff] }
0x11c4   :  { %6739 = vmatpush3.msra.mxu0 %v8345_v27 }
0x11c5   :  { %7132 = vtanh.f32 %v3952_v24  ;;  %v5920_v46 = vmul.f32 -1.442695, %v3952_v24  ;;  %6740 = vmatprep.subr.mxu0 %v7408_v1 }
0x11c6   :  { %7134 = vpow2.f32 %v5911_v11  ;;  %6741 = vmatpush3.msra.mxu0 %v8347_v23  ;;  %v8364_v11 = vld [vmem:[#allocation2 + $0xc8] sm:$0xff] }
0x11c7   :  { %7136 = vpow2.f32 %v5914_v22  ;;  %6742 = vmatprep.subr.mxu0 %v7408_v1  ;;  %v8372_v22 = vld [vmem:[#allocation2 + $0xc0] sm:$0xff] }
0x11c8   :  { %7138 = vpow2.f32 %v5917_v8 }
0x11c9   :  { %v7131_v25 = vpop.eup %7130 }
0x11ca   :  { %3792 = vrot.lane.b32.xlu0 %v7131_v25, %s7410_s10  ;;  %v8354_v25 = vld [vmem:[#allocation5 + $0xe8] sm:$0xff] }
0x11cb   :  { %6743 = vmatpush3.msra.mxu0 %v8354_v25 }
0x11cc   :  { %6744 = vmatprep.subr.mxu0 %v7408_v1 }
0x11d2   :  { %v7133_v43 = vpop.eup %7132 }
0x11d3   :  { %3962 = vrot.lane.b32.xlu1 %v7133_v43, %s7410_s10  ;;  %v7135_v33 = vpop.eup %7134  ;;  %v8356_v43 = vld [vmem:[#allocation2 + $0xd0] sm:$0xff] }
0x11d4   :  { %v3446_v19 = vadd.f32 1.0, %v7135_v33  ;;  %v7137_v26 = vpop.eup %7136 }
0x11d5   :  { %v3616_v17 = vadd.f32 1.0, %v7137_v26  ;;  %v7139_v14 = vpop.eup %7138 }
0x11d6   :  { %7140 = vrcp.f32 %v3446_v19  ;;  %v3786_v34 = vadd.f32 1.0, %v7139_v14 }
0x11d7   :  { %7142 = vpow2.f32 %v5920_v46 }
0x11d8   :  { %7144 = vrcp.f32 %v3616_v17 }
0x11d9   :  { %7146 = vrcp.f32 %v3786_v34 }
0x11e3   :  { %v8311_v45 = vpop.eup %7140 }
0x11e4   :  { %v7143_v35 = vpop.eup %7142  ;;  %v3450_v50 = vmul.f32 0.0, %v8311_v45 }
0x11e5   :  { %v8315_v37 = vpop.eup %7144  ;;  %v3956_v59 = vadd.f32 1.0, %v7143_v35 }
0x11e6   :  { %v8319_v60 = vpop.eup %7146  ;;  %v3620_v56 = vmul.f32 %v8315_v37, %v8176_v16 }
0x11e7   :  { %7148 = vrcp.f32 %v3956_v59  ;;  %v3790_v29 = vmul.f32 %v8319_v60, %v8181_v57  ;;  %v8350_v57 = vld [vmem:[#allocation2 + $0xd8] sm:$0xff] }
0x11e8   :  { %6750 = vmatpush3.msra.mxu1 %v8350_v57 }
0x11e9   :  { %6751 = vmatprep.subr.mxu1 %v7408_v1 }
0x11ea   :  { %6752 = vmatpush3.msra.mxu1 %v8356_v43 }
0x11eb   :  { %6753 = vmatprep.subr.mxu1 %v7408_v1 }
0x11ec   :  { %6754 = vmatpush3.msra.mxu1 %v8364_v11 }
0x11ed   :  { %6755 = vmatprep.subr.mxu1 %v7408_v1 }
0x11ee   :  { %6756 = vmatpush3.msra.mxu1 %v8372_v22 }
0x11ef   :  { %6771 = vmatprep.subr.mxu1 %v7408_v1 }
0x11f4   :  { %v8323_v13 = vpop.eup %7148 }
0x11f5   :  { %v3960_v16 = vmul.f32 %v8323_v13, %v8187_v61  ;;  %v8361_v61 = vld [vmem:[#allocation5 + $0xe0] sm:$0xff] }
0x11f6   :  { %6745 = vmatpush3.msra.mxu0 %v8361_v61 }
0x11f7   :  { %6760 = vmatprep.subr.mxu0 %v7408_v1  ;;  %6747 = vmatmul.mubr.f32.vlgmr.msra.gmra.mxu0 %v7408_v1 }
0x11f8   :  { %6761 = vmatpush3.msra.mxu0 %v8193_v41  ;;  %6768 = vmatprep.mubr.msk.f32.mxu0 %vm7409_vm0, %v7408_v1 }
0x11f9   :  { %6762 = vmatprep.subr.mxu0 %v7408_v1 }
0x11fa   :  { %6763 = vmatpush3.msra.mxu0 %v8195_v42 }
0x11fb   :  { %6764 = vmatprep.subr.mxu0 %v7408_v1 }
0x11fc   :  { %6765 = vmatpush3.msra.mxu0 %v8202_v31 }
0x11fd   :  { %6766 = vmatprep.subr.mxu0 %v7408_v1 }
0x11fe   :  { %6767 = vmatpush3.msra.mxu0 %v8209_v52 }
0x11ff   :  { %6782 = vmatprep.subr.mxu0 %v7408_v1 }
0x1229   :  { %v3453_v47 = vpop.permute.xlu0 %3452 }
0x122a   :  { %v3455_v49 = vmul.f32 %v8311_v45, %v3453_v47 }
0x122c   :  { %3457 = vrot.lane.b32.xlu0 %v3455_v49, %s7411_s11 }
0x1232   :  { %v3623_v38 = vpop.permute.xlu1 %3622 }
0x1233   :  { %v3625_v39 = vmul.f32 %v8315_v37, %v3623_v38  ;;  %v7272_v38 = vld [vmem:[#allocation2 + $0x60] sm:$0xff] }
0x1235   :  { %3627 = vrot.lane.b32.xlu1 %v3625_v39, %s7411_s11 }
0x123c   :  { %v3793_v63 = vpop.permute.xlu0 %3792 }
0x123d   :  { %v3795_v3 = vmul.f32 %v8319_v60, %v3793_v63 }
0x123f   :  { %3797 = vrot.lane.b32.xlu0 %v3795_v3, %s7411_s11 }
0x1245   :  { %v3963_v15 = vpop.permute.xlu1 %3962 }
0x1246   :  { %v3965_v48 = vmul.f32 %v8323_v13, %v3963_v15 }
0x1248   :  { %3967 = vrot.lane.b32.xlu1 %v3965_v48, %s7411_s11 }
0x129e   :  { %v3458_v51 = vpop.permute.xlu0 %3457 }
0x129f   :  { %v8328_v53 = vadd.f32 %v3458_v51, %v3450_v50 }
0x12a1   :  { %7150 = vtanh.f32 %v8328_v53 }
0x12a7   :  { %v3628_v5 = vpop.permute.xlu1 %3627 }
0x12a8   :  { %v8333_v0 = vadd.f32 %v3628_v5, %v3620_v56 }
0x12aa   :  { %7152 = vtanh.f32 %v8333_v0 }
0x12ae   :  { %v7151_v28 = vpop.eup %7150 }
0x12af   :  { %3463 = vrot.lane.b32.xlu0 %v7151_v28, %s7410_s10 }
0x12b1   :  { %v3798_v30 = vpop.permute.xlu0 %3797 }
0x12b2   :  { %v8339_v32 = vadd.f32 %v3798_v30, %v3790_v29 }
0x12b4   :  { %7154 = vtanh.f32 %v8339_v32 }
0x12b7   :  { %v7153_v9 = vpop.eup %7152  ;;  %v8398_v34 = vpop.f32.mrf.mxu0 }
0x12b8   :  { %3633 = vrot.lane.b32.xlu1 %v7153_v9, %s7410_s10 }
0x12ba   :  { %v3968_v20 = vpop.permute.xlu1 %3967 }
0x12bb   :  { %v3970_v21 = vadd.f32 %v3968_v20, %v3960_v16 }
0x12bd   :  { %7156 = vtanh.f32 %v3970_v21 }
0x12c1   :  { %v7155_v24 = vpop.eup %7154 }
0x12c2   :  { %3803 = vrot.lane.b32.xlu0 %v7155_v24, %s7410_s10 }
0x12ca   :  { %v7157_v33 = vpop.eup %7156 }
0x12cb   :  { %3973 = vrot.lane.b32.xlu1 %v7157_v33, %s7410_s10 }
0x1321   :  { %v3464_v8 = vpop.permute.xlu0 %3463 }
0x1322   :  { %v3466_v19 = vmul.f32 %v8311_v45, %v3464_v8  ;;  %v6748_v45 = vpop.f32.mrf.mxu0 }
0x1324   :  { %4058 = vrot.lane.b32.xlu0 %v3466_v19, %s7411_s11 }
0x132a   :  { %v3634_v26 = vpop.permute.xlu1 %3633 }
0x132b   :  { %v3636_v46 = vmul.f32 %v8315_v37, %v3634_v26  ;;  %v7271_v37 = vld [vmem:[#allocation2 + $0x68] sm:$0xff] }
0x132d   :  { %4236 = vrot.lane.b32.xlu1 %v3636_v46, %s7411_s11 }
0x1334   :  { %v3804_v17 = vpop.permute.xlu0 %3803 }
0x1335   :  { %v3806_v14 = vmul.f32 %v8319_v60, %v3804_v17  ;;  %v8469_v60 = vld [vmem:[#allocation7 + $0x7] ss:$0 sm:$0xff]  ;;  %v7273_v17 = vld [vmem:[#allocation7 + $0x4] ss:$0 sm:$0xff] }
0x1337   :  { %4406 = vrot.lane.b32.xlu0 %v3806_v14, %s7411_s11 }
0x133d   :  { %v3974_v47 = vpop.permute.xlu1 %3973 }
0x133e   :  { %v3976_v49 = vmul.f32 %v8323_v13, %v3974_v47 }
0x1340   :  { %4576 = vrot.lane.b32.xlu1 %v3976_v49, %s7411_s11 }
0x1396   :  { %v4059_v35 = vpop.permute.xlu0 %4058 }
0x1397   :  { %6758 = vmatmul.mubr.msk.f32.vlgmr.msra.gmra.mxu1 %vm126_vm2, %v4059_v35  ;;  %6769 = vmatmul.mubr.msk.f32.vlgmr.msra.gmra.mxu0 %vm126_vm2, %v4059_v35 }
0x1398   :  { %6772 = vmatpush3.msra.mxu1 %v8198_v7  ;;  %6783 = vmatpush3.msra.mxu0 %v8041_v18 }
0x1399   :  { %6773 = vmatprep.subr.mxu1 %v7408_v1  ;;  %6784 = vmatprep.subr.mxu0 %v7408_v1 }
0x139a   :  { %6774 = vmatpush3.msra.mxu1 %v8204_v44  ;;  %6785 = vmatpush3.msra.mxu0 %v8043_v55  ;;  %v7265_v55 = vld [vmem:[#allocation5 + $0x98] sm:$0xff] }
0x139b   :  { %6775 = vmatprep.subr.mxu1 %v7408_v1  ;;  %6786 = vmatprep.subr.mxu0 %v7408_v1 }
0x139c   :  { %6776 = vmatpush3.msra.mxu1 %v8212_v6  ;;  %6787 = vmatpush3.msra.mxu0 %v8050_v54  ;;  %v7266_v54 = vld [vmem:[#allocation5 + $0x90] sm:$0xff] }
0x139d   :  { %6777 = vmatprep.subr.mxu1 %v7408_v1  ;;  %6788 = vmatprep.subr.mxu0 %v7408_v1 }
0x139e   :  { %6778 = vmatpush3.msra.mxu1 %v8220_v40  ;;  %6779 = vmatprep.mubr.msk.f32.mxu1 %vm7409_vm0, %v7408_v1 }
0x139f   :  { %6789 = vmatpush3.msra.mxu0 %v8057_v12  ;;  %6790 = vmatprep.mubr.msk.f32.mxu0 %vm7409_vm0, %v7408_v1  ;;  %v4237_v18 = vpop.permute.xlu1 %4236  ;;  %v7267_v12 = vld [vmem:[#allocation5 + $0x88] sm:$0xff] }
0x13a0   :  { %6780 = vmatmul.mubr.msk.f32.vlgmr.msra.gmra.mxu1 %vm126_vm2, %v4237_v18  ;;  %6791 = vmatmul.mubr.msk.f32.vlgmr.msra.gmra.mxu0 %vm126_vm2, %v4237_v18 }
0x13a1   :  { %6793 = vmatprep.subr.mxu1 %v7408_v1  ;;  %6804 = vmatprep.subr.mxu0 %v7408_v1 }
0x13a2   :  { %6794 = vmatpush3.msra.mxu1 %v8046_v62  ;;  %6805 = vmatpush3.msra.mxu0 %v7265_v55 }
0x13a3   :  { %6795 = vmatprep.subr.mxu1 %v7408_v1  ;;  %6806 = vmatprep.subr.mxu0 %v7408_v1 }
0x13a4   :  { %6796 = vmatpush3.msra.mxu1 %v8052_v2  ;;  %6807 = vmatpush3.msra.mxu0 %v7266_v54  ;;  %v7268_v2 = vld [vmem:[#allocation5 + $0x80] sm:$0xff] }
0x13a5   :  { %6797 = vmatprep.subr.mxu1 %v7408_v1  ;;  %6808 = vmatprep.subr.mxu0 %v7408_v1 }
0x13a6   :  { %6798 = vmatpush3.msra.mxu1 %v8060_v4  ;;  %6809 = vmatpush3.msra.mxu0 %v7267_v12  ;;  %v7269_v4 = vld [vmem:[#allocation2 + $0x78] sm:$0xff] }
0x13a7   :  { %6799 = vmatprep.subr.mxu1 %v7408_v1  ;;  %6810 = vmatprep.subr.mxu0 %v7408_v1 }
0x13a8   :  { %6800 = vmatpush3.msra.mxu1 %v8068_v58  ;;  %6801 = vmatprep.mubr.msk.f32.mxu1 %vm7409_vm0, %v7408_v1  ;;  %v7270_v58 = vld [vmem:[#allocation2 + $0x70] sm:$0xff] }
0x13a9   :  { %v4407_v62 = vpop.permute.xlu0 %4406  ;;  %6811 = vmatpush3.msra.mxu0 %v7268_v2  ;;  %6812 = vmatprep.mubr.msk.f32.mxu0 %vm7409_vm0, %v7408_v1 }
0x13aa   :  { %6802 = vmatmul.mubr.msk.f32.vlgmr.msra.gmra.mxu1 %vm126_vm2, %v4407_v62  ;;  %6813 = vmatmul.mubr.msk.f32.vlgmr.msra.gmra.mxu0 %vm126_vm2, %v4407_v62 }
0x13ab   :  { %6815 = vmatprep.subr.mxu1 %v7408_v1  ;;  %6823 = vmatprep.mubr.msk.f32.mxu1 %vm7409_vm0, %v7408_v1 }
0x13ac   :  { %6816 = vmatpush3.msra.mxu1 %v7269_v4  ;;  %6826 = vmatprep.subr.mxu0 %v7408_v1 }
0x13ad   :  { %6817 = vmatprep.subr.mxu1 %v7408_v1  ;;  %6827 = vmatpush3.msra.mxu0 %v8345_v27 }
0x13ae   :  { %6818 = vmatpush3.msra.mxu1 %v7270_v58  ;;  %6828 = vmatprep.subr.mxu0 %v7408_v1 }
0x13af   :  { %6819 = vmatprep.subr.mxu1 %v7408_v1  ;;  %6829 = vmatpush3.msra.mxu0 %v8347_v23 }
0x13b0   :  { %6820 = vmatpush3.msra.mxu1 %v7271_v37  ;;  %6830 = vmatprep.subr.mxu0 %v7408_v1 }
0x13b1   :  { %6821 = vmatprep.subr.mxu1 %v7408_v1  ;;  %6831 = vmatpush3.msra.mxu0 %v8354_v25 }
0x13b2   :  { %6822 = vmatpush3.msra.mxu1 %v7272_v38  ;;  %v4577_v39 = vpop.permute.xlu1 %4576  ;;  %6832 = vmatprep.subr.mxu0 %v7408_v1 }
0x13b3   :  { %6824 = vmatmul.mubr.msk.f32.vlgmr.msra.gmra.mxu1 %vm126_vm2, %v4577_v39  ;;  %6833 = vmatpush3.msra.mxu0 %v8361_v61 }
0x13b4   :  { %6834 = vmatprep.mubr.msk.f32.mxu0 %vm7409_vm0, %v7408_v1  ;;  %6837 = vmatprep.subr.mxu1 %v7408_v1 }
0x13b5   :  { %6848 = vmatprep.subr.mxu0 %v7408_v1  ;;  %6838 = vmatpush3.msra.mxu1 %v8350_v57 }
0x13b6   :  { %6839 = vmatprep.subr.mxu1 %v7408_v1  ;;  %6845 = vmatprep.mubr.msk.f32.mxu1 %vm7409_vm0, %v7408_v1 }
0x13b7   :  { %6840 = vmatpush3.msra.mxu1 %v8356_v43 }
0x13b8   :  { %6841 = vmatprep.subr.mxu1 %v7408_v1 }
0x13b9   :  { %6842 = vmatpush3.msra.mxu1 %v8364_v11 }
0x13ba   :  { %6843 = vmatprep.subr.mxu1 %v7408_v1 }
0x13bb   :  { %6844 = vmatpush3.msra.mxu1 %v8372_v22 }
0x13bc   :  { %6859 = vmatprep.subr.mxu1 %v7408_v1 }
0x1457   :  { %v4128_v59 = vpop.f32.mrf.mxu1  ;;  %v4231_v63 = vpop.f32.mrf.mxu0 }
0x1458   :  { %v4129_v3 = vadd.f32 %v4128_v59, %v8398_v34 }
0x1459   :  { %v6759_v13 = vpop.f32.mrf.mxu1  ;;  %v6770_v15 = vpop.f32.mrf.mxu0 }
0x145a   :  { %v4140_v48 = vadd.f32 %v8469_v60, %v4129_v3 }
0x145c   :  { %7158 = vtanh.f32 %v4140_v48  ;;  %v5923_v34 = vmul.f32 -1.442695, %v4140_v48 }
0x1460   :  { %v4306_v50 = vpop.f32.mrf.mxu1  ;;  %v4401_v51 = vpop.f32.mrf.mxu0 }
0x1461   :  { %v4307_v56 = vadd.f32 %v4306_v50, %v4231_v63 }
0x1462   :  { %v6781_v5 = vpop.f32.mrf.mxu1  ;;  %v6792_v28 = vpop.f32.mrf.mxu0 }
0x1463   :  { %v4310_v29 = vadd.f32 %v8301_v10, %v4307_v56 }
0x1465   :  { %7160 = vtanh.f32 %v4310_v29  ;;  %v5926_v45 = vmul.f32 -1.442695, %v4310_v29 }
0x1469   :  { %v7159_v30 = vpop.eup %7158 }
0x146a   :  { %v4476_v9 = vpop.f32.mrf.mxu1  ;;  %v4571_v16 = vpop.f32.mrf.mxu0  ;;  %4150 = vrot.lane.b32.xlu0 %v7159_v30, %s7410_s10 }
0x146b   :  { %v4477_v20 = vadd.f32 %v4476_v9, %v4401_v51 }
0x146c   :  { %v6803_v21 = vpop.f32.mrf.mxu1  ;;  %v6814_v24 = vpop.f32.mrf.mxu0 }
0x146d   :  { %v4480_v33 = vadd.f32 %v8149_v36, %v4477_v20 }
0x146f   :  { %7162 = vtanh.f32 %v4480_v33  ;;  %v5929_v35 = vmul.f32 -1.442695, %v4480_v33 }
0x1472   :  { %v7161_v8 = vpop.eup %7160 }
0x1473   :  { %v4646_v19 = vpop.f32.mrf.mxu1  ;;  %4320 = vrot.lane.b32.xlu1 %v7161_v8, %s7410_s10 }
0x1474   :  { %v4647_v26 = vadd.f32 %v4646_v19, %v4571_v16 }
0x1475   :  { %v6825_v46 = vpop.f32.mrf.mxu1 }
0x1476   :  { %v4650_v14 = vadd.f32 %v7273_v17, %v4647_v26 }
0x1478   :  { %7164 = vtanh.f32 %v4650_v14  ;;  %v5932_v54 = vmul.f32 -1.442695, %v4650_v14 }
0x1479   :  { %7166 = vpow2.f32 %v5923_v34 }
0x147a   :  { %7168 = vpow2.f32 %v5926_v45 }
0x147b   :  { %7170 = vpow2.f32 %v5929_v35 }
0x147c   :  { %v7163_v47 = vpop.eup %7162 }
0x147d   :  { %4490 = vrot.lane.b32.xlu0 %v7163_v47, %s7410_s10 }
0x1485   :  { %v7165_v49 = vpop.eup %7164 }
0x1486   :  { %4660 = vrot.lane.b32.xlu1 %v7165_v49, %s7410_s10  ;;  %v7167_v36 = vpop.eup %7166 }
0x1487   :  { %v4144_v18 = vadd.f32 1.0, %v7167_v36  ;;  %v7169_v55 = vpop.eup %7168 }
0x1488   :  { %v4314_v12 = vadd.f32 1.0, %v7169_v55  ;;  %v7171_v62 = vpop.eup %7170  ;;  %v7281_v55 = vld [vmem:[#allocation2 + $0x80] sm:$0xff] }
0x1489   :  { %7172 = vrcp.f32 %v4144_v18  ;;  %v4484_v37 = vadd.f32 1.0, %v7171_v62 }
0x148a   :  { %7174 = vpow2.f32 %v5932_v54 }
0x148b   :  { %7176 = vrcp.f32 %v4314_v12 }
0x148c   :  { %7178 = vrcp.f32 %v4484_v37 }
0x1496   :  { %v7173_v2 = vpop.eup %7172 }
0x1497   :  { %v7175_v38 = vpop.eup %7174  ;;  %v4148_v5 = vmul.f32 0.0, %v7173_v2 }
0x1498   :  { %v7177_v39 = vpop.eup %7176  ;;  %v4654_v3 = vadd.f32 1.0, %v7175_v38 }
0x1499   :  { %v7179_v13 = vpop.eup %7178  ;;  %v4318_v30 = vmul.f32 %v7177_v39, %v8328_v53 }
0x149a   :  { %7180 = vrcp.f32 %v4654_v3  ;;  %v4488_v21 = vmul.f32 %v7179_v13, %v8333_v0 }
0x14a7   :  { %v7181_v50 = vpop.eup %7180 }
0x14a8   :  { %v4658_v53 = vmul.f32 %v7181_v50, %v8339_v32 }
0x14dc   :  { %v4151_v4 = vpop.permute.xlu0 %4150 }
0x14dd   :  { %v4153_v58 = vmul.f32 %v7173_v2, %v4151_v4 }
0x14df   :  { %4155 = vrot.lane.b32.xlu0 %v4153_v58, %s7411_s11 }
0x14e5   :  { %v4321_v59 = vpop.permute.xlu1 %4320 }
0x14e6   :  { %v4323_v63 = vmul.f32 %v7177_v39, %v4321_v59 }
0x14e8   :  { %4325 = vrot.lane.b32.xlu1 %v4323_v63, %s7411_s11 }
0x14ef   :  { %v4491_v15 = vpop.permute.xlu0 %4490 }
0x14f0   :  { %v4493_v48 = vmul.f32 %v7179_v13, %v4491_v15 }
0x14f2   :  { %4495 = vrot.lane.b32.xlu0 %v4493_v48, %s7411_s11 }
0x14f8   :  { %v4661_v51 = vpop.permute.xlu1 %4660 }
0x14f9   :  { %v4663_v56 = vmul.f32 %v7181_v50, %v4661_v51 }
0x14fb   :  { %4665 = vrot.lane.b32.xlu1 %v4663_v56, %s7411_s11 }
0x1551   :  { %v4156_v28 = vpop.permute.xlu0 %4155 }
0x1552   :  { %v8483_v29 = vadd.f32 %v4156_v28, %v4148_v5  ;;  %v7282_v28 = vld [vmem:[#allocation7 + $0x5] ss:$0 sm:$0xff] }
0x1554   :  { %7182 = vtanh.f32 %v8483_v29 }
0x155a   :  { %v4326_v9 = vpop.permute.xlu1 %4325 }
0x155b   :  { %v8487_v16 = vadd.f32 %v4326_v9, %v4318_v30 }
0x155d   :  { %7184 = vtanh.f32 %v8487_v16 }
0x1561   :  { %v7183_v20 = vpop.eup %7182 }
0x1562   :  { %4161 = vrot.lane.b32.xlu0 %v7183_v20, %s7410_s10 }
0x1564   :  { %v4496_v24 = vpop.permute.xlu0 %4495 }
0x1565   :  { %v8492_v33 = vadd.f32 %v4496_v24, %v4488_v21 }
0x1567   :  { %7186 = vtanh.f32 %v8492_v33 }
0x156a   :  { %v7185_v8 = vpop.eup %7184 }
0x156b   :  { %4331 = vrot.lane.b32.xlu1 %v7185_v8, %s7410_s10 }
0x156d   :  { %v4666_v19 = vpop.permute.xlu1 %4665 }
0x156e   :  { %v4668_v26 = vadd.f32 %v4666_v19, %v4658_v53 }
0x1570   :  { %7188 = vtanh.f32 %v4668_v26 }
0x1574   :  { %v7187_v46 = vpop.eup %7186 }
0x1575   :  { %4501 = vrot.lane.b32.xlu0 %v7187_v46, %s7410_s10 }
0x157d   :  { %v7189_v17 = vpop.eup %7188 }
0x157e   :  { %4671 = vrot.lane.b32.xlu1 %v7189_v17, %s7410_s10 }
0x15d4   :  { %v4162_v0 = vpop.permute.xlu0 %4161 }
0x15d5   :  { %v8499_v14 = vmul.f32 %v7173_v2, %v4162_v0 }
0x15d7   :  { %4676 = vrot.lane.b32.xlu0 %v8499_v14, %s7411_s11 }
0x15dd   :  { %v4332_v47 = vpop.permute.xlu1 %4331 }
0x15de   :  { %v4334_v49 = vmul.f32 %v7177_v39, %v4332_v47 }
0x15e0   :  { %4751 = vrot.lane.b32.xlu1 %v4334_v49, %s7411_s11 }
0x15e7   :  { %v4502_v32 = vpop.permute.xlu0 %4501 }
0x15e8   :  { %v4504_v34 = vmul.f32 %v7179_v13, %v4502_v32 }
0x15ea   :  { %4921 = vrot.lane.b32.xlu0 %v4504_v34, %s7411_s11 }
0x15f0   :  { %v4672_v45 = vpop.permute.xlu1 %4671 }
0x15f1   :  { %v4674_v36 = vmul.f32 %v7181_v50, %v4672_v45 }
0x15f3   :  { %5091 = vrot.lane.b32.xlu1 %v4674_v36, %s7411_s11 }
0x1649   :  { %v4677_v35 = vpop.permute.xlu0 %4676 }
0x164a   :  { %6835 = vmatmul.mubr.msk.f32.vlgmr.msra.gmra.mxu0 %vm126_vm2, %v4677_v35 }
0x164b   :  { %6849 = vmatpush3.msra.mxu0 %v8193_v41  ;;  %6856 = vmatprep.mubr.msk.f32.mxu0 %vm7409_vm0, %v7408_v1  ;;  %v7274_v41 = vld [vmem:[#allocation5 + $0xb8] sm:$0xff] }
0x164c   :  { %6850 = vmatprep.subr.mxu0 %v7408_v1 }
0x164d   :  { %6851 = vmatpush3.msra.mxu0 %v8195_v42  ;;  %v7275_v42 = vld [vmem:[#allocation5 + $0xb0] sm:$0xff] }
0x164e   :  { %6852 = vmatprep.subr.mxu0 %v7408_v1 }
0x164f   :  { %6853 = vmatpush3.msra.mxu0 %v8202_v31  ;;  %v7276_v31 = vld [vmem:[#allocation5 + $0xa8] sm:$0xff] }
0x1650   :  { %6854 = vmatprep.subr.mxu0 %v7408_v1 }
0x1651   :  { %6855 = vmatpush3.msra.mxu0 %v8209_v52  ;;  %v7278_v52 = vld [vmem:[#allocation2 + $0x98] sm:$0xff] }
0x1652   :  { %v4752_v18 = vpop.permute.xlu1 %4751  ;;  %6870 = vmatprep.subr.mxu0 %v7408_v1 }
0x1653   :  { %6846 = vmatmul.mubr.msk.f32.vlgmr.msra.gmra.mxu1 %vm126_vm2, %v4752_v18  ;;  %6857 = vmatmul.mubr.msk.f32.vlgmr.msra.gmra.mxu0 %vm126_vm2, %v4752_v18 }
0x1654   :  { %6860 = vmatpush3.msra.mxu1 %v8198_v7  ;;  %6871 = vmatpush3.msra.mxu0 %v7274_v41  ;;  %v7277_v7 = vld [vmem:[#allocation5 + $0xa0] sm:$0xff] }
0x1655   :  { %6861 = vmatprep.subr.mxu1 %v7408_v1  ;;  %6872 = vmatprep.subr.mxu0 %v7408_v1 }
0x1656   :  { %6862 = vmatpush3.msra.mxu1 %v8204_v44  ;;  %6873 = vmatpush3.msra.mxu0 %v7275_v42 }
0x1657   :  { %6863 = vmatprep.subr.mxu1 %v7408_v1  ;;  %6874 = vmatprep.subr.mxu0 %v7408_v1 }
0x1658   :  { %6864 = vmatpush3.msra.mxu1 %v8212_v6  ;;  %6875 = vmatpush3.msra.mxu0 %v7276_v31  ;;  %v7279_v6 = vld [vmem:[#allocation2 + $0x90] sm:$0xff] }
0x1659   :  { %6865 = vmatprep.subr.mxu1 %v7408_v1  ;;  %6876 = vmatprep.subr.mxu0 %v7408_v1 }
0x165a   :  { %6866 = vmatpush3.msra.mxu1 %v8220_v40  ;;  %6867 = vmatprep.mubr.msk.f32.mxu1 %vm7409_vm0, %v7408_v1  ;;  %v7280_v40 = vld [vmem:[#allocation2 + $0x88] sm:$0xff] }
0x165b   :  { %6877 = vmatpush3.msra.mxu0 %v7277_v7  ;;  %6878 = vmatprep.mubr.msk.f32.mxu0 %vm7409_vm0, %v7408_v1 }
0x165c   :  { %v4922_v44 = vpop.permute.xlu0 %4921  ;;  %6881 = vmatprep.subr.mxu1 %v7408_v1  ;;  %6892 = vmatprep.subr.mxu0 %v7408_v1 }
0x165d   :  { %6868 = vmatmul.mubr.msk.f32.vlgmr.msra.gmra.mxu1 %vm126_vm2, %v4922_v44  ;;  %6879 = vmatmul.mubr.msk.f32.vlgmr.msra.gmra.mxu0 %vm126_vm2, %v4922_v44 }
0x165e   :  { %6882 = vmatpush3.msra.mxu1 %v7278_v52  ;;  %6889 = vmatprep.mubr.msk.f32.mxu1 %vm7409_vm0, %v7408_v1 }
0x165f   :  { %6883 = vmatprep.subr.mxu1 %v7408_v1  ;;  %6893 = vmatpush3.msra.mxu0 %v8345_v27 }
0x1660   :  { %6884 = vmatpush3.msra.mxu1 %v7279_v6  ;;  %6894 = vmatprep.subr.mxu0 %v7408_v1 }
0x1661   :  { %6885 = vmatprep.subr.mxu1 %v7408_v1  ;;  %6895 = vmatpush3.msra.mxu0 %v8347_v23 }
0x1662   :  { %6886 = vmatpush3.msra.mxu1 %v7280_v40  ;;  %6896 = vmatprep.subr.mxu0 %v7408_v1 }
0x1663   :  { %6887 = vmatprep.subr.mxu1 %v7408_v1  ;;  %6897 = vmatpush3.msra.mxu0 %v8354_v25 }
0x1664   :  { %6888 = vmatpush3.msra.mxu1 %v7281_v55  ;;  %6898 = vmatprep.subr.mxu0 %v7408_v1 }
0x1665   :  { %v5092_v54 = vpop.permute.xlu1 %5091  ;;  %6899 = vmatpush3.msra.mxu0 %v8361_v61  ;;  %6900 = vmatprep.mubr.msk.f32.mxu0 %vm7409_vm0, %v7408_v1 }
0x1666   :  { %6890 = vmatmul.mubr.msk.f32.vlgmr.msra.gmra.mxu1 %vm126_vm2, %v5092_v54  ;;  %6903 = vmatprep.subr.mxu1 %v7408_v1 }
0x1667   :  { %6914 = vmatprep.subr.mxu0 %v7408_v1  ;;  %6904 = vmatpush3.msra.mxu1 %v8350_v57 }
0x1668   :  { %6905 = vmatprep.subr.mxu1 %v7408_v1  ;;  %6911 = vmatprep.mubr.msk.f32.mxu1 %vm7409_vm0, %v7408_v1 }
0x1669   :  { %6906 = vmatpush3.msra.mxu1 %v8356_v43 }
0x166a   :  { %6907 = vmatprep.subr.mxu1 %v7408_v1 }
0x166b   :  { %6908 = vmatpush3.msra.mxu1 %v8364_v11 }
0x166c   :  { %6909 = vmatprep.subr.mxu1 %v7408_v1 }
0x166d   :  { %6910 = vmatpush3.msra.mxu1 %v8372_v22 }
0x166e   :  { %6925 = vmatprep.subr.mxu1 %v7408_v1 }
0x170a   :  { %v4746_v12 = vpop.f32.mrf.mxu0 }
0x170c   :  { %v6836_v62 = vpop.f32.mrf.mxu0 }
0x1713   :  { %v4821_v2 = vpop.f32.mrf.mxu1  ;;  %v4916_v4 = vpop.f32.mrf.mxu0 }
0x1714   :  { %v4822_v58 = vadd.f32 %v4821_v2, %v4746_v12 }
0x1715   :  { %v6847_v37 = vpop.f32.mrf.mxu1  ;;  %v6858_v38 = vpop.f32.mrf.mxu0 }
0x1716   :  { %v4825_v39 = vadd.f32 %v8469_v60, %v4822_v58 }
0x1718   :  { %7190 = vtanh.f32 %v4825_v39  ;;  %v5935_v21 = vmul.f32 -1.442695, %v4825_v39 }
0x171d   :  { %v4991_v59 = vpop.f32.mrf.mxu1  ;;  %v5086_v63 = vpop.f32.mrf.mxu0 }
0x171e   :  { %v4992_v3 = vadd.f32 %v4991_v59, %v4916_v4 }
0x171f   :  { %v6869_v13 = vpop.f32.mrf.mxu1  ;;  %v6880_v15 = vpop.f32.mrf.mxu0 }
0x1720   :  { %v4995_v48 = vadd.f32 %v8301_v10, %v4992_v3 }
0x1722   :  { %7192 = vtanh.f32 %v4995_v48  ;;  %v5938_v24 = vmul.f32 -1.442695, %v4995_v48 }
0x1725   :  { %v7191_v50 = vpop.eup %7190 }
0x1726   :  { %v5161_v51 = vpop.f32.mrf.mxu1  ;;  %4835 = vrot.lane.b32.xlu0 %v7191_v50, %s7410_s10 }
0x1727   :  { %v5162_v56 = vadd.f32 %v5161_v51, %v5086_v63 }
0x1728   :  { %v6891_v5 = vpop.f32.mrf.mxu1 }
0x1729   :  { %v5165_v30 = vadd.f32 %v7282_v28, %v5162_v56 }
0x172b   :  { %7194 = vtanh.f32 %v5165_v30  ;;  %v5941_v8 = vmul.f32 -1.442695, %v5165_v30 }
0x172c   :  { %7196 = vpow2.f32 %v5935_v21  ;;  %v7283_v21 = vld [vmem:[#allocation5 + $0xd8] sm:$0xff] }
0x172d   :  { %7198 = vpow2.f32 %v5938_v24  ;;  %v7284_v24 = vld [vmem:[#allocation5 + $0xd0] sm:$0xff] }
0x172e   :  { %7200 = vpow2.f32 %v5941_v8  ;;  %v7286_v8 = vld [vmem:[#allocation5 + $0xc0] sm:$0xff] }
0x172f   :  { %v7193_v9 = vpop.eup %7192 }
0x1730   :  { %5005 = vrot.lane.b32.xlu1 %v7193_v9, %s7410_s10 }
0x1738   :  { %v7195_v20 = vpop.eup %7194 }
0x1739   :  { %5175 = vrot.lane.b32.xlu0 %v7195_v20, %s7410_s10  ;;  %v7197_v10 = vpop.eup %7196 }
0x173a   :  { %v4829_v53 = vadd.f32 1.0, %v7197_v10  ;;  %v7199_v19 = vpop.eup %7198  ;;  %v7285_v10 = vld [vmem:[#allocation5 + $0xc8] sm:$0xff] }
0x173b   :  { %v4999_v26 = vadd.f32 1.0, %v7199_v19  ;;  %v7201_v46 = vpop.eup %7200  ;;  %v7287_v19 = vld [vmem:[#allocation2 + $0xb8] sm:$0xff] }
0x173c   :  { %7202 = vrcp.f32 %v4829_v53  ;;  %v5169_v49 = vadd.f32 1.0, %v7201_v46  ;;  %v7289_v46 = vld [vmem:[#allocation2 + $0xa8] sm:$0xff] }
0x173d   :  { %7204 = vrcp.f32 %v4999_v26  ;;  %v7288_v26 = vld [vmem:[#allocation2 + $0xb0] sm:$0xff] }
0x173e   :  { %7206 = vrcp.f32 %v5169_v49 }
0x1749   :  { %v7203_v17 = vpop.eup %7202 }
0x174a   :  { %v7205_v32 = vpop.eup %7204  ;;  %v4833_v41 = vmul.f32 %v7203_v17, %v8483_v29 }
0x174b   :  { %v7207_v36 = vpop.eup %7206  ;;  %v5003_v7 = vmul.f32 %v7205_v32, %v8487_v16  ;;  %v5711_v16 = vsel %vm5710_vm3, %v8499_v14, 0.0 }
0x174c   :  { %v5173_v40 = vmul.f32 %v7207_v36, %v8492_v33  ;;  %v5712_v62 = vrot.slane %v5711_v16, 4 }
0x174e   :  { %v5713_v2 = vadd.f32 %v5712_v62, %v5711_v16 }
0x1750   :  { %v5714_v4 = vrot.slane %v5713_v2, 2 }
0x1752   :  { %v5715_v38 = vadd.f32 %v5714_v4, %v5713_v2 }
0x1754   :  { %v5716_v63 = vrot.slane %v5715_v38, 1 }
0x1756   :  { %v5717_v50 = vadd.f32 %v5716_v63, %v5715_v38 }
0x1758   :  { %v5719_v56 = vmul.f32 0.125, %v5717_v50 }
0x1798   :  { %v4836_v0 = vpop.permute.xlu0 %4835 }
0x1799   :  { %v4838_v47 = vmul.f32 %v7203_v17, %v4836_v0 }
0x179b   :  { %4840 = vrot.lane.b32.xlu1 %v4838_v47, %s7411_s11 }
0x17a2   :  { %v5006_v34 = vpop.permute.xlu1 %5005 }
0x17a3   :  { %v5008_v45 = vmul.f32 %v7205_v32, %v5006_v34 }
0x17a5   :  { %5010 = vrot.lane.b32.xlu0 %v5008_v45, %s7411_s11 }
0x17ab   :  { %v5176_v35 = vpop.permute.xlu0 %5175 }
0x17ac   :  { %v5178_v18 = vmul.f32 %v7207_v36, %v5176_v35 }
0x17ae   :  { %5180 = vrot.lane.b32.xlu1 %v5178_v18, %s7411_s11 }
0x180d   :  { %v4841_v42 = vpop.permute.xlu1 %4840 }
0x180e   :  { %v8573_v31 = vadd.f32 %v4841_v42, %v4833_v41 }
0x1810   :  { %7208 = vtanh.f32 %v8573_v31 }
0x1817   :  { %v5011_v44 = vpop.permute.xlu0 %5010 }
0x1818   :  { %v8577_v52 = vadd.f32 %v5011_v44, %v5003_v7 }
0x181a   :  { %7210 = vtanh.f32 %v8577_v52 }
0x181d   :  { %v7209_v6 = vpop.eup %7208 }
0x181e   :  { %4846 = vrot.lane.b32.xlu0 %v7209_v6, %s7410_s10 }
0x1820   :  { %v5181_v55 = vpop.permute.xlu1 %5180 }
0x1821   :  { %v5183_v54 = vadd.f32 %v5181_v55, %v5173_v40 }
0x1823   :  { %7212 = vtanh.f32 %v5183_v54 }
0x1827   :  { %v7211_v29 = vpop.eup %7210 }
0x1828   :  { %5016 = vrot.lane.b32.xlu1 %v7211_v29, %s7410_s10 }
0x1830   :  { %v7213_v12 = vpop.eup %7212 }
0x1831   :  { %5186 = vrot.lane.b32.xlu0 %v7213_v12, %s7410_s10 }
0x1890   :  { %v4847_v58 = vpop.permute.xlu0 %4846 }
0x1891   :  { %v4849_v37 = vmul.f32 %v7203_v17, %v4847_v58  ;;  %v7290_v17 = vld [vmem:[#allocation2 + $0xa0] sm:$0xff] }
0x1893   :  { %v5720_v33 = vsel %vm5710_vm3, %v4849_v37, 0.0  ;;  %5191 = vrot.lane.b32.xlu1 %v4849_v37, %s7411_s11 }
0x1894   :  { %v5721_v39 = vrot.slane %v5720_v33, 4 }
0x1896   :  { %v5722_v59 = vadd.f32 %v5721_v39, %v5720_v33 }
0x1898   :  { %v5723_v3 = vrot.slane %v5722_v59, 2 }
0x189a   :  { %v5724_v13 = vadd.f32 %v5723_v3, %v5722_v59  ;;  %v5017_v15 = vpop.permute.xlu1 %5016 }
0x189b   :  { %v5019_v48 = vmul.f32 %v7205_v32, %v5017_v15 }
0x189c   :  { %v5725_v51 = vrot.slane %v5724_v13, 1 }
0x189d   :  { %5266 = vrot.lane.b32.xlu0 %v5019_v48, %s7411_s11 }
0x189e   :  { %v5726_v14 = vadd.f32 %v5725_v51, %v5724_v13 }
0x18a0   :  { %v5727_v5 = vmul.f32 0.125, %v5726_v14 }
0x18a2   :  { %v8589_v28 = vsel %vm5744_vm4, %v5719_v56, %v5727_v5 }
0x18a3   :  { %v5187_v30 = vpop.permute.xlu0 %5186 }
0x18a4   :  { %v5189_v9 = vmul.f32 %v7207_v36, %v5187_v30  ;;  %v7291_v36 = vld [vmem:[#allocation7 + $0x6] ss:$0 sm:$0xff] }
0x18a6   :  { %5436 = vrot.lane.b32.xlu1 %v5189_v9, %s7411_s11 }
0x1905   :  { %v5192_v20 = vpop.permute.xlu1 %5191 }
0x1906   :  { %6901 = vmatmul.mubr.msk.f32.vlgmr.msra.gmra.mxu0 %vm126_vm2, %v5192_v20 }
0x1907   :  { %6915 = vmatpush3.msra.mxu0 %v7283_v21  ;;  %6922 = vmatprep.mubr.msk.f32.mxu0 %vm7409_vm0, %v7408_v1 }
0x1908   :  { %6916 = vmatprep.subr.mxu0 %v7408_v1 }
0x1909   :  { %6917 = vmatpush3.msra.mxu0 %v7284_v24 }
0x190a   :  { %6918 = vmatprep.subr.mxu0 %v7408_v1 }
0x190b   :  { %6919 = vmatpush3.msra.mxu0 %v7285_v10 }
0x190c   :  { %6920 = vmatprep.subr.mxu0 %v7408_v1 }
0x190d   :  { %6921 = vmatpush3.msra.mxu0 %v7286_v8 }
0x190e   :  { %6936 = vmatprep.subr.mxu0 %v7408_v1 }
0x190f   :  { %v5267_v53 = vpop.permute.xlu0 %5266 }
0x1910   :  { %6912 = vmatmul.mubr.msk.f32.vlgmr.msra.gmra.mxu1 %vm126_vm2, %v5267_v53  ;;  %6923 = vmatmul.mubr.msk.f32.vlgmr.msra.gmra.mxu0 %vm126_vm2, %v5267_v53 }
0x1911   :  { %6926 = vmatpush3.msra.mxu1 %v7287_v19  ;;  %6933 = vmatprep.mubr.msk.f32.mxu1 %vm7409_vm0, %v7408_v1 }
0x1912   :  { %6927 = vmatprep.subr.mxu1 %v7408_v1  ;;  %6937 = vmatpush3.msra.mxu0 %v8345_v27 }
0x1913   :  { %6928 = vmatpush3.msra.mxu1 %v7288_v26  ;;  %6938 = vmatprep.subr.mxu0 %v7408_v1 }
0x1914   :  { %6929 = vmatprep.subr.mxu1 %v7408_v1  ;;  %6939 = vmatpush3.msra.mxu0 %v8347_v23 }
0x1915   :  { %6930 = vmatpush3.msra.mxu1 %v7289_v46  ;;  %6940 = vmatprep.subr.mxu0 %v7408_v1 }
0x1916   :  { %6931 = vmatprep.subr.mxu1 %v7408_v1  ;;  %6941 = vmatpush3.msra.mxu0 %v8354_v25 }
0x1917   :  { %6932 = vmatpush3.msra.mxu1 %v7290_v17  ;;  %6942 = vmatprep.subr.mxu0 %v7408_v1 }
0x1918   :  { %v5437_v27 = vpop.permute.xlu1 %5436  ;;  %6943 = vmatpush3.msra.mxu0 %v8361_v61  ;;  %6944 = vmatprep.mubr.msk.f32.mxu0 %vm7409_vm0, %v7408_v1 }
0x1919   :  { %6934 = vmatmul.mubr.msk.f32.vlgmr.msra.gmra.mxu1 %vm126_vm2, %v5437_v27  ;;  %6947 = vmatprep.subr.mxu1 %v7408_v1 }
0x191a   :  { %6948 = vmatpush3.msra.mxu1 %v8350_v57  ;;  %6955 = vmatprep.mubr.msk.f32.mxu1 %vm7409_vm0, %v7408_v1 }
0x191b   :  { %6949 = vmatprep.subr.mxu1 %v7408_v1  ;;  %6958 = vmatprep.subr.mxu0 %v7408_v1 }
0x191c   :  { %6950 = vmatpush3.msra.mxu1 %v8356_v43 }
0x191d   :  { %6951 = vmatprep.subr.mxu1 %v7408_v1 }
0x191e   :  { %6952 = vmatpush3.msra.mxu1 %v8364_v11 }
0x191f   :  { %6953 = vmatprep.subr.mxu1 %v7408_v1 }
0x1920   :  { %6954 = vmatpush3.msra.mxu1 %v8372_v22 }
0x19c6   :  { %v5261_v23 = vpop.f32.mrf.mxu0 }
0x19c8   :  { %v6902_v25 = vpop.f32.mrf.mxu0 }
0x19d0   :  { %v5336_v57 = vpop.f32.mrf.mxu1  ;;  %v5431_v61 = vpop.f32.mrf.mxu0 }
0x19d1   :  { %v5337_v0 = vadd.f32 %v5336_v57, %v5261_v23 }
0x19d2   :  { %v6913_v47 = vpop.f32.mrf.mxu1  ;;  %v6924_v49 = vpop.f32.mrf.mxu0 }
0x19d3   :  { %v5340_v32 = vadd.f32 %v8469_v60, %v5337_v0  ;;  %v5752_v47 = vld [vmem:[%s8675_s6 + $0x10] sm:$0xff]  ;;  %v5751_v49 = vld [vmem:[%s8675_s6 + $0x8] sm:$0xff] }
0x19d5   :  { %7214 = vtanh.f32 %v5340_v32  ;;  %v5944_v18 = vmul.f32 -1.442695, %v5340_v32  ;;  %v5750_v32 = vld [vmem:[%s8675_s6] sm:$0xff] }
0x19d9   :  { %v5506_v34 = vpop.f32.mrf.mxu1 }
0x19da   :  { %v5507_v43 = vadd.f32 %v5506_v34, %v5431_v61 }
0x19db   :  { %v6935_v45 = vpop.f32.mrf.mxu1 }
0x19dc   :  { %v5510_v35 = vadd.f32 %v7291_v36, %v5507_v43 }
0x19de   :  { %7216 = vtanh.f32 %v5510_v35  ;;  %v5947_v41 = vmul.f32 -1.442695, %v5510_v35 }
0x19df   :  { %7218 = vpow2.f32 %v5944_v18 }
0x19e0   :  { %7220 = vpow2.f32 %v5947_v41 }
0x19e2   :  { %v7215_v11 = vpop.eup %7214 }
0x19e3   :  { %5350 = vrot.lane.b32.xlu0 %v7215_v11, %s7410_s10 }
0x19eb   :  { %v7217_v22 = vpop.eup %7216 }
0x19ec   :  { %5520 = vrot.lane.b32.xlu1 %v7217_v22, %s7410_s10  ;;  %v7219_v42 = vpop.eup %7218 }
0x19ed   :  { %v5344_v7 = vadd.f32 1.0, %v7219_v42  ;;  %v7221_v44 = vpop.eup %7220 }
0x19ee   :  { %v5514_v6 = vadd.f32 1.0, %v7221_v44 }
0x19ef   :  { %7222 = vrcp.f32 %v5344_v7 }
0x19f0   :  { %7224 = vrcp.f32 %v5514_v6 }
0x19fc   :  { %v7223_v40 = vpop.eup %7222 }
0x19fd   :  { %v7225_v29 = vpop.eup %7224  ;;  %v5348_v62 = vmul.f32 %v7223_v40, %v8573_v31 }
0x19fe   :  { %v5518_v58 = vmul.f32 %v7225_v29, %v8577_v52 }
0x1a55   :  { %v5351_v55 = vpop.permute.xlu0 %5350 }
0x1a56   :  { %v5353_v54 = vmul.f32 %v7223_v40, %v5351_v55 }
0x1a58   :  { %5355 = vrot.lane.b32.xlu0 %v5353_v54, %s7411_s11 }
0x1a5e   :  { %v5521_v12 = vpop.permute.xlu1 %5520 }
0x1a5f   :  { %v5523_v16 = vmul.f32 %v7225_v29, %v5521_v12 }
0x1a61   :  { %5525 = vrot.lane.b32.xlu1 %v5523_v16, %s7411_s11 }
0x1aca   :  { %v5356_v2 = vpop.permute.xlu0 %5355 }
0x1acb   :  { %v5358_v4 = vadd.f32 %v5356_v2, %v5348_v62 }
0x1acd   :  { %7226 = vtanh.f32 %v5358_v4 }
0x1ad3   :  { %v5526_v37 = vpop.permute.xlu1 %5525 }
0x1ad4   :  { %v5528_v33 = vadd.f32 %v5526_v37, %v5518_v58 }
0x1ad6   :  { %7228 = vtanh.f32 %v5528_v33 }
0x1ada   :  { %v7227_v38 = vpop.eup %7226 }
0x1adb   :  { %5361 = vrot.lane.b32.xlu0 %v7227_v38, %s7410_s10 }
0x1ae3   :  { %v7229_v39 = vpop.eup %7228 }
0x1ae4   :  { %5531 = vrot.lane.b32.xlu1 %v7229_v39, %s7410_s10 }
0x1b4d   :  { %v5362_v59 = vpop.permute.xlu0 %5361 }
0x1b4e   :  { %v5364_v63 = vmul.f32 %v7223_v40, %v5362_v59 }
0x1b50   :  { %v5728_v3 = vsel %vm5710_vm3, %v5364_v63, 0.0  ;;  %5536 = vrot.lane.b32.xlu0 %v5364_v63, %s7411_s11 }
0x1b51   :  { %v5729_v31 = vrot.slane %v5728_v3, 4 }
0x1b53   :  { %v5730_v13 = vadd.f32 %v5729_v31, %v5728_v3 }
0x1b55   :  { %v5731_v15 = vrot.slane %v5730_v13, 2 }
0x1b56   :  { %v5532_v48 = vpop.permute.xlu1 %5531 }
0x1b57   :  { %v5732_v52 = vadd.f32 %v5731_v15, %v5730_v13  ;;  %v5534_v50 = vmul.f32 %v7225_v29, %v5532_v48 }
0x1b59   :  { %v5733_v51 = vrot.slane %v5732_v52, 1  ;;  %5611 = vrot.lane.b32.xlu1 %v5534_v50, %s7411_s11 }
0x1b5b   :  { %v5734_v14 = vadd.f32 %v5733_v51, %v5732_v52 }
0x1b5d   :  { %v5735_v56 = vmul.f32 0.125, %v5734_v14 }
0x1b5f   :  { %v5747_v5 = vsel %vm5746_vm5, %v8589_v28, %v5735_v56 }
0x1bc2   :  { %v5537_v30 = vpop.permute.xlu0 %5536 }
0x1bc3   :  { %6945 = vmatmul.mubr.msk.f32.vlgmr.msra.gmra.mxu0 %vm126_vm2, %v5537_v30 }
0x1bc4   :  { %6966 = vmatprep.mubr.msk.f32.mxu0 %vm7409_vm0, %v7408_v1 }
0x1bcb   :  { %v5612_v9 = vpop.permute.xlu1 %5611 }
0x1bcc   :  { %6956 = vmatmul.mubr.msk.f32.vlgmr.msra.gmra.mxu1 %vm126_vm2, %v5612_v9 }
0x1c83   :  { %v5606_v20 = vpop.f32.mrf.mxu0 }
0x1c85   :  { %v6946_v21 = vpop.f32.mrf.mxu0 }
0x1c8c   :  { %v5681_v24 = vpop.f32.mrf.mxu1 }
0x1c8d   :  { %v5682_v10 = vadd.f32 %v5681_v24, %v5606_v20 }
0x1c8e   :  { %v6957_v8 = vpop.f32.mrf.mxu1 }
0x1c8f   :  { %v5685_v53 = vadd.f32 %v8469_v60, %v5682_v10  ;;  %v5753_v60 = vld [vmem:[%s8675_s6 + $0x18] sm:$0xff]  ;;  %s7412_s6 = smov [#allocation10]  }
0x1c90   :  { %6959 = vmatpush3.msra.mxu0 %v5753_v60  ;;  %s5844_s24 = sshll.u32 %s7412_s6, 4  ;;  %s5845_s24 = int_to_ptr.vmem [resolvable:$true] %s5844_s24 }
0x1c91   :  { %7230 = vtanh.f32 %v5685_v53  ;;  %v5950_v28 = vmul.f32 -1.442695, %v5685_v53  ;;  %6960 = vmatprep.subr.mxu0 %v7408_v1  ;;  %s7372_s3 = scalar_lea.vmem %s5845_s24, 64  ;;  %p7377_p7 = scmp.lt.s32.totalorder %s5845_s24, %s5845_s24 }
0x1c92   :  { %6961 = vmatpush3.msra.mxu0 %v5752_v47  ;;  %p7373_p6 = scmp.ne.s32.totalorder %s5845_s24, %s7372_s3  ;;  %p7378_p8 = scmp.lt.s32.totalorder %s7372_s3, %s7372_s3 }
0x1c93   :  { %7232 = vpow2.f32 %v5950_v28  ;;  %6962 = vmatprep.subr.mxu0 %v7408_v1 }
0x1c94   :  { %6963 = vmatpush3.msra.mxu0 %v5751_v49  ;;  %p7379_p9 = por %p7378_p8, %p7377_p7 }
0x1c95   :  { %6964 = vmatprep.subr.mxu0 %v7408_v1  ;;  %v5951_v1 = vld [vmem:[#allocation8] ss:$0 sm:$0xff] }
0x1c96   :  { %6965 = vmatpush3.msra.mxu0 %v5750_v32  ;;  %p7380_p10 = pnand %p7379_p9, %p7373_p6 }
0x1c9e   :  { %v7231_v19 = vpop.eup %7230 }
0x1c9f   :  { %5695 = vrot.lane.b32.xlu0 %v7231_v19, %s7410_s10 }
0x1ca0   :  { %v7233_v26 = vpop.eup %7232 }
0x1ca1   :  { %v5689_v46 = vadd.f32 1.0, %v7233_v26 }
0x1ca3   :  { %7234 = vrcp.f32 %v5689_v46 }
0x1cb0   :  { %v7235_v17 = vpop.eup %7234 }
0x1cb1   :  { %v5693_v25 = vmul.f32 %v7235_v17, %v5358_v4 }
0x1d11   :  { %v5696_v27 = vpop.permute.xlu0 %5695 }
0x1d12   :  { %v5698_v23 = vmul.f32 %v7235_v17, %v5696_v27 }
0x1d14   :  { %5700 = vrot.lane.b32.xlu1 %v5698_v23, %s7411_s11 }
0x1d86   :  { %v5701_v57 = vpop.permute.xlu1 %5700 }
0x1d87   :  { %v5703_v61 = vadd.f32 %v5701_v57, %v5693_v25 }
0x1d89   :  { %7236 = vtanh.f32 %v5703_v61 }
0x1d96   :  { %v7237_v0 = vpop.eup %7236 }
0x1d97   :  { %5706 = vrot.lane.b32.xlu0 %v7237_v0, %s7410_s10 }
0x1e09   :  { %v5707_v34 = vpop.permute.xlu0 %5706 }
0x1e0a   :  { %v5709_v43 = vmul.f32 %v7235_v17, %v5707_v34 }
0x1e0c   :  { %v5736_v45 = vsel %vm5710_vm3, %v5709_v43, 0.0 }
0x1e0d   :  { %v5737_v36 = vrot.slane %v5736_v45, 4 }
0x1e0f   :  { %v5738_v35 = vadd.f32 %v5737_v36, %v5736_v45 }
0x1e11   :  { %v5739_v11 = vrot.slane %v5738_v35, 2 }
0x1e13   :  { %v5740_v22 = vadd.f32 %v5739_v11, %v5738_v35 }
0x1e15   :  { %v5741_v18 = vrot.slane %v5740_v22, 1 }
0x1e17   :  { %v5742_v41 = vadd.f32 %v5741_v18, %v5740_v22 }
0x1e19   :  { %v5743_v42 = vmul.f32 0.125, %v5742_v41 }
0x1e1b   :  { %v5749_v7 = vsel %vm5748_vm6, %v5747_v5, %v5743_v42 }
0x1e1c   :  { %5762 = vrot.lane.b32.xlu1 %v5749_v7, %s7411_s11 }
0x1e8e   :  { %v5763_v44 = vpop.permute.xlu1 %5762 }
0x1e8f   :  { %6967 = vmatmul.mubr.msk.f32.vlgmr.msra.gmra.mxu0 %vm126_vm2, %v5763_v44 }
0x1f4f   :  { %v5832_v6 = vpop.f32.mrf.mxu0 }
0x1f50   :  { %v5833_v40 = vadd.f32 %v5951_v1, %v5832_v6 }
0x1f51   :  { %v6968_v55 = vpop.f32.mrf.mxu0 }
0x1f52   :  { %5837 = vst.msk [vmem:[#allocation10] sm:$0xf] %vm5836_vm7, %v5833_v40 }
0x1f53   :  { %7383 = shalt.err (!%p7380_p10)
}
0x1f54   :  { %5847 = dma.vmem_to_hbm [thread:$0]  %s5845_s24, 64, %s8677_s8, [#allocation4]  }
0x1f55   :  { %7398 = dma.done.wait [#allocation4], 64  }
0x1f56   :  { %7399 = vsyncadd [#allocation4], 4294967232 }
0x1f57   :  { %5851 = vsyncpa [#allocation3], 1 }
0x1f58   :  { %5852 = vsyncpa [#allocation6], 1 }
0x1f59   :  { %5853 = vsyncpa [#allocation9], 1 }
0x1f5a   :  { %5854 = vsyncpa [#allocation4], 1 }

</bundles_post_ra>
